<compile_context>
chip_gen: v7x
topology: tpu7x:2x2x1
jax: 0.10.0
libtpu: 0.0.40
codegen_flags: <defaults>
</compile_context>

<pallas_src>
import jax
import jax.numpy as jnp
from jax import lax
from jax.experimental import pallas as pl
from jax.experimental.pallas import tpu as pltpu

# ------------------------- hyper-parameters (small) -------------------------
VOCAB_SIZE = 32
EMBED_DIM = 8
CNN_OUT = 16
KERNEL_SIZE = 3
LSTM_HIDDEN = 32
LSTM_LAYERS = 2          # fused kernel below hard-codes exactly 2 layers
DROPOUT = 0.1            # identity at inference time
BATCH = 2
SEQ_LEN = 16
PAD = KERNEL_SIZE // 2

# ---------------------- packed param-slab row layout ------------------------
ROW_CONVT = 0                                   # rows [0, K*V)  lanes [0, C)
ROW_WIH0 = KERNEL_SIZE * VOCAB_SIZE             # rows [96, 112) lanes [0, 4H)
ROW_CONVB = ROW_WIH0 + CNN_OUT                  # row 112        lanes [0, C)
ROW_B0 = ROW_CONVB + 1                          # row 113        lanes [0, 4H)
ROW_B1 = ROW_B0 + 1                             # row 114        lanes [0, 4H)
ROW_FCW = ROW_B1 + 1                            # row 115        lanes [0, H)
ROW_FCB = ROW_FCW + 1                           # row 116        lane 0
P_ROWS = 120                                    # pad to a multiple of 8


# --------------------------------- kernel -----------------------------------
def cnn_lstm_kernel(tok_ref, wblk_ref, pslab_ref, out_ref):
    B = out_ref.shape[0]
    KLB = tok_ref.shape[0]                 # K * L * B shifted token rows
    LB = KLB // KERNEL_SIZE                # L * B time-major rows
    L = LB // B
    V = VOCAB_SIZE
    C = CNN_OUT
    H = LSTM_HIDDEN
    H4 = 4 * H

    # ---- unpack packed params (static, one-time slab slices) ----
    conv_b = pslab_ref[ROW_CONVB:ROW_CONVB + 1, 0:C]          # (1, C)
    b0 = pslab_ref[ROW_B0:ROW_B0 + 1, 0:H4]                   # (1, 4H) g-cols x2
    b1 = pslab_ref[ROW_B1:ROW_B1 + 1, 0:H4]                   # (1, 4H) g-cols x2
    fc_w = pslab_ref[ROW_FCW:ROW_FCW + 1, 0:H]                # (1, H)
    fc_b = pslab_ref[ROW_FCB:ROW_FCB + 1, 0:1]                # (1, 1)
    w_ih0 = pslab_ref[ROW_WIH0:ROW_WIH0 + C, 0:H4]            # (C, 4H) g-cols x2
    w_blk = wblk_ref[...]                                     # (2H, 8H) g-cols x2

    # ---- Embedding folded into Conv1d: acc += onehot_j @ (emb @ conv_w[j]).
    #      Pad slots carry token -1 -> zero one-hot row == conv zero padding;
    #      padding_idx=0 handled because emb row 0 is zero -> T_j row 0 is zero.
    lanes = lax.broadcasted_iota(jnp.int32, (LB, V), 1)
    acc = conv_b
    for j in range(KERNEL_SIZE):
        tok_j = tok_ref[j * LB:(j + 1) * LB, :]                # (LB, 1) int32
        oh_j = (tok_j == lanes).astype(jnp.float32)            # (LB, V)
        t_j = pslab_ref[ROW_CONVT + j * V:ROW_CONVT + (j + 1) * V, 0:C]
        acc = acc + jnp.dot(oh_j, t_j, preferred_element_type=jnp.float32)
    x_seq = jnp.maximum(acc, 0.0)                              # (LB, C) ReLU

    # ---- LSTM layer-0 input projection in ONE bulk matmul (off critical path)
    gx0 = jnp.dot(x_seq, w_ih0, preferred_element_type=jnp.float32) + b0  # (LB,4H)

    # ---- gate helper: g-gate columns pre-scaled x2, so a SINGLE full-width
    #      sigmoid gives i,f,o and tanh(g) = 2*sigmoid(2g)-1; tanh(c_new) is
    #      also 2*sigmoid(2c)-1 -> 2 EUP pushes per layer-step, one op family.
    def half_step(gates, c):
        s = jax.nn.sigmoid(gates)                              # (B, 4H) one EUP op
        i = s[:, 0 * H:1 * H]
        f = s[:, 1 * H:2 * H]
        g = 2.0 * s[:, 2 * H:3 * H] - 1.0
        o = s[:, 3 * H:4 * H]
        c_new = f * c + i * g
        h_new = o * (2.0 * jax.nn.sigmoid(2.0 * c_new) - 1.0)
        return h_new, c_new

    zeros = jnp.zeros((B, H), jnp.float32)
    h1, c0, c1 = zeros, zeros, zeros
    g0_rec = jnp.zeros((B, H4), jnp.float32)                   # h0(-1) @ w_hh0 = 0

    # ---- Wavefront-fused 2-layer recurrence: ONE (B,2H)@(2H,8H) MXU push per
    #      step computes [g0_rec(t+1) | g1_rec(t)] from [h0(t) | h1(t-1)].
    for t in range(L):
        h0, c0 = half_step(gx0[t * B:(t + 1) * B, :] + g0_rec, c0)     # layer 0, t
        blk = jnp.dot(jnp.concatenate([h0, h1], axis=-1), w_blk,
                      preferred_element_type=jnp.float32)              # (B, 8H)
        g0_rec = blk[:, 0:H4]                                          # layer 0, t+1
        h1, c1 = half_step(blk[:, H4:2 * H4] + b1, c1)                 # layer 1, t

    # ---- Dropout = identity at inference; final Linear (N=1) as a VPU
    #      multiply + cross-lane reduce instead of an MXU matmul.
    out_ref[...] = jnp.sum(h1 * fc_w, axis=-1, keepdims=True) + fc_b


# -------------------------------- wrapper ------------------------------------
def cnn_lstm_forward(x_tokens, params):
    emb, conv_w, conv_b, lstm_params, fc_w, fc_b = params
    assert LSTM_LAYERS == 2 and len(lstm_params) == 2
    B, L = x_tokens.shape
    H, H4, C, V, K = LSTM_HIDDEN, 4 * LSTM_HIDDEN, CNN_OUT, VOCAB_SIZE, KERNEL_SIZE
    LB = L * B

    (w_ih0, w_hh0, b0), (w_ih1, w_hh1, b1) = lstm_params   # (in,4H),(H,4H),(1,4H)

    # (1) tanh-as-sigmoid trick: pre-scale every g-gate column by 2.
    def scale_g(m):
        return m.at[..., 2 * H:3 * H].multiply(2.0)
    w_ih0, w_hh0, b0 = scale_g(w_ih0), scale_g(w_hh0), scale_g(b0)
    w_ih1, w_hh1, b1 = scale_g(w_ih1), scale_g(w_hh1), scale_g(b1)

    # (2) fused wavefront recurrent weight: [h0 | h1] @ [[w_hh0, w_ih1],[0, w_hh1]].
    W_blk = jnp.concatenate([
        jnp.concatenate([w_hh0, w_ih1], axis=1),
        jnp.concatenate([jnp.zeros((H, H4), jnp.float32), w_hh1], axis=1),
    ], axis=0)                                                          # (2H, 8H)

    # (3) fold embedding into the conv taps: T_j = emb @ conv_w[j]  (V, C).
    hi = jax.lax.Precision.HIGHEST
    convT = jnp.concatenate(
        [jnp.dot(emb, conv_w[j], precision=hi) for j in range(K)], axis=0)  # (K*V, C)

    # (4) pack everything except W_blk into one (8,128)-aligned f32 slab.
    pslab = jnp.zeros((P_ROWS, H4), jnp.float32)
    pslab = pslab.at[ROW_CONVT:ROW_CONVT + K * V, 0:C].set(convT)
    pslab = pslab.at[ROW_WIH0:ROW_WIH0 + C, 0:H4].set(w_ih0)
    pslab = pslab.at[ROW_CONVB, 0:C].set(conv_b[0])
    pslab = pslab.at[ROW_B0, 0:H4].set(b0[0])
    pslab = pslab.at[ROW_B1, 0:H4].set(b1[0])
    pslab = pslab.at[ROW_FCW, 0:H].set(fc_w[0])
    pslab = pslab.at[ROW_FCB, 0].set(fc_b[0, 0])

    # (5) j-shifted time-major tokens (tiny int glue); pad slots get sentinel -1.
    tok_tm = jnp.transpose(x_tokens.astype(jnp.int32), (1, 0))             # (L, B)
    tok_pad = jnp.pad(tok_tm, ((PAD, PAD), (0, 0)), constant_values=-1)    # (L+2P, B)
    tok_shift = jnp.concatenate(
        [tok_pad[j:j + L].reshape(LB, 1) for j in range(K)], axis=0)       # (K*LB, 1)

    inputs = [tok_shift, W_blk, pslab]
    in_specs = [pl.BlockSpec(a.shape, lambda i: (0, 0)) for a in inputs]

    return pl.pallas_call(
        cnn_lstm_kernel,
        out_shape=jax.ShapeDtypeStruct((B, 1), jnp.float32),
        grid_spec=pltpu.PrefetchScalarGridSpec(
            num_scalar_prefetch=0,
            grid=(1,),
            in_specs=in_specs,
            out_specs=pl.BlockSpec((B, 1), lambda i: (0, 0)),
        ),
        compiler_params=pltpu.CompilerParams(
            dimension_semantics=("arbitrary",)),
    )(*inputs)


# --------------------------- deterministic params ----------------------------
def init_params(key):
    keys = jax.random.split(key, 16)

    def rnd(k, shape, scale=0.1):
        return jax.random.normal(k, shape, jnp.float32) * scale

    emb = rnd(keys[0], (VOCAB_SIZE, EMBED_DIM))
    emb = emb.at[0].set(0.0)                                  # padding_idx=0

    # PyTorch conv1d weight (cnn_out, embed_dim, K) -> per-tap layout (K, E, C)
    conv_w_pt = rnd(keys[1], (CNN_OUT, EMBED_DIM, KERNEL_SIZE))
    conv_w = jnp.transpose(conv_w_pt, (2, 1, 0))
    conv_b = rnd(keys[2], (1, CNN_OUT))

    lstm_params = []
    kidx = 3
    for l in range(LSTM_LAYERS):
        in_l = CNN_OUT if l == 0 else LSTM_HIDDEN
        w_ih = rnd(keys[kidx], (4 * LSTM_HIDDEN, in_l)); kidx += 1
        w_hh = rnd(keys[kidx], (4 * LSTM_HIDDEN, LSTM_HIDDEN)); kidx += 1
        b_ih = rnd(keys[kidx], (4 * LSTM_HIDDEN,)); kidx += 1
        b_hh = rnd(keys[kidx], (4 * LSTM_HIDDEN,)); kidx += 1
        lstm_params.append((w_ih.T, w_hh.T, (b_ih + b_hh)[None, :]))

    fc_w = rnd(keys[kidx], (1, LSTM_HIDDEN)); kidx += 1       # PyTorch (1, H)
    fc_b = rnd(keys[kidx], (1, 1))
    return emb, conv_w, conv_b, lstm_params, fc_w, fc_b


# ------------------------------ JAX reference ---------------------------------
def ref_forward(x_tokens, params):
    emb, conv_w, conv_b, lstm_params, fc_w, fc_b = params
    B, L = x_tokens.shape
    x_emb = jnp.take(emb, x_tokens, axis=0)
    x_pad = jnp.pad(x_emb, ((0, 0), (PAD, PAD), (0, 0)))
    acc = jnp.zeros((B, L, CNN_OUT), jnp.float32)
    for j in range(KERNEL_SIZE):
        acc = acc + jnp.einsum('ble,ec->blc', x_pad[:, j:j + L, :], conv_w[j])
    x_seq = jnp.maximum(acc + conv_b, 0.0)

    h_last = None
    for (w_ih, w_hh, b) in lstm_params:
        def cell(carry, x_t):
            h, c = carry
            gates = x_t @ w_ih + h @ w_hh + b
            i, f, g, o = jnp.split(gates, 4, axis=-1)
            i, f, o = jax.nn.sigmoid(i), jax.nn.sigmoid(f), jax.nn.sigmoid(o)
            g = jnp.tanh(g)
            c = f * c + i * g
            h = o * jnp.tanh(c)
            return (h, c), h
        h0 = jnp.zeros((B, LSTM_HIDDEN), jnp.float32)
        c0 = jnp.zeros((B, LSTM_HIDDEN), jnp.float32)
        (h_last, _), hs = lax.scan(cell, (h0, c0), jnp.swapaxes(x_seq, 0, 1))
        x_seq = jnp.swapaxes(hs, 0, 1)
    return h_last @ jnp.transpose(fc_w) + fc_b


# ----------------------------------- main -------------------------------------
if __name__ == "__main__":
    key = jax.random.PRNGKey(0)
    k_tok, k_par = jax.random.split(key)
    x_tokens = jax.random.randint(k_tok, (BATCH, SEQ_LEN), 0, VOCAB_SIZE,
                                  dtype=jnp.int32)
    params = init_params(k_par)

    out = jax.block_until_ready(cnn_lstm_forward(x_tokens, params))
    ref = jax.block_until_ready(ref_forward(x_tokens, params))
    assert out.shape == (BATCH, 1)
    assert jnp.allclose(out, ref, atol=1e-4, rtol=1e-4), (out, ref)
    print("KERNEL_OK")
</pallas_src>

<mosaic_0001>
module attributes {stable_mosaic.version = 11 : i64} {
  func.func @cnn_lstm_kernel(%arg0: i32, %arg1: memref<96x1xi32, #tpu.memory_space<vmem>>, %arg2: memref<64x256xf32, #tpu.memory_space<vmem>>, %arg3: memref<120x128xf32, #tpu.memory_space<vmem>>, %arg4: memref<2x1xf32, #tpu.memory_space<vmem>>) attributes {dimension_semantics = [#tpu.dimension_semantics<arbitrary>], iteration_bounds = array<i64: 1>, scalar_prefetch = 0 : i64, scratch_operands = 0 : i64, tpu.core_type = #tpu.core_type<tc>, window_params = [{pipeline_mode = #tpu.pipeline_mode<synchronous>, transform_indices = @transform_0, window_bounds = array<i64: 96, 1>}, {pipeline_mode = #tpu.pipeline_mode<synchronous>, transform_indices = @transform_1, window_bounds = array<i64: 64, 256>}, {pipeline_mode = #tpu.pipeline_mode<synchronous>, transform_indices = @transform_2, window_bounds = array<i64: 120, 128>}, {pipeline_mode = #tpu.pipeline_mode<synchronous>, transform_indices = @transform_3, window_bounds = array<i64: 2, 1>}]} {
    %c112 = arith.constant 112 : index
    %c0 = arith.constant 0 : index
    %0 = vector.load %arg3[%c112, %c0] : memref<120x128xf32, #tpu.memory_space<vmem>>, vector<1x16xf32>
    %c113 = arith.constant 113 : index
    %c0_0 = arith.constant 0 : index
    %1 = vector.load %arg3[%c113, %c0_0] : memref<120x128xf32, #tpu.memory_space<vmem>>, vector<1x128xf32>
    %c114 = arith.constant 114 : index
    %c0_1 = arith.constant 0 : index
    %2 = vector.load %arg3[%c114, %c0_1] : memref<120x128xf32, #tpu.memory_space<vmem>>, vector<1x128xf32>
    %c115 = arith.constant 115 : index
    %c0_2 = arith.constant 0 : index
    %3 = vector.load %arg3[%c115, %c0_2] : memref<120x128xf32, #tpu.memory_space<vmem>>, vector<1x32xf32>
    %c116 = arith.constant 116 : index
    %c0_3 = arith.constant 0 : index
    %4 = vector.load %arg3[%c116, %c0_3] : memref<120x128xf32, #tpu.memory_space<vmem>>, vector<1x1xf32>
    %c96 = arith.constant 96 : index
    %c0_4 = arith.constant 0 : index
    %5 = vector.load %arg3[%c96, %c0_4] : memref<120x128xf32, #tpu.memory_space<vmem>>, vector<16x128xf32>
    %c0_5 = arith.constant 0 : index
    %c0_6 = arith.constant 0 : index
    %6 = vector.load %arg2[%c0_5, %c0_6] : memref<64x256xf32, #tpu.memory_space<vmem>>, vector<64x256xf32>
    %7 = tpu.iota {dimensions = array<i32: 1>} : vector<32x32xi32>
    %c0_7 = arith.constant 0 : index
    %c0_8 = arith.constant 0 : index
    %8 = vector.load %arg1[%c0_7, %c0_8] : memref<96x1xi32, #tpu.memory_space<vmem>>, vector<32x1xi32>
    %9 = vector.broadcast %8 : vector<32x1xi32> to vector<32x32xi32>
    %10 = arith.cmpi eq, %9, %7 : vector<32x32xi32>
    %11 = arith.extui %10 : vector<32x32xi1> to vector<32x32xi32>
    %12 = arith.sitofp %11 : vector<32x32xi32> to vector<32x32xf32>
    %c0_9 = arith.constant 0 : index
    %c0_10 = arith.constant 0 : index
    %13 = vector.load %arg3[%c0_9, %c0_10] : memref<120x128xf32, #tpu.memory_space<vmem>>, vector<32x16xf32>
    %cst = arith.constant dense<0.000000e+00> : vector<32x16xf32>
    %14 = tpu.matmul %12, %13, %cst {dimension_numbers = #tpu.dot_dimension_numbers<[1], [0], [0], [1], [0, 0, 1, 1], [], []>} : vector<32x32xf32>, vector<32x16xf32>, vector<32x16xf32> -> vector<32x16xf32>
    %15 = vector.broadcast %0 : vector<1x16xf32> to vector<32x16xf32>
    %16 = arith.addf %15, %14 : vector<32x16xf32>
    %c32 = arith.constant 32 : index
    %c0_11 = arith.constant 0 : index
    %17 = vector.load %arg1[%c32, %c0_11] : memref<96x1xi32, #tpu.memory_space<vmem>>, vector<32x1xi32>
    %18 = vector.broadcast %17 : vector<32x1xi32> to vector<32x32xi32>
    %19 = arith.cmpi eq, %18, %7 : vector<32x32xi32>
    %20 = arith.extui %19 : vector<32x32xi1> to vector<32x32xi32>
    %21 = arith.sitofp %20 : vector<32x32xi32> to vector<32x32xf32>
    %c32_12 = arith.constant 32 : index
    %c0_13 = arith.constant 0 : index
    %22 = vector.load %arg3[%c32_12, %c0_13] : memref<120x128xf32, #tpu.memory_space<vmem>>, vector<32x16xf32>
    %cst_14 = arith.constant dense<0.000000e+00> : vector<32x16xf32>
    %23 = tpu.matmul %21, %22, %cst_14 {dimension_numbers = #tpu.dot_dimension_numbers<[1], [0], [0], [1], [0, 0, 1, 1], [], []>} : vector<32x32xf32>, vector<32x16xf32>, vector<32x16xf32> -> vector<32x16xf32>
    %24 = arith.addf %16, %23 : vector<32x16xf32>
    %c64 = arith.constant 64 : index
    %c0_15 = arith.constant 0 : index
    %25 = vector.load %arg1[%c64, %c0_15] : memref<96x1xi32, #tpu.memory_space<vmem>>, vector<32x1xi32>
    %26 = vector.broadcast %25 : vector<32x1xi32> to vector<32x32xi32>
    %27 = arith.cmpi eq, %26, %7 : vector<32x32xi32>
    %28 = arith.extui %27 : vector<32x32xi1> to vector<32x32xi32>
    %29 = arith.sitofp %28 : vector<32x32xi32> to vector<32x32xf32>
    %c64_16 = arith.constant 64 : index
    %c0_17 = arith.constant 0 : index
    %30 = vector.load %arg3[%c64_16, %c0_17] : memref<120x128xf32, #tpu.memory_space<vmem>>, vector<32x16xf32>
    %cst_18 = arith.constant dense<0.000000e+00> : vector<32x16xf32>
    %31 = tpu.matmul %29, %30, %cst_18 {dimension_numbers = #tpu.dot_dimension_numbers<[1], [0], [0], [1], [0, 0, 1, 1], [], []>} : vector<32x32xf32>, vector<32x16xf32>, vector<32x16xf32> -> vector<32x16xf32>
    %32 = arith.addf %24, %31 : vector<32x16xf32>
    %cst_19 = arith.constant 0.000000e+00 : f32
    %33 = vector.broadcast %cst_19 : f32 to vector<32x16xf32>
    %34 = arith.maximumf %32, %33 : vector<32x16xf32>
    %cst_20 = arith.constant dense<0.000000e+00> : vector<32x128xf32>
    %35 = tpu.matmul %34, %5, %cst_20 {dimension_numbers = #tpu.dot_dimension_numbers<[1], [0], [0], [1], [0, 0, 1, 1], [], []>} : vector<32x16xf32>, vector<16x128xf32>, vector<32x128xf32> -> vector<32x128xf32>
    %36 = vector.broadcast %1 : vector<1x128xf32> to vector<32x128xf32>
    %37 = arith.addf %35, %36 : vector<32x128xf32>
    %cst_21 = arith.constant 0.000000e+00 : f32
    %38 = vector.broadcast %cst_21 : f32 to vector<2x32xf32>
    %cst_22 = arith.constant 0.000000e+00 : f32
    %39 = vector.broadcast %cst_22 : f32 to vector<2x128xf32>
    %40 = vector.extract_strided_slice %37 {offsets = [0, 0], sizes = [2, 128], strides = [1, 1]} : vector<32x128xf32> to vector<2x128xf32>
    %41 = arith.addf %40, %39 : vector<2x128xf32>
    %42 = arith.negf %41 : vector<2x128xf32>
    %43 = math.exp %42 : vector<2x128xf32>
    %cst_23 = arith.constant 1.000000e+00 : f32
    %44 = vector.broadcast %cst_23 : f32 to vector<2x128xf32>
    %45 = arith.addf %44, %43 : vector<2x128xf32>
    %46 = arith.divf %44, %45 : vector<2x128xf32>
    %47 = vector.extract_strided_slice %46 {offsets = [0, 0], sizes = [2, 32], strides = [1, 1]} : vector<2x128xf32> to vector<2x32xf32>
    %48 = vector.extract_strided_slice %46 {offsets = [0, 32], sizes = [2, 32], strides = [1, 1]} : vector<2x128xf32> to vector<2x32xf32>
    %49 = vector.extract_strided_slice %46 {offsets = [0, 64], sizes = [2, 32], strides = [1, 1]} : vector<2x128xf32> to vector<2x32xf32>
    %cst_24 = arith.constant 2.000000e+00 : f32
    %50 = vector.broadcast %cst_24 : f32 to vector<2x32xf32>
    %51 = arith.mulf %50, %49 : vector<2x32xf32>
    %cst_25 = arith.constant 1.000000e+00 : f32
    %52 = vector.broadcast %cst_25 : f32 to vector<2x32xf32>
    %53 = arith.subf %51, %52 : vector<2x32xf32>
    %54 = vector.extract_strided_slice %46 {offsets = [0, 96], sizes = [2, 32], strides = [1, 1]} : vector<2x128xf32> to vector<2x32xf32>
    %55 = arith.mulf %48, %38 : vector<2x32xf32>
    %56 = arith.mulf %47, %53 : vector<2x32xf32>
    %57 = arith.addf %55, %56 : vector<2x32xf32>
    %cst_26 = arith.constant 2.000000e+00 : f32
    %58 = vector.broadcast %cst_26 : f32 to vector<2x32xf32>
    %59 = arith.mulf %58, %57 : vector<2x32xf32>
    %60 = arith.negf %59 : vector<2x32xf32>
    %61 = math.exp %60 : vector<2x32xf32>
    %cst_27 = arith.constant 1.000000e+00 : f32
    %62 = vector.broadcast %cst_27 : f32 to vector<2x32xf32>
    %63 = arith.addf %62, %61 : vector<2x32xf32>
    %64 = arith.divf %62, %63 : vector<2x32xf32>
    %cst_28 = arith.constant 2.000000e+00 : f32
    %65 = vector.broadcast %cst_28 : f32 to vector<2x32xf32>
    %66 = arith.mulf %65, %64 : vector<2x32xf32>
    %cst_29 = arith.constant 1.000000e+00 : f32
    %67 = vector.broadcast %cst_29 : f32 to vector<2x32xf32>
    %68 = arith.subf %66, %67 : vector<2x32xf32>
    %69 = arith.mulf %54, %68 : vector<2x32xf32>
    %70 = tpu.concatenate %69, %38 in 1 : vector<2x32xf32>, vector<2x32xf32> -> vector<2x64xf32>
    %cst_30 = arith.constant dense<0.000000e+00> : vector<2x256xf32>
    %71 = tpu.matmul %70, %6, %cst_30 {dimension_numbers = #tpu.dot_dimension_numbers<[1], [0], [0], [1], [0, 0, 1, 1], [], []>} : vector<2x64xf32>, vector<64x256xf32>, vector<2x256xf32> -> vector<2x256xf32>
    %72 = vector.extract_strided_slice %71 {offsets = [0, 0], sizes = [2, 128], strides = [1, 1]} : vector<2x256xf32> to vector<2x128xf32>
    %73 = vector.extract_strided_slice %71 {offsets = [0, 128], sizes = [2, 128], strides = [1, 1]} : vector<2x256xf32> to vector<2x128xf32>
    %74 = vector.broadcast %2 : vector<1x128xf32> to vector<2x128xf32>
    %75 = arith.addf %73, %74 : vector<2x128xf32>
    %76 = arith.negf %75 : vector<2x128xf32>
    %77 = math.exp %76 : vector<2x128xf32>
    %cst_31 = arith.constant 1.000000e+00 : f32
    %78 = vector.broadcast %cst_31 : f32 to vector<2x128xf32>
    %79 = arith.addf %78, %77 : vector<2x128xf32>
    %80 = arith.divf %78, %79 : vector<2x128xf32>
    %81 = vector.extract_strided_slice %80 {offsets = [0, 0], sizes = [2, 32], strides = [1, 1]} : vector<2x128xf32> to vector<2x32xf32>
    %82 = vector.extract_strided_slice %80 {offsets = [0, 32], sizes = [2, 32], strides = [1, 1]} : vector<2x128xf32> to vector<2x32xf32>
    %83 = vector.extract_strided_slice %80 {offsets = [0, 64], sizes = [2, 32], strides = [1, 1]} : vector<2x128xf32> to vector<2x32xf32>
    %cst_32 = arith.constant 2.000000e+00 : f32
    %84 = vector.broadcast %cst_32 : f32 to vector<2x32xf32>
    %85 = arith.mulf %84, %83 : vector<2x32xf32>
    %cst_33 = arith.constant 1.000000e+00 : f32
    %86 = vector.broadcast %cst_33 : f32 to vector<2x32xf32>
    %87 = arith.subf %85, %86 : vector<2x32xf32>
    %88 = vector.extract_strided_slice %80 {offsets = [0, 96], sizes = [2, 32], strides = [1, 1]} : vector<2x128xf32> to vector<2x32xf32>
    %89 = arith.mulf %82, %38 : vector<2x32xf32>
    %90 = arith.mulf %81, %87 : vector<2x32xf32>
    %91 = arith.addf %89, %90 : vector<2x32xf32>
    %cst_34 = arith.constant 2.000000e+00 : f32
    %92 = vector.broadcast %cst_34 : f32 to vector<2x32xf32>
    %93 = arith.mulf %92, %91 : vector<2x32xf32>
    %94 = arith.negf %93 : vector<2x32xf32>
    %95 = math.exp %94 : vector<2x32xf32>
    %cst_35 = arith.constant 1.000000e+00 : f32
    %96 = vector.broadcast %cst_35 : f32 to vector<2x32xf32>
    %97 = arith.addf %96, %95 : vector<2x32xf32>
    %98 = arith.divf %96, %97 : vector<2x32xf32>
    %cst_36 = arith.constant 2.000000e+00 : f32
    %99 = vector.broadcast %cst_36 : f32 to vector<2x32xf32>
    %100 = arith.mulf %99, %98 : vector<2x32xf32>
    %cst_37 = arith.constant 1.000000e+00 : f32
    %101 = vector.broadcast %cst_37 : f32 to vector<2x32xf32>
    %102 = arith.subf %100, %101 : vector<2x32xf32>
    %103 = arith.mulf %88, %102 : vector<2x32xf32>
    %104 = vector.extract_strided_slice %37 {offsets = [2, 0], sizes = [2, 128], strides = [1, 1]} : vector<32x128xf32> to vector<2x128xf32>
    %105 = arith.addf %104, %72 : vector<2x128xf32>
    %106 = arith.negf %105 : vector<2x128xf32>
    %107 = math.exp %106 : vector<2x128xf32>
    %cst_38 = arith.constant 1.000000e+00 : f32
    %108 = vector.broadcast %cst_38 : f32 to vector<2x128xf32>
    %109 = arith.addf %108, %107 : vector<2x128xf32>
    %110 = arith.divf %108, %109 : vector<2x128xf32>
    %111 = vector.extract_strided_slice %110 {offsets = [0, 0], sizes = [2, 32], strides = [1, 1]} : vector<2x128xf32> to vector<2x32xf32>
    %112 = vector.extract_strided_slice %110 {offsets = [0, 32], sizes = [2, 32], strides = [1, 1]} : vector<2x128xf32> to vector<2x32xf32>
    %113 = vector.extract_strided_slice %110 {offsets = [0, 64], sizes = [2, 32], strides = [1, 1]} : vector<2x128xf32> to vector<2x32xf32>
    %cst_39 = arith.constant 2.000000e+00 : f32
    %114 = vector.broadcast %cst_39 : f32 to vector<2x32xf32>
    %115 = arith.mulf %114, %113 : vector<2x32xf32>
    %cst_40 = arith.constant 1.000000e+00 : f32
    %116 = vector.broadcast %cst_40 : f32 to vector<2x32xf32>
    %117 = arith.subf %115, %116 : vector<2x32xf32>
    %118 = vector.extract_strided_slice %110 {offsets = [0, 96], sizes = [2, 32], strides = [1, 1]} : vector<2x128xf32> to vector<2x32xf32>
    %119 = arith.mulf %112, %57 : vector<2x32xf32>
    %120 = arith.mulf %111, %117 : vector<2x32xf32>
    %121 = arith.addf %119, %120 : vector<2x32xf32>
    %cst_41 = arith.constant 2.000000e+00 : f32
    %122 = vector.broadcast %cst_41 : f32 to vector<2x32xf32>
    %123 = arith.mulf %122, %121 : vector<2x32xf32>
    %124 = arith.negf %123 : vector<2x32xf32>
    %125 = math.exp %124 : vector<2x32xf32>
    %cst_42 = arith.constant 1.000000e+00 : f32
    %126 = vector.broadcast %cst_42 : f32 to vector<2x32xf32>
    %127 = arith.addf %126, %125 : vector<2x32xf32>
    %128 = arith.divf %126, %127 : vector<2x32xf32>
    %cst_43 = arith.constant 2.000000e+00 : f32
    %129 = vector.broadcast %cst_43 : f32 to vector<2x32xf32>
    %130 = arith.mulf %129, %128 : vector<2x32xf32>
    %cst_44 = arith.constant 1.000000e+00 : f32
    %131 = vector.broadcast %cst_44 : f32 to vector<2x32xf32>
    %132 = arith.subf %130, %131 : vector<2x32xf32>
    %133 = arith.mulf %118, %132 : vector<2x32xf32>
    %134 = tpu.concatenate %133, %103 in 1 : vector<2x32xf32>, vector<2x32xf32> -> vector<2x64xf32>
    %cst_45 = arith.constant dense<0.000000e+00> : vector<2x256xf32>
    %135 = tpu.matmul %134, %6, %cst_45 {dimension_numbers = #tpu.dot_dimension_numbers<[1], [0], [0], [1], [0, 0, 1, 1], [], []>} : vector<2x64xf32>, vector<64x256xf32>, vector<2x256xf32> -> vector<2x256xf32>
    %136 = vector.extract_strided_slice %135 {offsets = [0, 0], sizes = [2, 128], strides = [1, 1]} : vector<2x256xf32> to vector<2x128xf32>
    %137 = vector.extract_strided_slice %135 {offsets = [0, 128], sizes = [2, 128], strides = [1, 1]} : vector<2x256xf32> to vector<2x128xf32>
    %138 = vector.broadcast %2 : vector<1x128xf32> to vector<2x128xf32>
    %139 = arith.addf %137, %138 : vector<2x128xf32>
    %140 = arith.negf %139 : vector<2x128xf32>
    %141 = math.exp %140 : vector<2x128xf32>
    %cst_46 = arith.constant 1.000000e+00 : f32
    %142 = vector.broadcast %cst_46 : f32 to vector<2x128xf32>
    %143 = arith.addf %142, %141 : vector<2x128xf32>
    %144 = arith.divf %142, %143 : vector<2x128xf32>
    %145 = vector.extract_strided_slice %144 {offsets = [0, 0], sizes = [2, 32], strides = [1, 1]} : vector<2x128xf32> to vector<2x32xf32>
    %146 = vector.extract_strided_slice %144 {offsets = [0, 32], sizes = [2, 32], strides = [1, 1]} : vector<2x128xf32> to vector<2x32xf32>
    %147 = vector.extract_strided_slice %144 {offsets = [0, 64], sizes = [2, 32], strides = [1, 1]} : vector<2x128xf32> to vector<2x32xf32>
    %cst_47 = arith.constant 2.000000e+00 : f32
    %148 = vector.broadcast %cst_47 : f32 to vector<2x32xf32>
    %149 = arith.mulf %148, %147 : vector<2x32xf32>
    %cst_48 = arith.constant 1.000000e+00 : f32
    %150 = vector.broadcast %cst_48 : f32 to vector<2x32xf32>
    %151 = arith.subf %149, %150 : vector<2x32xf32>
    %152 = vector.extract_strided_slice %144 {offsets = [0, 96], sizes = [2, 32], strides = [1, 1]} : vector<2x128xf32> to vector<2x32xf32>
    %153 = arith.mulf %146, %91 : vector<2x32xf32>
    %154 = arith.mulf %145, %151 : vector<2x32xf32>
    %155 = arith.addf %153, %154 : vector<2x32xf32>
    %cst_49 = arith.constant 2.000000e+00 : f32
    %156 = vector.broadcast %cst_49 : f32 to vector<2x32xf32>
    %157 = arith.mulf %156, %155 : vector<2x32xf32>
    %158 = arith.negf %157 : vector<2x32xf32>
    %159 = math.exp %158 : vector<2x32xf32>
    %cst_50 = arith.constant 1.000000e+00 : f32
    %160 = vector.broadcast %cst_50 : f32 to vector<2x32xf32>
    %161 = arith.addf %160, %159 : vector<2x32xf32>
    %162 = arith.divf %160, %161 : vector<2x32xf32>
    %cst_51 = arith.constant 2.000000e+00 : f32
    %163 = vector.broadcast %cst_51 : f32 to vector<2x32xf32>
    %164 = arith.mulf %163, %162 : vector<2x32xf32>
    %cst_52 = arith.constant 1.000000e+00 : f32
    %165 = vector.broadcast %cst_52 : f32 to vector<2x32xf32>
    %166 = arith.subf %164, %165 : vector<2x32xf32>
    %167 = arith.mulf %152, %166 : vector<2x32xf32>
    %168 = vector.extract_strided_slice %37 {offsets = [4, 0], sizes = [2, 128], strides = [1, 1]} : vector<32x128xf32> to vector<2x128xf32>
    %169 = arith.addf %168, %136 : vector<2x128xf32>
    %170 = arith.negf %169 : vector<2x128xf32>
    %171 = math.exp %170 : vector<2x128xf32>
    %cst_53 = arith.constant 1.000000e+00 : f32
    %172 = vector.broadcast %cst_53 : f32 to vector<2x128xf32>
    %173 = arith.addf %172, %171 : vector<2x128xf32>
    %174 = arith.divf %172, %173 : vector<2x128xf32>
    %175 = vector.extract_strided_slice %174 {offsets = [0, 0], sizes = [2, 32], strides = [1, 1]} : vector<2x128xf32> to vector<2x32xf32>
    %176 = vector.extract_strided_slice %174 {offsets = [0, 32], sizes = [2, 32], strides = [1, 1]} : vector<2x128xf32> to vector<2x32xf32>
    %177 = vector.extract_strided_slice %174 {offsets = [0, 64], sizes = [2, 32], strides = [1, 1]} : vector<2x128xf32> to vector<2x32xf32>
    %cst_54 = arith.constant 2.000000e+00 : f32
    %178 = vector.broadcast %cst_54 : f32 to vector<2x32xf32>
    %179 = arith.mulf %178, %177 : vector<2x32xf32>
    %cst_55 = arith.constant 1.000000e+00 : f32
    %180 = vector.broadcast %cst_55 : f32 to vector<2x32xf32>
    %181 = arith.subf %179, %180 : vector<2x32xf32>
    %182 = vector.extract_strided_slice %174 {offsets = [0, 96], sizes = [2, 32], strides = [1, 1]} : vector<2x128xf32> to vector<2x32xf32>
    %183 = arith.mulf %176, %121 : vector<2x32xf32>
    %184 = arith.mulf %175, %181 : vector<2x32xf32>
    %185 = arith.addf %183, %184 : vector<2x32xf32>
    %cst_56 = arith.constant 2.000000e+00 : f32
    %186 = vector.broadcast %cst_56 : f32 to vector<2x32xf32>
    %187 = arith.mulf %186, %185 : vector<2x32xf32>
    %188 = arith.negf %187 : vector<2x32xf32>
    %189 = math.exp %188 : vector<2x32xf32>
    %cst_57 = arith.constant 1.000000e+00 : f32
    %190 = vector.broadcast %cst_57 : f32 to vector<2x32xf32>
    %191 = arith.addf %190, %189 : vector<2x32xf32>
    %192 = arith.divf %190, %191 : vector<2x32xf32>
    %cst_58 = arith.constant 2.000000e+00 : f32
    %193 = vector.broadcast %cst_58 : f32 to vector<2x32xf32>
    %194 = arith.mulf %193, %192 : vector<2x32xf32>
    %cst_59 = arith.constant 1.000000e+00 : f32
    %195 = vector.broadcast %cst_59 : f32 to vector<2x32xf32>
    %196 = arith.subf %194, %195 : vector<2x32xf32>
    %197 = arith.mulf %182, %196 : vector<2x32xf32>
    %198 = tpu.concatenate %197, %167 in 1 : vector<2x32xf32>, vector<2x32xf32> -> vector<2x64xf32>
    %cst_60 = arith.constant dense<0.000000e+00> : vector<2x256xf32>
    %199 = tpu.matmul %198, %6, %cst_60 {dimension_numbers = #tpu.dot_dimension_numbers<[1], [0], [0], [1], [0, 0, 1, 1], [], []>} : vector<2x64xf32>, vector<64x256xf32>, vector<2x256xf32> -> vector<2x256xf32>
    %200 = vector.extract_strided_slice %199 {offsets = [0, 0], sizes = [2, 128], strides = [1, 1]} : vector<2x256xf32> to vector<2x128xf32>
    %201 = vector.extract_strided_slice %199 {offsets = [0, 128], sizes = [2, 128], strides = [1, 1]} : vector<2x256xf32> to vector<2x128xf32>
    %202 = vector.broadcast %2 : vector<1x128xf32> to vector<2x128xf32>
    %203 = arith.addf %201, %202 : vector<2x128xf32>
    %204 = arith.negf %203 : vector<2x128xf32>
    %205 = math.exp %204 : vector<2x128xf32>
    %cst_61 = arith.constant 1.000000e+00 : f32
    %206 = vector.broadcast %cst_61 : f32 to vector<2x128xf32>
    %207 = arith.addf %206, %205 : vector<2x128xf32>
    %208 = arith.divf %206, %207 : vector<2x128xf32>
    %209 = vector.extract_strided_slice %208 {offsets = [0, 0], sizes = [2, 32], strides = [1, 1]} : vector<2x128xf32> to vector<2x32xf32>
    %210 = vector.extract_strided_slice %208 {offsets = [0, 32], sizes = [2, 32], strides = [1, 1]} : vector<2x128xf32> to vector<2x32xf32>
    %211 = vector.extract_strided_slice %208 {offsets = [0, 64], sizes = [2, 32], strides = [1, 1]} : vector<2x128xf32> to vector<2x32xf32>
    %cst_62 = arith.constant 2.000000e+00 : f32
    %212 = vector.broadcast %cst_62 : f32 to vector<2x32xf32>
    %213 = arith.mulf %212, %211 : vector<2x32xf32>
    %cst_63 = arith.constant 1.000000e+00 : f32
    %214 = vector.broadcast %cst_63 : f32 to vector<2x32xf32>
    %215 = arith.subf %213, %214 : vector<2x32xf32>
    %216 = vector.extract_strided_slice %208 {offsets = [0, 96], sizes = [2, 32], strides = [1, 1]} : vector<2x128xf32> to vector<2x32xf32>
    %217 = arith.mulf %210, %155 : vector<2x32xf32>
    %218 = arith.mulf %209, %215 : vector<2x32xf32>
    %219 = arith.addf %217, %218 : vector<2x32xf32>
    %cst_64 = arith.constant 2.000000e+00 : f32
    %220 = vector.broadcast %cst_64 : f32 to vector<2x32xf32>
    %221 = arith.mulf %220, %219 : vector<2x32xf32>
    %222 = arith.negf %221 : vector<2x32xf32>
    %223 = math.exp %222 : vector<2x32xf32>
    %cst_65 = arith.constant 1.000000e+00 : f32
    %224 = vector.broadcast %cst_65 : f32 to vector<2x32xf32>
    %225 = arith.addf %224, %223 : vector<2x32xf32>
    %226 = arith.divf %224, %225 : vector<2x32xf32>
    %cst_66 = arith.constant 2.000000e+00 : f32
    %227 = vector.broadcast %cst_66 : f32 to vector<2x32xf32>
    %228 = arith.mulf %227, %226 : vector<2x32xf32>
    %cst_67 = arith.constant 1.000000e+00 : f32
    %229 = vector.broadcast %cst_67 : f32 to vector<2x32xf32>
    %230 = arith.subf %228, %229 : vector<2x32xf32>
    %231 = arith.mulf %216, %230 : vector<2x32xf32>
    %232 = vector.extract_strided_slice %37 {offsets = [6, 0], sizes = [2, 128], strides = [1, 1]} : vector<32x128xf32> to vector<2x128xf32>
    %233 = arith.addf %232, %200 : vector<2x128xf32>
    %234 = arith.negf %233 : vector<2x128xf32>
    %235 = math.exp %234 : vector<2x128xf32>
    %cst_68 = arith.constant 1.000000e+00 : f32
    %236 = vector.broadcast %cst_68 : f32 to vector<2x128xf32>
    %237 = arith.addf %236, %235 : vector<2x128xf32>
    %238 = arith.divf %236, %237 : vector<2x128xf32>
    %239 = vector.extract_strided_slice %238 {offsets = [0, 0], sizes = [2, 32], strides = [1, 1]} : vector<2x128xf32> to vector<2x32xf32>
    %240 = vector.extract_strided_slice %238 {offsets = [0, 32], sizes = [2, 32], strides = [1, 1]} : vector<2x128xf32> to vector<2x32xf32>
    %241 = vector.extract_strided_slice %238 {offsets = [0, 64], sizes = [2, 32], strides = [1, 1]} : vector<2x128xf32> to vector<2x32xf32>
    %cst_69 = arith.constant 2.000000e+00 : f32
    %242 = vector.broadcast %cst_69 : f32 to vector<2x32xf32>
    %243 = arith.mulf %242, %241 : vector<2x32xf32>
    %cst_70 = arith.constant 1.000000e+00 : f32
    %244 = vector.broadcast %cst_70 : f32 to vector<2x32xf32>
    %245 = arith.subf %243, %244 : vector<2x32xf32>
    %246 = vector.extract_strided_slice %238 {offsets = [0, 96], sizes = [2, 32], strides = [1, 1]} : vector<2x128xf32> to vector<2x32xf32>
    %247 = arith.mulf %240, %185 : vector<2x32xf32>
    %248 = arith.mulf %239, %245 : vector<2x32xf32>
    %249 = arith.addf %247, %248 : vector<2x32xf32>
    %cst_71 = arith.constant 2.000000e+00 : f32
    %250 = vector.broadcast %cst_71 : f32 to vector<2x32xf32>
    %251 = arith.mulf %250, %249 : vector<2x32xf32>
    %252 = arith.negf %251 : vector<2x32xf32>
    %253 = math.exp %252 : vector<2x32xf32>
    %cst_72 = arith.constant 1.000000e+00 : f32
    %254 = vector.broadcast %cst_72 : f32 to vector<2x32xf32>
    %255 = arith.addf %254, %253 : vector<2x32xf32>
    %256 = arith.divf %254, %255 : vector<2x32xf32>
    %cst_73 = arith.constant 2.000000e+00 : f32
    %257 = vector.broadcast %cst_73 : f32 to vector<2x32xf32>
    %258 = arith.mulf %257, %256 : vector<2x32xf32>
    %cst_74 = arith.constant 1.000000e+00 : f32
    %259 = vector.broadcast %cst_74 : f32 to vector<2x32xf32>
    %260 = arith.subf %258, %259 : vector<2x32xf32>
    %261 = arith.mulf %246, %260 : vector<2x32xf32>
    %262 = tpu.concatenate %261, %231 in 1 : vector<2x32xf32>, vector<2x32xf32> -> vector<2x64xf32>
    %cst_75 = arith.constant dense<0.000000e+00> : vector<2x256xf32>
    %263 = tpu.matmul %262, %6, %cst_75 {dimension_numbers = #tpu.dot_dimension_numbers<[1], [0], [0], [1], [0, 0, 1, 1], [], []>} : vector<2x64xf32>, vector<64x256xf32>, vector<2x256xf32> -> vector<2x256xf32>
    %264 = vector.extract_strided_slice %263 {offsets = [0, 0], sizes = [2, 128], strides = [1, 1]} : vector<2x256xf32> to vector<2x128xf32>
    %265 = vector.extract_strided_slice %263 {offsets = [0, 128], sizes = [2, 128], strides = [1, 1]} : vector<2x256xf32> to vector<2x128xf32>
    %266 = vector.broadcast %2 : vector<1x128xf32> to vector<2x128xf32>
    %267 = arith.addf %265, %266 : vector<2x128xf32>
    %268 = arith.negf %267 : vector<2x128xf32>
    %269 = math.exp %268 : vector<2x128xf32>
    %cst_76 = arith.constant 1.000000e+00 : f32
    %270 = vector.broadcast %cst_76 : f32 to vector<2x128xf32>
    %271 = arith.addf %270, %269 : vector<2x128xf32>
    %272 = arith.divf %270, %271 : vector<2x128xf32>
    %273 = vector.extract_strided_slice %272 {offsets = [0, 0], sizes = [2, 32], strides = [1, 1]} : vector<2x128xf32> to vector<2x32xf32>
    %274 = vector.extract_strided_slice %272 {offsets = [0, 32], sizes = [2, 32], strides = [1, 1]} : vector<2x128xf32> to vector<2x32xf32>
    %275 = vector.extract_strided_slice %272 {offsets = [0, 64], sizes = [2, 32], strides = [1, 1]} : vector<2x128xf32> to vector<2x32xf32>
    %cst_77 = arith.constant 2.000000e+00 : f32
    %276 = vector.broadcast %cst_77 : f32 to vector<2x32xf32>
    %277 = arith.mulf %276, %275 : vector<2x32xf32>
    %cst_78 = arith.constant 1.000000e+00 : f32
    %278 = vector.broadcast %cst_78 : f32 to vector<2x32xf32>
    %279 = arith.subf %277, %278 : vector<2x32xf32>
    %280 = vector.extract_strided_slice %272 {offsets = [0, 96], sizes = [2, 32], strides = [1, 1]} : vector<2x128xf32> to vector<2x32xf32>
    %281 = arith.mulf %274, %219 : vector<2x32xf32>
    %282 = arith.mulf %273, %279 : vector<2x32xf32>
    %283 = arith.addf %281, %282 : vector<2x32xf32>
    %cst_79 = arith.constant 2.000000e+00 : f32
    %284 = vector.broadcast %cst_79 : f32 to vector<2x32xf32>
    %285 = arith.mulf %284, %283 : vector<2x32xf32>
    %286 = arith.negf %285 : vector<2x32xf32>
    %287 = math.exp %286 : vector<2x32xf32>
    %cst_80 = arith.constant 1.000000e+00 : f32
    %288 = vector.broadcast %cst_80 : f32 to vector<2x32xf32>
    %289 = arith.addf %288, %287 : vector<2x32xf32>
    %290 = arith.divf %288, %289 : vector<2x32xf32>
    %cst_81 = arith.constant 2.000000e+00 : f32
    %291 = vector.broadcast %cst_81 : f32 to vector<2x32xf32>
    %292 = arith.mulf %291, %290 : vector<2x32xf32>
    %cst_82 = arith.constant 1.000000e+00 : f32
    %293 = vector.broadcast %cst_82 : f32 to vector<2x32xf32>
    %294 = arith.subf %292, %293 : vector<2x32xf32>
    %295 = arith.mulf %280, %294 : vector<2x32xf32>
    %296 = vector.extract_strided_slice %37 {offsets = [8, 0], sizes = [2, 128], strides = [1, 1]} : vector<32x128xf32> to vector<2x128xf32>
    %297 = arith.addf %296, %264 : vector<2x128xf32>
    %298 = arith.negf %297 : vector<2x128xf32>
    %299 = math.exp %298 : vector<2x128xf32>
    %cst_83 = arith.constant 1.000000e+00 : f32
    %300 = vector.broadcast %cst_83 : f32 to vector<2x128xf32>
    %301 = arith.addf %300, %299 : vector<2x128xf32>
    %302 = arith.divf %300, %301 : vector<2x128xf32>
    %303 = vector.extract_strided_slice %302 {offsets = [0, 0], sizes = [2, 32], strides = [1, 1]} : vector<2x128xf32> to vector<2x32xf32>
    %304 = vector.extract_strided_slice %302 {offsets = [0, 32], sizes = [2, 32], strides = [1, 1]} : vector<2x128xf32> to vector<2x32xf32>
    %305 = vector.extract_strided_slice %302 {offsets = [0, 64], sizes = [2, 32], strides = [1, 1]} : vector<2x128xf32> to vector<2x32xf32>
    %cst_84 = arith.constant 2.000000e+00 : f32
    %306 = vector.broadcast %cst_84 : f32 to vector<2x32xf32>
    %307 = arith.mulf %306, %305 : vector<2x32xf32>
    %cst_85 = arith.constant 1.000000e+00 : f32
    %308 = vector.broadcast %cst_85 : f32 to vector<2x32xf32>
    %309 = arith.subf %307, %308 : vector<2x32xf32>
    %310 = vector.extract_strided_slice %302 {offsets = [0, 96], sizes = [2, 32], strides = [1, 1]} : vector<2x128xf32> to vector<2x32xf32>
    %311 = arith.mulf %304, %249 : vector<2x32xf32>
    %312 = arith.mulf %303, %309 : vector<2x32xf32>
    %313 = arith.addf %311, %312 : vector<2x32xf32>
    %cst_86 = arith.constant 2.000000e+00 : f32
    %314 = vector.broadcast %cst_86 : f32 to vector<2x32xf32>
    %315 = arith.mulf %314, %313 : vector<2x32xf32>
    %316 = arith.negf %315 : vector<2x32xf32>
    %317 = math.exp %316 : vector<2x32xf32>
    %cst_87 = arith.constant 1.000000e+00 : f32
    %318 = vector.broadcast %cst_87 : f32 to vector<2x32xf32>
    %319 = arith.addf %318, %317 : vector<2x32xf32>
    %320 = arith.divf %318, %319 : vector<2x32xf32>
    %cst_88 = arith.constant 2.000000e+00 : f32
    %321 = vector.broadcast %cst_88 : f32 to vector<2x32xf32>
    %322 = arith.mulf %321, %320 : vector<2x32xf32>
    %cst_89 = arith.constant 1.000000e+00 : f32
    %323 = vector.broadcast %cst_89 : f32 to vector<2x32xf32>
    %324 = arith.subf %322, %323 : vector<2x32xf32>
    %325 = arith.mulf %310, %324 : vector<2x32xf32>
    %326 = tpu.concatenate %325, %295 in 1 : vector<2x32xf32>, vector<2x32xf32> -> vector<2x64xf32>
    %cst_90 = arith.constant dense<0.000000e+00> : vector<2x256xf32>
    %327 = tpu.matmul %326, %6, %cst_90 {dimension_numbers = #tpu.dot_dimension_numbers<[1], [0], [0], [1], [0, 0, 1, 1], [], []>} : vector<2x64xf32>, vector<64x256xf32>, vector<2x256xf32> -> vector<2x256xf32>
    %328 = vector.extract_strided_slice %327 {offsets = [0, 0], sizes = [2, 128], strides = [1, 1]} : vector<2x256xf32> to vector<2x128xf32>
    %329 = vector.extract_strided_slice %327 {offsets = [0, 128], sizes = [2, 128], strides = [1, 1]} : vector<2x256xf32> to vector<2x128xf32>
    %330 = vector.broadcast %2 : vector<1x128xf32> to vector<2x128xf32>
    %331 = arith.addf %329, %330 : vector<2x128xf32>
    %332 = arith.negf %331 : vector<2x128xf32>
    %333 = math.exp %332 : vector<2x128xf32>
    %cst_91 = arith.constant 1.000000e+00 : f32
    %334 = vector.broadcast %cst_91 : f32 to vector<2x128xf32>
    %335 = arith.addf %334, %333 : vector<2x128xf32>
    %336 = arith.divf %334, %335 : vector<2x128xf32>
    %337 = vector.extract_strided_slice %336 {offsets = [0, 0], sizes = [2, 32], strides = [1, 1]} : vector<2x128xf32> to vector<2x32xf32>
    %338 = vector.extract_strided_slice %336 {offsets = [0, 32], sizes = [2, 32], strides = [1, 1]} : vector<2x128xf32> to vector<2x32xf32>
    %339 = vector.extract_strided_slice %336 {offsets = [0, 64], sizes = [2, 32], strides = [1, 1]} : vector<2x128xf32> to vector<2x32xf32>
    %cst_92 = arith.constant 2.000000e+00 : f32
    %340 = vector.broadcast %cst_92 : f32 to vector<2x32xf32>
    %341 = arith.mulf %340, %339 : vector<2x32xf32>
    %cst_93 = arith.constant 1.000000e+00 : f32
    %342 = vector.broadcast %cst_93 : f32 to vector<2x32xf32>
    %343 = arith.subf %341, %342 : vector<2x32xf32>
    %344 = vector.extract_strided_slice %336 {offsets = [0, 96], sizes = [2, 32], strides = [1, 1]} : vector<2x128xf32> to vector<2x32xf32>
    %345 = arith.mulf %338, %283 : vector<2x32xf32>
    %346 = arith.mulf %337, %343 : vector<2x32xf32>
    %347 = arith.addf %345, %346 : vector<2x32xf32>
    %cst_94 = arith.constant 2.000000e+00 : f32
    %348 = vector.broadcast %cst_94 : f32 to vector<2x32xf32>
    %349 = arith.mulf %348, %347 : vector<2x32xf32>
    %350 = arith.negf %349 : vector<2x32xf32>
    %351 = math.exp %350 : vector<2x32xf32>
    %cst_95 = arith.constant 1.000000e+00 : f32
    %352 = vector.broadcast %cst_95 : f32 to vector<2x32xf32>
    %353 = arith.addf %352, %351 : vector<2x32xf32>
    %354 = arith.divf %352, %353 : vector<2x32xf32>
    %cst_96 = arith.constant 2.000000e+00 : f32
    %355 = vector.broadcast %cst_96 : f32 to vector<2x32xf32>
    %356 = arith.mulf %355, %354 : vector<2x32xf32>
    %cst_97 = arith.constant 1.000000e+00 : f32
    %357 = vector.broadcast %cst_97 : f32 to vector<2x32xf32>
    %358 = arith.subf %356, %357 : vector<2x32xf32>
    %359 = arith.mulf %344, %358 : vector<2x32xf32>
    %360 = vector.extract_strided_slice %37 {offsets = [10, 0], sizes = [2, 128], strides = [1, 1]} : vector<32x128xf32> to vector<2x128xf32>
    %361 = arith.addf %360, %328 : vector<2x128xf32>
    %362 = arith.negf %361 : vector<2x128xf32>
    %363 = math.exp %362 : vector<2x128xf32>
    %cst_98 = arith.constant 1.000000e+00 : f32
    %364 = vector.broadcast %cst_98 : f32 to vector<2x128xf32>
    %365 = arith.addf %364, %363 : vector<2x128xf32>
    %366 = arith.divf %364, %365 : vector<2x128xf32>
    %367 = vector.extract_strided_slice %366 {offsets = [0, 0], sizes = [2, 32], strides = [1, 1]} : vector<2x128xf32> to vector<2x32xf32>
    %368 = vector.extract_strided_slice %366 {offsets = [0, 32], sizes = [2, 32], strides = [1, 1]} : vector<2x128xf32> to vector<2x32xf32>
    %369 = vector.extract_strided_slice %366 {offsets = [0, 64], sizes = [2, 32], strides = [1, 1]} : vector<2x128xf32> to vector<2x32xf32>
    %cst_99 = arith.constant 2.000000e+00 : f32
    %370 = vector.broadcast %cst_99 : f32 to vector<2x32xf32>
    %371 = arith.mulf %370, %369 : vector<2x32xf32>
    %cst_100 = arith.constant 1.000000e+00 : f32
    %372 = vector.broadcast %cst_100 : f32 to vector<2x32xf32>
    %373 = arith.subf %371, %372 : vector<2x32xf32>
    %374 = vector.extract_strided_slice %366 {offsets = [0, 96], sizes = [2, 32], strides = [1, 1]} : vector<2x128xf32> to vector<2x32xf32>
    %375 = arith.mulf %368, %313 : vector<2x32xf32>
    %376 = arith.mulf %367, %373 : vector<2x32xf32>
    %377 = arith.addf %375, %376 : vector<2x32xf32>
    %cst_101 = arith.constant 2.000000e+00 : f32
    %378 = vector.broadcast %cst_101 : f32 to vector<2x32xf32>
    %379 = arith.mulf %378, %377 : vector<2x32xf32>
    %380 = arith.negf %379 : vector<2x32xf32>
    %381 = math.exp %380 : vector<2x32xf32>
    %cst_102 = arith.constant 1.000000e+00 : f32
    %382 = vector.broadcast %cst_102 : f32 to vector<2x32xf32>
    %383 = arith.addf %382, %381 : vector<2x32xf32>
    %384 = arith.divf %382, %383 : vector<2x32xf32>
    %cst_103 = arith.constant 2.000000e+00 : f32
    %385 = vector.broadcast %cst_103 : f32 to vector<2x32xf32>
    %386 = arith.mulf %385, %384 : vector<2x32xf32>
    %cst_104 = arith.constant 1.000000e+00 : f32
    %387 = vector.broadcast %cst_104 : f32 to vector<2x32xf32>
    %388 = arith.subf %386, %387 : vector<2x32xf32>
    %389 = arith.mulf %374, %388 : vector<2x32xf32>
    %390 = tpu.concatenate %389, %359 in 1 : vector<2x32xf32>, vector<2x32xf32> -> vector<2x64xf32>
    %cst_105 = arith.constant dense<0.000000e+00> : vector<2x256xf32>
    %391 = tpu.matmul %390, %6, %cst_105 {dimension_numbers = #tpu.dot_dimension_numbers<[1], [0], [0], [1], [0, 0, 1, 1], [], []>} : vector<2x64xf32>, vector<64x256xf32>, vector<2x256xf32> -> vector<2x256xf32>
    %392 = vector.extract_strided_slice %391 {offsets = [0, 0], sizes = [2, 128], strides = [1, 1]} : vector<2x256xf32> to vector<2x128xf32>
    %393 = vector.extract_strided_slice %391 {offsets = [0, 128], sizes = [2, 128], strides = [1, 1]} : vector<2x256xf32> to vector<2x128xf32>
    %394 = vector.broadcast %2 : vector<1x128xf32> to vector<2x128xf32>
    %395 = arith.addf %393, %394 : vector<2x128xf32>
    %396 = arith.negf %395 : vector<2x128xf32>
    %397 = math.exp %396 : vector<2x128xf32>
    %cst_106 = arith.constant 1.000000e+00 : f32
    %398 = vector.broadcast %cst_106 : f32 to vector<2x128xf32>
    %399 = arith.addf %398, %397 : vector<2x128xf32>
    %400 = arith.divf %398, %399 : vector<2x128xf32>
    %401 = vector.extract_strided_slice %400 {offsets = [0, 0], sizes = [2, 32], strides = [1, 1]} : vector<2x128xf32> to vector<2x32xf32>
    %402 = vector.extract_strided_slice %400 {offsets = [0, 32], sizes = [2, 32], strides = [1, 1]} : vector<2x128xf32> to vector<2x32xf32>
    %403 = vector.extract_strided_slice %400 {offsets = [0, 64], sizes = [2, 32], strides = [1, 1]} : vector<2x128xf32> to vector<2x32xf32>
    %cst_107 = arith.constant 2.000000e+00 : f32
    %404 = vector.broadcast %cst_107 : f32 to vector<2x32xf32>
    %405 = arith.mulf %404, %403 : vector<2x32xf32>
    %cst_108 = arith.constant 1.000000e+00 : f32
    %406 = vector.broadcast %cst_108 : f32 to vector<2x32xf32>
    %407 = arith.subf %405, %406 : vector<2x32xf32>
    %408 = vector.extract_strided_slice %400 {offsets = [0, 96], sizes = [2, 32], strides = [1, 1]} : vector<2x128xf32> to vector<2x32xf32>
    %409 = arith.mulf %402, %347 : vector<2x32xf32>
    %410 = arith.mulf %401, %407 : vector<2x32xf32>
    %411 = arith.addf %409, %410 : vector<2x32xf32>
    %cst_109 = arith.constant 2.000000e+00 : f32
    %412 = vector.broadcast %cst_109 : f32 to vector<2x32xf32>
    %413 = arith.mulf %412, %411 : vector<2x32xf32>
    %414 = arith.negf %413 : vector<2x32xf32>
    %415 = math.exp %414 : vector<2x32xf32>
    %cst_110 = arith.constant 1.000000e+00 : f32
    %416 = vector.broadcast %cst_110 : f32 to vector<2x32xf32>
    %417 = arith.addf %416, %415 : vector<2x32xf32>
    %418 = arith.divf %416, %417 : vector<2x32xf32>
    %cst_111 = arith.constant 2.000000e+00 : f32
    %419 = vector.broadcast %cst_111 : f32 to vector<2x32xf32>
    %420 = arith.mulf %419, %418 : vector<2x32xf32>
    %cst_112 = arith.constant 1.000000e+00 : f32
    %421 = vector.broadcast %cst_112 : f32 to vector<2x32xf32>
    %422 = arith.subf %420, %421 : vector<2x32xf32>
    %423 = arith.mulf %408, %422 : vector<2x32xf32>
    %424 = vector.extract_strided_slice %37 {offsets = [12, 0], sizes = [2, 128], strides = [1, 1]} : vector<32x128xf32> to vector<2x128xf32>
    %425 = arith.addf %424, %392 : vector<2x128xf32>
    %426 = arith.negf %425 : vector<2x128xf32>
    %427 = math.exp %426 : vector<2x128xf32>
    %cst_113 = arith.constant 1.000000e+00 : f32
    %428 = vector.broadcast %cst_113 : f32 to vector<2x128xf32>
    %429 = arith.addf %428, %427 : vector<2x128xf32>
    %430 = arith.divf %428, %429 : vector<2x128xf32>
    %431 = vector.extract_strided_slice %430 {offsets = [0, 0], sizes = [2, 32], strides = [1, 1]} : vector<2x128xf32> to vector<2x32xf32>
    %432 = vector.extract_strided_slice %430 {offsets = [0, 32], sizes = [2, 32], strides = [1, 1]} : vector<2x128xf32> to vector<2x32xf32>
    %433 = vector.extract_strided_slice %430 {offsets = [0, 64], sizes = [2, 32], strides = [1, 1]} : vector<2x128xf32> to vector<2x32xf32>
    %cst_114 = arith.constant 2.000000e+00 : f32
    %434 = vector.broadcast %cst_114 : f32 to vector<2x32xf32>
    %435 = arith.mulf %434, %433 : vector<2x32xf32>
    %cst_115 = arith.constant 1.000000e+00 : f32
    %436 = vector.broadcast %cst_115 : f32 to vector<2x32xf32>
    %437 = arith.subf %435, %436 : vector<2x32xf32>
    %438 = vector.extract_strided_slice %430 {offsets = [0, 96], sizes = [2, 32], strides = [1, 1]} : vector<2x128xf32> to vector<2x32xf32>
    %439 = arith.mulf %432, %377 : vector<2x32xf32>
    %440 = arith.mulf %431, %437 : vector<2x32xf32>
    %441 = arith.addf %439, %440 : vector<2x32xf32>
    %cst_116 = arith.constant 2.000000e+00 : f32
    %442 = vector.broadcast %cst_116 : f32 to vector<2x32xf32>
    %443 = arith.mulf %442, %441 : vector<2x32xf32>
    %444 = arith.negf %443 : vector<2x32xf32>
    %445 = math.exp %444 : vector<2x32xf32>
    %cst_117 = arith.constant 1.000000e+00 : f32
    %446 = vector.broadcast %cst_117 : f32 to vector<2x32xf32>
    %447 = arith.addf %446, %445 : vector<2x32xf32>
    %448 = arith.divf %446, %447 : vector<2x32xf32>
    %cst_118 = arith.constant 2.000000e+00 : f32
    %449 = vector.broadcast %cst_118 : f32 to vector<2x32xf32>
    %450 = arith.mulf %449, %448 : vector<2x32xf32>
    %cst_119 = arith.constant 1.000000e+00 : f32
    %451 = vector.broadcast %cst_119 : f32 to vector<2x32xf32>
    %452 = arith.subf %450, %451 : vector<2x32xf32>
    %453 = arith.mulf %438, %452 : vector<2x32xf32>
    %454 = tpu.concatenate %453, %423 in 1 : vector<2x32xf32>, vector<2x32xf32> -> vector<2x64xf32>
    %cst_120 = arith.constant dense<0.000000e+00> : vector<2x256xf32>
    %455 = tpu.matmul %454, %6, %cst_120 {dimension_numbers = #tpu.dot_dimension_numbers<[1], [0], [0], [1], [0, 0, 1, 1], [], []>} : vector<2x64xf32>, vector<64x256xf32>, vector<2x256xf32> -> vector<2x256xf32>
    %456 = vector.extract_strided_slice %455 {offsets = [0, 0], sizes = [2, 128], strides = [1, 1]} : vector<2x256xf32> to vector<2x128xf32>
    %457 = vector.extract_strided_slice %455 {offsets = [0, 128], sizes = [2, 128], strides = [1, 1]} : vector<2x256xf32> to vector<2x128xf32>
    %458 = vector.broadcast %2 : vector<1x128xf32> to vector<2x128xf32>
    %459 = arith.addf %457, %458 : vector<2x128xf32>
    %460 = arith.negf %459 : vector<2x128xf32>
    %461 = math.exp %460 : vector<2x128xf32>
    %cst_121 = arith.constant 1.000000e+00 : f32
    %462 = vector.broadcast %cst_121 : f32 to vector<2x128xf32>
    %463 = arith.addf %462, %461 : vector<2x128xf32>
    %464 = arith.divf %462, %463 : vector<2x128xf32>
    %465 = vector.extract_strided_slice %464 {offsets = [0, 0], sizes = [2, 32], strides = [1, 1]} : vector<2x128xf32> to vector<2x32xf32>
    %466 = vector.extract_strided_slice %464 {offsets = [0, 32], sizes = [2, 32], strides = [1, 1]} : vector<2x128xf32> to vector<2x32xf32>
    %467 = vector.extract_strided_slice %464 {offsets = [0, 64], sizes = [2, 32], strides = [1, 1]} : vector<2x128xf32> to vector<2x32xf32>
    %cst_122 = arith.constant 2.000000e+00 : f32
    %468 = vector.broadcast %cst_122 : f32 to vector<2x32xf32>
    %469 = arith.mulf %468, %467 : vector<2x32xf32>
    %cst_123 = arith.constant 1.000000e+00 : f32
    %470 = vector.broadcast %cst_123 : f32 to vector<2x32xf32>
    %471 = arith.subf %469, %470 : vector<2x32xf32>
    %472 = vector.extract_strided_slice %464 {offsets = [0, 96], sizes = [2, 32], strides = [1, 1]} : vector<2x128xf32> to vector<2x32xf32>
    %473 = arith.mulf %466, %411 : vector<2x32xf32>
    %474 = arith.mulf %465, %471 : vector<2x32xf32>
    %475 = arith.addf %473, %474 : vector<2x32xf32>
    %cst_124 = arith.constant 2.000000e+00 : f32
    %476 = vector.broadcast %cst_124 : f32 to vector<2x32xf32>
    %477 = arith.mulf %476, %475 : vector<2x32xf32>
    %478 = arith.negf %477 : vector<2x32xf32>
    %479 = math.exp %478 : vector<2x32xf32>
    %cst_125 = arith.constant 1.000000e+00 : f32
    %480 = vector.broadcast %cst_125 : f32 to vector<2x32xf32>
    %481 = arith.addf %480, %479 : vector<2x32xf32>
    %482 = arith.divf %480, %481 : vector<2x32xf32>
    %cst_126 = arith.constant 2.000000e+00 : f32
    %483 = vector.broadcast %cst_126 : f32 to vector<2x32xf32>
    %484 = arith.mulf %483, %482 : vector<2x32xf32>
    %cst_127 = arith.constant 1.000000e+00 : f32
    %485 = vector.broadcast %cst_127 : f32 to vector<2x32xf32>
    %486 = arith.subf %484, %485 : vector<2x32xf32>
    %487 = arith.mulf %472, %486 : vector<2x32xf32>
    %488 = vector.extract_strided_slice %37 {offsets = [14, 0], sizes = [2, 128], strides = [1, 1]} : vector<32x128xf32> to vector<2x128xf32>
    %489 = arith.addf %488, %456 : vector<2x128xf32>
    %490 = arith.negf %489 : vector<2x128xf32>
    %491 = math.exp %490 : vector<2x128xf32>
    %cst_128 = arith.constant 1.000000e+00 : f32
    %492 = vector.broadcast %cst_128 : f32 to vector<2x128xf32>
    %493 = arith.addf %492, %491 : vector<2x128xf32>
    %494 = arith.divf %492, %493 : vector<2x128xf32>
    %495 = vector.extract_strided_slice %494 {offsets = [0, 0], sizes = [2, 32], strides = [1, 1]} : vector<2x128xf32> to vector<2x32xf32>
    %496 = vector.extract_strided_slice %494 {offsets = [0, 32], sizes = [2, 32], strides = [1, 1]} : vector<2x128xf32> to vector<2x32xf32>
    %497 = vector.extract_strided_slice %494 {offsets = [0, 64], sizes = [2, 32], strides = [1, 1]} : vector<2x128xf32> to vector<2x32xf32>
    %cst_129 = arith.constant 2.000000e+00 : f32
    %498 = vector.broadcast %cst_129 : f32 to vector<2x32xf32>
    %499 = arith.mulf %498, %497 : vector<2x32xf32>
    %cst_130 = arith.constant 1.000000e+00 : f32
    %500 = vector.broadcast %cst_130 : f32 to vector<2x32xf32>
    %501 = arith.subf %499, %500 : vector<2x32xf32>
    %502 = vector.extract_strided_slice %494 {offsets = [0, 96], sizes = [2, 32], strides = [1, 1]} : vector<2x128xf32> to vector<2x32xf32>
    %503 = arith.mulf %496, %441 : vector<2x32xf32>
    %504 = arith.mulf %495, %501 : vector<2x32xf32>
    %505 = arith.addf %503, %504 : vector<2x32xf32>
    %cst_131 = arith.constant 2.000000e+00 : f32
    %506 = vector.broadcast %cst_131 : f32 to vector<2x32xf32>
    %507 = arith.mulf %506, %505 : vector<2x32xf32>
    %508 = arith.negf %507 : vector<2x32xf32>
    %509 = math.exp %508 : vector<2x32xf32>
    %cst_132 = arith.constant 1.000000e+00 : f32
    %510 = vector.broadcast %cst_132 : f32 to vector<2x32xf32>
    %511 = arith.addf %510, %509 : vector<2x32xf32>
    %512 = arith.divf %510, %511 : vector<2x32xf32>
    %cst_133 = arith.constant 2.000000e+00 : f32
    %513 = vector.broadcast %cst_133 : f32 to vector<2x32xf32>
    %514 = arith.mulf %513, %512 : vector<2x32xf32>
    %cst_134 = arith.constant 1.000000e+00 : f32
    %515 = vector.broadcast %cst_134 : f32 to vector<2x32xf32>
    %516 = arith.subf %514, %515 : vector<2x32xf32>
    %517 = arith.mulf %502, %516 : vector<2x32xf32>
    %518 = tpu.concatenate %517, %487 in 1 : vector<2x32xf32>, vector<2x32xf32> -> vector<2x64xf32>
    %cst_135 = arith.constant dense<0.000000e+00> : vector<2x256xf32>
    %519 = tpu.matmul %518, %6, %cst_135 {dimension_numbers = #tpu.dot_dimension_numbers<[1], [0], [0], [1], [0, 0, 1, 1], [], []>} : vector<2x64xf32>, vector<64x256xf32>, vector<2x256xf32> -> vector<2x256xf32>
    %520 = vector.extract_strided_slice %519 {offsets = [0, 0], sizes = [2, 128], strides = [1, 1]} : vector<2x256xf32> to vector<2x128xf32>
    %521 = vector.extract_strided_slice %519 {offsets = [0, 128], sizes = [2, 128], strides = [1, 1]} : vector<2x256xf32> to vector<2x128xf32>
    %522 = vector.broadcast %2 : vector<1x128xf32> to vector<2x128xf32>
    %523 = arith.addf %521, %522 : vector<2x128xf32>
    %524 = arith.negf %523 : vector<2x128xf32>
    %525 = math.exp %524 : vector<2x128xf32>
    %cst_136 = arith.constant 1.000000e+00 : f32
    %526 = vector.broadcast %cst_136 : f32 to vector<2x128xf32>
    %527 = arith.addf %526, %525 : vector<2x128xf32>
    %528 = arith.divf %526, %527 : vector<2x128xf32>
    %529 = vector.extract_strided_slice %528 {offsets = [0, 0], sizes = [2, 32], strides = [1, 1]} : vector<2x128xf32> to vector<2x32xf32>
    %530 = vector.extract_strided_slice %528 {offsets = [0, 32], sizes = [2, 32], strides = [1, 1]} : vector<2x128xf32> to vector<2x32xf32>
    %531 = vector.extract_strided_slice %528 {offsets = [0, 64], sizes = [2, 32], strides = [1, 1]} : vector<2x128xf32> to vector<2x32xf32>
    %cst_137 = arith.constant 2.000000e+00 : f32
    %532 = vector.broadcast %cst_137 : f32 to vector<2x32xf32>
    %533 = arith.mulf %532, %531 : vector<2x32xf32>
    %cst_138 = arith.constant 1.000000e+00 : f32
    %534 = vector.broadcast %cst_138 : f32 to vector<2x32xf32>
    %535 = arith.subf %533, %534 : vector<2x32xf32>
    %536 = vector.extract_strided_slice %528 {offsets = [0, 96], sizes = [2, 32], strides = [1, 1]} : vector<2x128xf32> to vector<2x32xf32>
    %537 = arith.mulf %530, %475 : vector<2x32xf32>
    %538 = arith.mulf %529, %535 : vector<2x32xf32>
    %539 = arith.addf %537, %538 : vector<2x32xf32>
    %cst_139 = arith.constant 2.000000e+00 : f32
    %540 = vector.broadcast %cst_139 : f32 to vector<2x32xf32>
    %541 = arith.mulf %540, %539 : vector<2x32xf32>
    %542 = arith.negf %541 : vector<2x32xf32>
    %543 = math.exp %542 : vector<2x32xf32>
    %cst_140 = arith.constant 1.000000e+00 : f32
    %544 = vector.broadcast %cst_140 : f32 to vector<2x32xf32>
    %545 = arith.addf %544, %543 : vector<2x32xf32>
    %546 = arith.divf %544, %545 : vector<2x32xf32>
    %cst_141 = arith.constant 2.000000e+00 : f32
    %547 = vector.broadcast %cst_141 : f32 to vector<2x32xf32>
    %548 = arith.mulf %547, %546 : vector<2x32xf32>
    %cst_142 = arith.constant 1.000000e+00 : f32
    %549 = vector.broadcast %cst_142 : f32 to vector<2x32xf32>
    %550 = arith.subf %548, %549 : vector<2x32xf32>
    %551 = arith.mulf %536, %550 : vector<2x32xf32>
    %552 = vector.extract_strided_slice %37 {offsets = [16, 0], sizes = [2, 128], strides = [1, 1]} : vector<32x128xf32> to vector<2x128xf32>
    %553 = arith.addf %552, %520 : vector<2x128xf32>
    %554 = arith.negf %553 : vector<2x128xf32>
    %555 = math.exp %554 : vector<2x128xf32>
    %cst_143 = arith.constant 1.000000e+00 : f32
    %556 = vector.broadcast %cst_143 : f32 to vector<2x128xf32>
    %557 = arith.addf %556, %555 : vector<2x128xf32>
    %558 = arith.divf %556, %557 : vector<2x128xf32>
    %559 = vector.extract_strided_slice %558 {offsets = [0, 0], sizes = [2, 32], strides = [1, 1]} : vector<2x128xf32> to vector<2x32xf32>
    %560 = vector.extract_strided_slice %558 {offsets = [0, 32], sizes = [2, 32], strides = [1, 1]} : vector<2x128xf32> to vector<2x32xf32>
    %561 = vector.extract_strided_slice %558 {offsets = [0, 64], sizes = [2, 32], strides = [1, 1]} : vector<2x128xf32> to vector<2x32xf32>
    %cst_144 = arith.constant 2.000000e+00 : f32
    %562 = vector.broadcast %cst_144 : f32 to vector<2x32xf32>
    %563 = arith.mulf %562, %561 : vector<2x32xf32>
    %cst_145 = arith.constant 1.000000e+00 : f32
    %564 = vector.broadcast %cst_145 : f32 to vector<2x32xf32>
    %565 = arith.subf %563, %564 : vector<2x32xf32>
    %566 = vector.extract_strided_slice %558 {offsets = [0, 96], sizes = [2, 32], strides = [1, 1]} : vector<2x128xf32> to vector<2x32xf32>
    %567 = arith.mulf %560, %505 : vector<2x32xf32>
    %568 = arith.mulf %559, %565 : vector<2x32xf32>
    %569 = arith.addf %567, %568 : vector<2x32xf32>
    %cst_146 = arith.constant 2.000000e+00 : f32
    %570 = vector.broadcast %cst_146 : f32 to vector<2x32xf32>
    %571 = arith.mulf %570, %569 : vector<2x32xf32>
    %572 = arith.negf %571 : vector<2x32xf32>
    %573 = math.exp %572 : vector<2x32xf32>
    %cst_147 = arith.constant 1.000000e+00 : f32
    %574 = vector.broadcast %cst_147 : f32 to vector<2x32xf32>
    %575 = arith.addf %574, %573 : vector<2x32xf32>
    %576 = arith.divf %574, %575 : vector<2x32xf32>
    %cst_148 = arith.constant 2.000000e+00 : f32
    %577 = vector.broadcast %cst_148 : f32 to vector<2x32xf32>
    %578 = arith.mulf %577, %576 : vector<2x32xf32>
    %cst_149 = arith.constant 1.000000e+00 : f32
    %579 = vector.broadcast %cst_149 : f32 to vector<2x32xf32>
    %580 = arith.subf %578, %579 : vector<2x32xf32>
    %581 = arith.mulf %566, %580 : vector<2x32xf32>
    %582 = tpu.concatenate %581, %551 in 1 : vector<2x32xf32>, vector<2x32xf32> -> vector<2x64xf32>
    %cst_150 = arith.constant dense<0.000000e+00> : vector<2x256xf32>
    %583 = tpu.matmul %582, %6, %cst_150 {dimension_numbers = #tpu.dot_dimension_numbers<[1], [0], [0], [1], [0, 0, 1, 1], [], []>} : vector<2x64xf32>, vector<64x256xf32>, vector<2x256xf32> -> vector<2x256xf32>
    %584 = vector.extract_strided_slice %583 {offsets = [0, 0], sizes = [2, 128], strides = [1, 1]} : vector<2x256xf32> to vector<2x128xf32>
    %585 = vector.extract_strided_slice %583 {offsets = [0, 128], sizes = [2, 128], strides = [1, 1]} : vector<2x256xf32> to vector<2x128xf32>
    %586 = vector.broadcast %2 : vector<1x128xf32> to vector<2x128xf32>
    %587 = arith.addf %585, %586 : vector<2x128xf32>
    %588 = arith.negf %587 : vector<2x128xf32>
    %589 = math.exp %588 : vector<2x128xf32>
    %cst_151 = arith.constant 1.000000e+00 : f32
    %590 = vector.broadcast %cst_151 : f32 to vector<2x128xf32>
    %591 = arith.addf %590, %589 : vector<2x128xf32>
    %592 = arith.divf %590, %591 : vector<2x128xf32>
    %593 = vector.extract_strided_slice %592 {offsets = [0, 0], sizes = [2, 32], strides = [1, 1]} : vector<2x128xf32> to vector<2x32xf32>
    %594 = vector.extract_strided_slice %592 {offsets = [0, 32], sizes = [2, 32], strides = [1, 1]} : vector<2x128xf32> to vector<2x32xf32>
    %595 = vector.extract_strided_slice %592 {offsets = [0, 64], sizes = [2, 32], strides = [1, 1]} : vector<2x128xf32> to vector<2x32xf32>
    %cst_152 = arith.constant 2.000000e+00 : f32
    %596 = vector.broadcast %cst_152 : f32 to vector<2x32xf32>
    %597 = arith.mulf %596, %595 : vector<2x32xf32>
    %cst_153 = arith.constant 1.000000e+00 : f32
    %598 = vector.broadcast %cst_153 : f32 to vector<2x32xf32>
    %599 = arith.subf %597, %598 : vector<2x32xf32>
    %600 = vector.extract_strided_slice %592 {offsets = [0, 96], sizes = [2, 32], strides = [1, 1]} : vector<2x128xf32> to vector<2x32xf32>
    %601 = arith.mulf %594, %539 : vector<2x32xf32>
    %602 = arith.mulf %593, %599 : vector<2x32xf32>
    %603 = arith.addf %601, %602 : vector<2x32xf32>
    %cst_154 = arith.constant 2.000000e+00 : f32
    %604 = vector.broadcast %cst_154 : f32 to vector<2x32xf32>
    %605 = arith.mulf %604, %603 : vector<2x32xf32>
    %606 = arith.negf %605 : vector<2x32xf32>
    %607 = math.exp %606 : vector<2x32xf32>
    %cst_155 = arith.constant 1.000000e+00 : f32
    %608 = vector.broadcast %cst_155 : f32 to vector<2x32xf32>
    %609 = arith.addf %608, %607 : vector<2x32xf32>
    %610 = arith.divf %608, %609 : vector<2x32xf32>
    %cst_156 = arith.constant 2.000000e+00 : f32
    %611 = vector.broadcast %cst_156 : f32 to vector<2x32xf32>
    %612 = arith.mulf %611, %610 : vector<2x32xf32>
    %cst_157 = arith.constant 1.000000e+00 : f32
    %613 = vector.broadcast %cst_157 : f32 to vector<2x32xf32>
    %614 = arith.subf %612, %613 : vector<2x32xf32>
    %615 = arith.mulf %600, %614 : vector<2x32xf32>
    %616 = vector.extract_strided_slice %37 {offsets = [18, 0], sizes = [2, 128], strides = [1, 1]} : vector<32x128xf32> to vector<2x128xf32>
    %617 = arith.addf %616, %584 : vector<2x128xf32>
    %618 = arith.negf %617 : vector<2x128xf32>
    %619 = math.exp %618 : vector<2x128xf32>
    %cst_158 = arith.constant 1.000000e+00 : f32
    %620 = vector.broadcast %cst_158 : f32 to vector<2x128xf32>
    %621 = arith.addf %620, %619 : vector<2x128xf32>
    %622 = arith.divf %620, %621 : vector<2x128xf32>
    %623 = vector.extract_strided_slice %622 {offsets = [0, 0], sizes = [2, 32], strides = [1, 1]} : vector<2x128xf32> to vector<2x32xf32>
    %624 = vector.extract_strided_slice %622 {offsets = [0, 32], sizes = [2, 32], strides = [1, 1]} : vector<2x128xf32> to vector<2x32xf32>
    %625 = vector.extract_strided_slice %622 {offsets = [0, 64], sizes = [2, 32], strides = [1, 1]} : vector<2x128xf32> to vector<2x32xf32>
    %cst_159 = arith.constant 2.000000e+00 : f32
    %626 = vector.broadcast %cst_159 : f32 to vector<2x32xf32>
    %627 = arith.mulf %626, %625 : vector<2x32xf32>
    %cst_160 = arith.constant 1.000000e+00 : f32
    %628 = vector.broadcast %cst_160 : f32 to vector<2x32xf32>
    %629 = arith.subf %627, %628 : vector<2x32xf32>
    %630 = vector.extract_strided_slice %622 {offsets = [0, 96], sizes = [2, 32], strides = [1, 1]} : vector<2x128xf32> to vector<2x32xf32>
    %631 = arith.mulf %624, %569 : vector<2x32xf32>
    %632 = arith.mulf %623, %629 : vector<2x32xf32>
    %633 = arith.addf %631, %632 : vector<2x32xf32>
    %cst_161 = arith.constant 2.000000e+00 : f32
    %634 = vector.broadcast %cst_161 : f32 to vector<2x32xf32>
    %635 = arith.mulf %634, %633 : vector<2x32xf32>
    %636 = arith.negf %635 : vector<2x32xf32>
    %637 = math.exp %636 : vector<2x32xf32>
    %cst_162 = arith.constant 1.000000e+00 : f32
    %638 = vector.broadcast %cst_162 : f32 to vector<2x32xf32>
    %639 = arith.addf %638, %637 : vector<2x32xf32>
    %640 = arith.divf %638, %639 : vector<2x32xf32>
    %cst_163 = arith.constant 2.000000e+00 : f32
    %641 = vector.broadcast %cst_163 : f32 to vector<2x32xf32>
    %642 = arith.mulf %641, %640 : vector<2x32xf32>
    %cst_164 = arith.constant 1.000000e+00 : f32
    %643 = vector.broadcast %cst_164 : f32 to vector<2x32xf32>
    %644 = arith.subf %642, %643 : vector<2x32xf32>
    %645 = arith.mulf %630, %644 : vector<2x32xf32>
    %646 = tpu.concatenate %645, %615 in 1 : vector<2x32xf32>, vector<2x32xf32> -> vector<2x64xf32>
    %cst_165 = arith.constant dense<0.000000e+00> : vector<2x256xf32>
    %647 = tpu.matmul %646, %6, %cst_165 {dimension_numbers = #tpu.dot_dimension_numbers<[1], [0], [0], [1], [0, 0, 1, 1], [], []>} : vector<2x64xf32>, vector<64x256xf32>, vector<2x256xf32> -> vector<2x256xf32>
    %648 = vector.extract_strided_slice %647 {offsets = [0, 0], sizes = [2, 128], strides = [1, 1]} : vector<2x256xf32> to vector<2x128xf32>
    %649 = vector.extract_strided_slice %647 {offsets = [0, 128], sizes = [2, 128], strides = [1, 1]} : vector<2x256xf32> to vector<2x128xf32>
    %650 = vector.broadcast %2 : vector<1x128xf32> to vector<2x128xf32>
    %651 = arith.addf %649, %650 : vector<2x128xf32>
    %652 = arith.negf %651 : vector<2x128xf32>
    %653 = math.exp %652 : vector<2x128xf32>
    %cst_166 = arith.constant 1.000000e+00 : f32
    %654 = vector.broadcast %cst_166 : f32 to vector<2x128xf32>
    %655 = arith.addf %654, %653 : vector<2x128xf32>
    %656 = arith.divf %654, %655 : vector<2x128xf32>
    %657 = vector.extract_strided_slice %656 {offsets = [0, 0], sizes = [2, 32], strides = [1, 1]} : vector<2x128xf32> to vector<2x32xf32>
    %658 = vector.extract_strided_slice %656 {offsets = [0, 32], sizes = [2, 32], strides = [1, 1]} : vector<2x128xf32> to vector<2x32xf32>
    %659 = vector.extract_strided_slice %656 {offsets = [0, 64], sizes = [2, 32], strides = [1, 1]} : vector<2x128xf32> to vector<2x32xf32>
    %cst_167 = arith.constant 2.000000e+00 : f32
    %660 = vector.broadcast %cst_167 : f32 to vector<2x32xf32>
    %661 = arith.mulf %660, %659 : vector<2x32xf32>
    %cst_168 = arith.constant 1.000000e+00 : f32
    %662 = vector.broadcast %cst_168 : f32 to vector<2x32xf32>
    %663 = arith.subf %661, %662 : vector<2x32xf32>
    %664 = vector.extract_strided_slice %656 {offsets = [0, 96], sizes = [2, 32], strides = [1, 1]} : vector<2x128xf32> to vector<2x32xf32>
    %665 = arith.mulf %658, %603 : vector<2x32xf32>
    %666 = arith.mulf %657, %663 : vector<2x32xf32>
    %667 = arith.addf %665, %666 : vector<2x32xf32>
    %cst_169 = arith.constant 2.000000e+00 : f32
    %668 = vector.broadcast %cst_169 : f32 to vector<2x32xf32>
    %669 = arith.mulf %668, %667 : vector<2x32xf32>
    %670 = arith.negf %669 : vector<2x32xf32>
    %671 = math.exp %670 : vector<2x32xf32>
    %cst_170 = arith.constant 1.000000e+00 : f32
    %672 = vector.broadcast %cst_170 : f32 to vector<2x32xf32>
    %673 = arith.addf %672, %671 : vector<2x32xf32>
    %674 = arith.divf %672, %673 : vector<2x32xf32>
    %cst_171 = arith.constant 2.000000e+00 : f32
    %675 = vector.broadcast %cst_171 : f32 to vector<2x32xf32>
    %676 = arith.mulf %675, %674 : vector<2x32xf32>
    %cst_172 = arith.constant 1.000000e+00 : f32
    %677 = vector.broadcast %cst_172 : f32 to vector<2x32xf32>
    %678 = arith.subf %676, %677 : vector<2x32xf32>
    %679 = arith.mulf %664, %678 : vector<2x32xf32>
    %680 = vector.extract_strided_slice %37 {offsets = [20, 0], sizes = [2, 128], strides = [1, 1]} : vector<32x128xf32> to vector<2x128xf32>
    %681 = arith.addf %680, %648 : vector<2x128xf32>
    %682 = arith.negf %681 : vector<2x128xf32>
    %683 = math.exp %682 : vector<2x128xf32>
    %cst_173 = arith.constant 1.000000e+00 : f32
    %684 = vector.broadcast %cst_173 : f32 to vector<2x128xf32>
    %685 = arith.addf %684, %683 : vector<2x128xf32>
    %686 = arith.divf %684, %685 : vector<2x128xf32>
    %687 = vector.extract_strided_slice %686 {offsets = [0, 0], sizes = [2, 32], strides = [1, 1]} : vector<2x128xf32> to vector<2x32xf32>
    %688 = vector.extract_strided_slice %686 {offsets = [0, 32], sizes = [2, 32], strides = [1, 1]} : vector<2x128xf32> to vector<2x32xf32>
    %689 = vector.extract_strided_slice %686 {offsets = [0, 64], sizes = [2, 32], strides = [1, 1]} : vector<2x128xf32> to vector<2x32xf32>
    %cst_174 = arith.constant 2.000000e+00 : f32
    %690 = vector.broadcast %cst_174 : f32 to vector<2x32xf32>
    %691 = arith.mulf %690, %689 : vector<2x32xf32>
    %cst_175 = arith.constant 1.000000e+00 : f32
    %692 = vector.broadcast %cst_175 : f32 to vector<2x32xf32>
    %693 = arith.subf %691, %692 : vector<2x32xf32>
    %694 = vector.extract_strided_slice %686 {offsets = [0, 96], sizes = [2, 32], strides = [1, 1]} : vector<2x128xf32> to vector<2x32xf32>
    %695 = arith.mulf %688, %633 : vector<2x32xf32>
    %696 = arith.mulf %687, %693 : vector<2x32xf32>
    %697 = arith.addf %695, %696 : vector<2x32xf32>
    %cst_176 = arith.constant 2.000000e+00 : f32
    %698 = vector.broadcast %cst_176 : f32 to vector<2x32xf32>
    %699 = arith.mulf %698, %697 : vector<2x32xf32>
    %700 = arith.negf %699 : vector<2x32xf32>
    %701 = math.exp %700 : vector<2x32xf32>
    %cst_177 = arith.constant 1.000000e+00 : f32
    %702 = vector.broadcast %cst_177 : f32 to vector<2x32xf32>
    %703 = arith.addf %702, %701 : vector<2x32xf32>
    %704 = arith.divf %702, %703 : vector<2x32xf32>
    %cst_178 = arith.constant 2.000000e+00 : f32
    %705 = vector.broadcast %cst_178 : f32 to vector<2x32xf32>
    %706 = arith.mulf %705, %704 : vector<2x32xf32>
    %cst_179 = arith.constant 1.000000e+00 : f32
    %707 = vector.broadcast %cst_179 : f32 to vector<2x32xf32>
    %708 = arith.subf %706, %707 : vector<2x32xf32>
    %709 = arith.mulf %694, %708 : vector<2x32xf32>
    %710 = tpu.concatenate %709, %679 in 1 : vector<2x32xf32>, vector<2x32xf32> -> vector<2x64xf32>
    %cst_180 = arith.constant dense<0.000000e+00> : vector<2x256xf32>
    %711 = tpu.matmul %710, %6, %cst_180 {dimension_numbers = #tpu.dot_dimension_numbers<[1], [0], [0], [1], [0, 0, 1, 1], [], []>} : vector<2x64xf32>, vector<64x256xf32>, vector<2x256xf32> -> vector<2x256xf32>
    %712 = vector.extract_strided_slice %711 {offsets = [0, 0], sizes = [2, 128], strides = [1, 1]} : vector<2x256xf32> to vector<2x128xf32>
    %713 = vector.extract_strided_slice %711 {offsets = [0, 128], sizes = [2, 128], strides = [1, 1]} : vector<2x256xf32> to vector<2x128xf32>
    %714 = vector.broadcast %2 : vector<1x128xf32> to vector<2x128xf32>
    %715 = arith.addf %713, %714 : vector<2x128xf32>
    %716 = arith.negf %715 : vector<2x128xf32>
    %717 = math.exp %716 : vector<2x128xf32>
    %cst_181 = arith.constant 1.000000e+00 : f32
    %718 = vector.broadcast %cst_181 : f32 to vector<2x128xf32>
    %719 = arith.addf %718, %717 : vector<2x128xf32>
    %720 = arith.divf %718, %719 : vector<2x128xf32>
    %721 = vector.extract_strided_slice %720 {offsets = [0, 0], sizes = [2, 32], strides = [1, 1]} : vector<2x128xf32> to vector<2x32xf32>
    %722 = vector.extract_strided_slice %720 {offsets = [0, 32], sizes = [2, 32], strides = [1, 1]} : vector<2x128xf32> to vector<2x32xf32>
    %723 = vector.extract_strided_slice %720 {offsets = [0, 64], sizes = [2, 32], strides = [1, 1]} : vector<2x128xf32> to vector<2x32xf32>
    %cst_182 = arith.constant 2.000000e+00 : f32
    %724 = vector.broadcast %cst_182 : f32 to vector<2x32xf32>
    %725 = arith.mulf %724, %723 : vector<2x32xf32>
    %cst_183 = arith.constant 1.000000e+00 : f32
    %726 = vector.broadcast %cst_183 : f32 to vector<2x32xf32>
    %727 = arith.subf %725, %726 : vector<2x32xf32>
    %728 = vector.extract_strided_slice %720 {offsets = [0, 96], sizes = [2, 32], strides = [1, 1]} : vector<2x128xf32> to vector<2x32xf32>
    %729 = arith.mulf %722, %667 : vector<2x32xf32>
    %730 = arith.mulf %721, %727 : vector<2x32xf32>
    %731 = arith.addf %729, %730 : vector<2x32xf32>
    %cst_184 = arith.constant 2.000000e+00 : f32
    %732 = vector.broadcast %cst_184 : f32 to vector<2x32xf32>
    %733 = arith.mulf %732, %731 : vector<2x32xf32>
    %734 = arith.negf %733 : vector<2x32xf32>
    %735 = math.exp %734 : vector<2x32xf32>
    %cst_185 = arith.constant 1.000000e+00 : f32
    %736 = vector.broadcast %cst_185 : f32 to vector<2x32xf32>
    %737 = arith.addf %736, %735 : vector<2x32xf32>
    %738 = arith.divf %736, %737 : vector<2x32xf32>
    %cst_186 = arith.constant 2.000000e+00 : f32
    %739 = vector.broadcast %cst_186 : f32 to vector<2x32xf32>
    %740 = arith.mulf %739, %738 : vector<2x32xf32>
    %cst_187 = arith.constant 1.000000e+00 : f32
    %741 = vector.broadcast %cst_187 : f32 to vector<2x32xf32>
    %742 = arith.subf %740, %741 : vector<2x32xf32>
    %743 = arith.mulf %728, %742 : vector<2x32xf32>
    %744 = vector.extract_strided_slice %37 {offsets = [22, 0], sizes = [2, 128], strides = [1, 1]} : vector<32x128xf32> to vector<2x128xf32>
    %745 = arith.addf %744, %712 : vector<2x128xf32>
    %746 = arith.negf %745 : vector<2x128xf32>
    %747 = math.exp %746 : vector<2x128xf32>
    %cst_188 = arith.constant 1.000000e+00 : f32
    %748 = vector.broadcast %cst_188 : f32 to vector<2x128xf32>
    %749 = arith.addf %748, %747 : vector<2x128xf32>
    %750 = arith.divf %748, %749 : vector<2x128xf32>
    %751 = vector.extract_strided_slice %750 {offsets = [0, 0], sizes = [2, 32], strides = [1, 1]} : vector<2x128xf32> to vector<2x32xf32>
    %752 = vector.extract_strided_slice %750 {offsets = [0, 32], sizes = [2, 32], strides = [1, 1]} : vector<2x128xf32> to vector<2x32xf32>
    %753 = vector.extract_strided_slice %750 {offsets = [0, 64], sizes = [2, 32], strides = [1, 1]} : vector<2x128xf32> to vector<2x32xf32>
    %cst_189 = arith.constant 2.000000e+00 : f32
    %754 = vector.broadcast %cst_189 : f32 to vector<2x32xf32>
    %755 = arith.mulf %754, %753 : vector<2x32xf32>
    %cst_190 = arith.constant 1.000000e+00 : f32
    %756 = vector.broadcast %cst_190 : f32 to vector<2x32xf32>
    %757 = arith.subf %755, %756 : vector<2x32xf32>
    %758 = vector.extract_strided_slice %750 {offsets = [0, 96], sizes = [2, 32], strides = [1, 1]} : vector<2x128xf32> to vector<2x32xf32>
    %759 = arith.mulf %752, %697 : vector<2x32xf32>
    %760 = arith.mulf %751, %757 : vector<2x32xf32>
    %761 = arith.addf %759, %760 : vector<2x32xf32>
    %cst_191 = arith.constant 2.000000e+00 : f32
    %762 = vector.broadcast %cst_191 : f32 to vector<2x32xf32>
    %763 = arith.mulf %762, %761 : vector<2x32xf32>
    %764 = arith.negf %763 : vector<2x32xf32>
    %765 = math.exp %764 : vector<2x32xf32>
    %cst_192 = arith.constant 1.000000e+00 : f32
    %766 = vector.broadcast %cst_192 : f32 to vector<2x32xf32>
    %767 = arith.addf %766, %765 : vector<2x32xf32>
    %768 = arith.divf %766, %767 : vector<2x32xf32>
    %cst_193 = arith.constant 2.000000e+00 : f32
    %769 = vector.broadcast %cst_193 : f32 to vector<2x32xf32>
    %770 = arith.mulf %769, %768 : vector<2x32xf32>
    %cst_194 = arith.constant 1.000000e+00 : f32
    %771 = vector.broadcast %cst_194 : f32 to vector<2x32xf32>
    %772 = arith.subf %770, %771 : vector<2x32xf32>
    %773 = arith.mulf %758, %772 : vector<2x32xf32>
    %774 = tpu.concatenate %773, %743 in 1 : vector<2x32xf32>, vector<2x32xf32> -> vector<2x64xf32>
    %cst_195 = arith.constant dense<0.000000e+00> : vector<2x256xf32>
    %775 = tpu.matmul %774, %6, %cst_195 {dimension_numbers = #tpu.dot_dimension_numbers<[1], [0], [0], [1], [0, 0, 1, 1], [], []>} : vector<2x64xf32>, vector<64x256xf32>, vector<2x256xf32> -> vector<2x256xf32>
    %776 = vector.extract_strided_slice %775 {offsets = [0, 0], sizes = [2, 128], strides = [1, 1]} : vector<2x256xf32> to vector<2x128xf32>
    %777 = vector.extract_strided_slice %775 {offsets = [0, 128], sizes = [2, 128], strides = [1, 1]} : vector<2x256xf32> to vector<2x128xf32>
    %778 = vector.broadcast %2 : vector<1x128xf32> to vector<2x128xf32>
    %779 = arith.addf %777, %778 : vector<2x128xf32>
    %780 = arith.negf %779 : vector<2x128xf32>
    %781 = math.exp %780 : vector<2x128xf32>
    %cst_196 = arith.constant 1.000000e+00 : f32
    %782 = vector.broadcast %cst_196 : f32 to vector<2x128xf32>
    %783 = arith.addf %782, %781 : vector<2x128xf32>
    %784 = arith.divf %782, %783 : vector<2x128xf32>
    %785 = vector.extract_strided_slice %784 {offsets = [0, 0], sizes = [2, 32], strides = [1, 1]} : vector<2x128xf32> to vector<2x32xf32>
    %786 = vector.extract_strided_slice %784 {offsets = [0, 32], sizes = [2, 32], strides = [1, 1]} : vector<2x128xf32> to vector<2x32xf32>
    %787 = vector.extract_strided_slice %784 {offsets = [0, 64], sizes = [2, 32], strides = [1, 1]} : vector<2x128xf32> to vector<2x32xf32>
    %cst_197 = arith.constant 2.000000e+00 : f32
    %788 = vector.broadcast %cst_197 : f32 to vector<2x32xf32>
    %789 = arith.mulf %788, %787 : vector<2x32xf32>
    %cst_198 = arith.constant 1.000000e+00 : f32
    %790 = vector.broadcast %cst_198 : f32 to vector<2x32xf32>
    %791 = arith.subf %789, %790 : vector<2x32xf32>
    %792 = vector.extract_strided_slice %784 {offsets = [0, 96], sizes = [2, 32], strides = [1, 1]} : vector<2x128xf32> to vector<2x32xf32>
    %793 = arith.mulf %786, %731 : vector<2x32xf32>
    %794 = arith.mulf %785, %791 : vector<2x32xf32>
    %795 = arith.addf %793, %794 : vector<2x32xf32>
    %cst_199 = arith.constant 2.000000e+00 : f32
    %796 = vector.broadcast %cst_199 : f32 to vector<2x32xf32>
    %797 = arith.mulf %796, %795 : vector<2x32xf32>
    %798 = arith.negf %797 : vector<2x32xf32>
    %799 = math.exp %798 : vector<2x32xf32>
    %cst_200 = arith.constant 1.000000e+00 : f32
    %800 = vector.broadcast %cst_200 : f32 to vector<2x32xf32>
    %801 = arith.addf %800, %799 : vector<2x32xf32>
    %802 = arith.divf %800, %801 : vector<2x32xf32>
    %cst_201 = arith.constant 2.000000e+00 : f32
    %803 = vector.broadcast %cst_201 : f32 to vector<2x32xf32>
    %804 = arith.mulf %803, %802 : vector<2x32xf32>
    %cst_202 = arith.constant 1.000000e+00 : f32
    %805 = vector.broadcast %cst_202 : f32 to vector<2x32xf32>
    %806 = arith.subf %804, %805 : vector<2x32xf32>
    %807 = arith.mulf %792, %806 : vector<2x32xf32>
    %808 = vector.extract_strided_slice %37 {offsets = [24, 0], sizes = [2, 128], strides = [1, 1]} : vector<32x128xf32> to vector<2x128xf32>
    %809 = arith.addf %808, %776 : vector<2x128xf32>
    %810 = arith.negf %809 : vector<2x128xf32>
    %811 = math.exp %810 : vector<2x128xf32>
    %cst_203 = arith.constant 1.000000e+00 : f32
    %812 = vector.broadcast %cst_203 : f32 to vector<2x128xf32>
    %813 = arith.addf %812, %811 : vector<2x128xf32>
    %814 = arith.divf %812, %813 : vector<2x128xf32>
    %815 = vector.extract_strided_slice %814 {offsets = [0, 0], sizes = [2, 32], strides = [1, 1]} : vector<2x128xf32> to vector<2x32xf32>
    %816 = vector.extract_strided_slice %814 {offsets = [0, 32], sizes = [2, 32], strides = [1, 1]} : vector<2x128xf32> to vector<2x32xf32>
    %817 = vector.extract_strided_slice %814 {offsets = [0, 64], sizes = [2, 32], strides = [1, 1]} : vector<2x128xf32> to vector<2x32xf32>
    %cst_204 = arith.constant 2.000000e+00 : f32
    %818 = vector.broadcast %cst_204 : f32 to vector<2x32xf32>
    %819 = arith.mulf %818, %817 : vector<2x32xf32>
    %cst_205 = arith.constant 1.000000e+00 : f32
    %820 = vector.broadcast %cst_205 : f32 to vector<2x32xf32>
    %821 = arith.subf %819, %820 : vector<2x32xf32>
    %822 = vector.extract_strided_slice %814 {offsets = [0, 96], sizes = [2, 32], strides = [1, 1]} : vector<2x128xf32> to vector<2x32xf32>
    %823 = arith.mulf %816, %761 : vector<2x32xf32>
    %824 = arith.mulf %815, %821 : vector<2x32xf32>
    %825 = arith.addf %823, %824 : vector<2x32xf32>
    %cst_206 = arith.constant 2.000000e+00 : f32
    %826 = vector.broadcast %cst_206 : f32 to vector<2x32xf32>
    %827 = arith.mulf %826, %825 : vector<2x32xf32>
    %828 = arith.negf %827 : vector<2x32xf32>
    %829 = math.exp %828 : vector<2x32xf32>
    %cst_207 = arith.constant 1.000000e+00 : f32
    %830 = vector.broadcast %cst_207 : f32 to vector<2x32xf32>
    %831 = arith.addf %830, %829 : vector<2x32xf32>
    %832 = arith.divf %830, %831 : vector<2x32xf32>
    %cst_208 = arith.constant 2.000000e+00 : f32
    %833 = vector.broadcast %cst_208 : f32 to vector<2x32xf32>
    %834 = arith.mulf %833, %832 : vector<2x32xf32>
    %cst_209 = arith.constant 1.000000e+00 : f32
    %835 = vector.broadcast %cst_209 : f32 to vector<2x32xf32>
    %836 = arith.subf %834, %835 : vector<2x32xf32>
    %837 = arith.mulf %822, %836 : vector<2x32xf32>
    %838 = tpu.concatenate %837, %807 in 1 : vector<2x32xf32>, vector<2x32xf32> -> vector<2x64xf32>
    %cst_210 = arith.constant dense<0.000000e+00> : vector<2x256xf32>
    %839 = tpu.matmul %838, %6, %cst_210 {dimension_numbers = #tpu.dot_dimension_numbers<[1], [0], [0], [1], [0, 0, 1, 1], [], []>} : vector<2x64xf32>, vector<64x256xf32>, vector<2x256xf32> -> vector<2x256xf32>
    %840 = vector.extract_strided_slice %839 {offsets = [0, 0], sizes = [2, 128], strides = [1, 1]} : vector<2x256xf32> to vector<2x128xf32>
    %841 = vector.extract_strided_slice %839 {offsets = [0, 128], sizes = [2, 128], strides = [1, 1]} : vector<2x256xf32> to vector<2x128xf32>
    %842 = vector.broadcast %2 : vector<1x128xf32> to vector<2x128xf32>
    %843 = arith.addf %841, %842 : vector<2x128xf32>
    %844 = arith.negf %843 : vector<2x128xf32>
    %845 = math.exp %844 : vector<2x128xf32>
    %cst_211 = arith.constant 1.000000e+00 : f32
    %846 = vector.broadcast %cst_211 : f32 to vector<2x128xf32>
    %847 = arith.addf %846, %845 : vector<2x128xf32>
    %848 = arith.divf %846, %847 : vector<2x128xf32>
    %849 = vector.extract_strided_slice %848 {offsets = [0, 0], sizes = [2, 32], strides = [1, 1]} : vector<2x128xf32> to vector<2x32xf32>
    %850 = vector.extract_strided_slice %848 {offsets = [0, 32], sizes = [2, 32], strides = [1, 1]} : vector<2x128xf32> to vector<2x32xf32>
    %851 = vector.extract_strided_slice %848 {offsets = [0, 64], sizes = [2, 32], strides = [1, 1]} : vector<2x128xf32> to vector<2x32xf32>
    %cst_212 = arith.constant 2.000000e+00 : f32
    %852 = vector.broadcast %cst_212 : f32 to vector<2x32xf32>
    %853 = arith.mulf %852, %851 : vector<2x32xf32>
    %cst_213 = arith.constant 1.000000e+00 : f32
    %854 = vector.broadcast %cst_213 : f32 to vector<2x32xf32>
    %855 = arith.subf %853, %854 : vector<2x32xf32>
    %856 = vector.extract_strided_slice %848 {offsets = [0, 96], sizes = [2, 32], strides = [1, 1]} : vector<2x128xf32> to vector<2x32xf32>
    %857 = arith.mulf %850, %795 : vector<2x32xf32>
    %858 = arith.mulf %849, %855 : vector<2x32xf32>
    %859 = arith.addf %857, %858 : vector<2x32xf32>
    %cst_214 = arith.constant 2.000000e+00 : f32
    %860 = vector.broadcast %cst_214 : f32 to vector<2x32xf32>
    %861 = arith.mulf %860, %859 : vector<2x32xf32>
    %862 = arith.negf %861 : vector<2x32xf32>
    %863 = math.exp %862 : vector<2x32xf32>
    %cst_215 = arith.constant 1.000000e+00 : f32
    %864 = vector.broadcast %cst_215 : f32 to vector<2x32xf32>
    %865 = arith.addf %864, %863 : vector<2x32xf32>
    %866 = arith.divf %864, %865 : vector<2x32xf32>
    %cst_216 = arith.constant 2.000000e+00 : f32
    %867 = vector.broadcast %cst_216 : f32 to vector<2x32xf32>
    %868 = arith.mulf %867, %866 : vector<2x32xf32>
    %cst_217 = arith.constant 1.000000e+00 : f32
    %869 = vector.broadcast %cst_217 : f32 to vector<2x32xf32>
    %870 = arith.subf %868, %869 : vector<2x32xf32>
    %871 = arith.mulf %856, %870 : vector<2x32xf32>
    %872 = vector.extract_strided_slice %37 {offsets = [26, 0], sizes = [2, 128], strides = [1, 1]} : vector<32x128xf32> to vector<2x128xf32>
    %873 = arith.addf %872, %840 : vector<2x128xf32>
    %874 = arith.negf %873 : vector<2x128xf32>
    %875 = math.exp %874 : vector<2x128xf32>
    %cst_218 = arith.constant 1.000000e+00 : f32
    %876 = vector.broadcast %cst_218 : f32 to vector<2x128xf32>
    %877 = arith.addf %876, %875 : vector<2x128xf32>
    %878 = arith.divf %876, %877 : vector<2x128xf32>
    %879 = vector.extract_strided_slice %878 {offsets = [0, 0], sizes = [2, 32], strides = [1, 1]} : vector<2x128xf32> to vector<2x32xf32>
    %880 = vector.extract_strided_slice %878 {offsets = [0, 32], sizes = [2, 32], strides = [1, 1]} : vector<2x128xf32> to vector<2x32xf32>
    %881 = vector.extract_strided_slice %878 {offsets = [0, 64], sizes = [2, 32], strides = [1, 1]} : vector<2x128xf32> to vector<2x32xf32>
    %cst_219 = arith.constant 2.000000e+00 : f32
    %882 = vector.broadcast %cst_219 : f32 to vector<2x32xf32>
    %883 = arith.mulf %882, %881 : vector<2x32xf32>
    %cst_220 = arith.constant 1.000000e+00 : f32
    %884 = vector.broadcast %cst_220 : f32 to vector<2x32xf32>
    %885 = arith.subf %883, %884 : vector<2x32xf32>
    %886 = vector.extract_strided_slice %878 {offsets = [0, 96], sizes = [2, 32], strides = [1, 1]} : vector<2x128xf32> to vector<2x32xf32>
    %887 = arith.mulf %880, %825 : vector<2x32xf32>
    %888 = arith.mulf %879, %885 : vector<2x32xf32>
    %889 = arith.addf %887, %888 : vector<2x32xf32>
    %cst_221 = arith.constant 2.000000e+00 : f32
    %890 = vector.broadcast %cst_221 : f32 to vector<2x32xf32>
    %891 = arith.mulf %890, %889 : vector<2x32xf32>
    %892 = arith.negf %891 : vector<2x32xf32>
    %893 = math.exp %892 : vector<2x32xf32>
    %cst_222 = arith.constant 1.000000e+00 : f32
    %894 = vector.broadcast %cst_222 : f32 to vector<2x32xf32>
    %895 = arith.addf %894, %893 : vector<2x32xf32>
    %896 = arith.divf %894, %895 : vector<2x32xf32>
    %cst_223 = arith.constant 2.000000e+00 : f32
    %897 = vector.broadcast %cst_223 : f32 to vector<2x32xf32>
    %898 = arith.mulf %897, %896 : vector<2x32xf32>
    %cst_224 = arith.constant 1.000000e+00 : f32
    %899 = vector.broadcast %cst_224 : f32 to vector<2x32xf32>
    %900 = arith.subf %898, %899 : vector<2x32xf32>
    %901 = arith.mulf %886, %900 : vector<2x32xf32>
    %902 = tpu.concatenate %901, %871 in 1 : vector<2x32xf32>, vector<2x32xf32> -> vector<2x64xf32>
    %cst_225 = arith.constant dense<0.000000e+00> : vector<2x256xf32>
    %903 = tpu.matmul %902, %6, %cst_225 {dimension_numbers = #tpu.dot_dimension_numbers<[1], [0], [0], [1], [0, 0, 1, 1], [], []>} : vector<2x64xf32>, vector<64x256xf32>, vector<2x256xf32> -> vector<2x256xf32>
    %904 = vector.extract_strided_slice %903 {offsets = [0, 0], sizes = [2, 128], strides = [1, 1]} : vector<2x256xf32> to vector<2x128xf32>
    %905 = vector.extract_strided_slice %903 {offsets = [0, 128], sizes = [2, 128], strides = [1, 1]} : vector<2x256xf32> to vector<2x128xf32>
    %906 = vector.broadcast %2 : vector<1x128xf32> to vector<2x128xf32>
    %907 = arith.addf %905, %906 : vector<2x128xf32>
    %908 = arith.negf %907 : vector<2x128xf32>
    %909 = math.exp %908 : vector<2x128xf32>
    %cst_226 = arith.constant 1.000000e+00 : f32
    %910 = vector.broadcast %cst_226 : f32 to vector<2x128xf32>
    %911 = arith.addf %910, %909 : vector<2x128xf32>
    %912 = arith.divf %910, %911 : vector<2x128xf32>
    %913 = vector.extract_strided_slice %912 {offsets = [0, 0], sizes = [2, 32], strides = [1, 1]} : vector<2x128xf32> to vector<2x32xf32>
    %914 = vector.extract_strided_slice %912 {offsets = [0, 32], sizes = [2, 32], strides = [1, 1]} : vector<2x128xf32> to vector<2x32xf32>
    %915 = vector.extract_strided_slice %912 {offsets = [0, 64], sizes = [2, 32], strides = [1, 1]} : vector<2x128xf32> to vector<2x32xf32>
    %cst_227 = arith.constant 2.000000e+00 : f32
    %916 = vector.broadcast %cst_227 : f32 to vector<2x32xf32>
    %917 = arith.mulf %916, %915 : vector<2x32xf32>
    %cst_228 = arith.constant 1.000000e+00 : f32
    %918 = vector.broadcast %cst_228 : f32 to vector<2x32xf32>
    %919 = arith.subf %917, %918 : vector<2x32xf32>
    %920 = vector.extract_strided_slice %912 {offsets = [0, 96], sizes = [2, 32], strides = [1, 1]} : vector<2x128xf32> to vector<2x32xf32>
    %921 = arith.mulf %914, %859 : vector<2x32xf32>
    %922 = arith.mulf %913, %919 : vector<2x32xf32>
    %923 = arith.addf %921, %922 : vector<2x32xf32>
    %cst_229 = arith.constant 2.000000e+00 : f32
    %924 = vector.broadcast %cst_229 : f32 to vector<2x32xf32>
    %925 = arith.mulf %924, %923 : vector<2x32xf32>
    %926 = arith.negf %925 : vector<2x32xf32>
    %927 = math.exp %926 : vector<2x32xf32>
    %cst_230 = arith.constant 1.000000e+00 : f32
    %928 = vector.broadcast %cst_230 : f32 to vector<2x32xf32>
    %929 = arith.addf %928, %927 : vector<2x32xf32>
    %930 = arith.divf %928, %929 : vector<2x32xf32>
    %cst_231 = arith.constant 2.000000e+00 : f32
    %931 = vector.broadcast %cst_231 : f32 to vector<2x32xf32>
    %932 = arith.mulf %931, %930 : vector<2x32xf32>
    %cst_232 = arith.constant 1.000000e+00 : f32
    %933 = vector.broadcast %cst_232 : f32 to vector<2x32xf32>
    %934 = arith.subf %932, %933 : vector<2x32xf32>
    %935 = arith.mulf %920, %934 : vector<2x32xf32>
    %936 = vector.extract_strided_slice %37 {offsets = [28, 0], sizes = [2, 128], strides = [1, 1]} : vector<32x128xf32> to vector<2x128xf32>
    %937 = arith.addf %936, %904 : vector<2x128xf32>
    %938 = arith.negf %937 : vector<2x128xf32>
    %939 = math.exp %938 : vector<2x128xf32>
    %cst_233 = arith.constant 1.000000e+00 : f32
    %940 = vector.broadcast %cst_233 : f32 to vector<2x128xf32>
    %941 = arith.addf %940, %939 : vector<2x128xf32>
    %942 = arith.divf %940, %941 : vector<2x128xf32>
    %943 = vector.extract_strided_slice %942 {offsets = [0, 0], sizes = [2, 32], strides = [1, 1]} : vector<2x128xf32> to vector<2x32xf32>
    %944 = vector.extract_strided_slice %942 {offsets = [0, 32], sizes = [2, 32], strides = [1, 1]} : vector<2x128xf32> to vector<2x32xf32>
    %945 = vector.extract_strided_slice %942 {offsets = [0, 64], sizes = [2, 32], strides = [1, 1]} : vector<2x128xf32> to vector<2x32xf32>
    %cst_234 = arith.constant 2.000000e+00 : f32
    %946 = vector.broadcast %cst_234 : f32 to vector<2x32xf32>
    %947 = arith.mulf %946, %945 : vector<2x32xf32>
    %cst_235 = arith.constant 1.000000e+00 : f32
    %948 = vector.broadcast %cst_235 : f32 to vector<2x32xf32>
    %949 = arith.subf %947, %948 : vector<2x32xf32>
    %950 = vector.extract_strided_slice %942 {offsets = [0, 96], sizes = [2, 32], strides = [1, 1]} : vector<2x128xf32> to vector<2x32xf32>
    %951 = arith.mulf %944, %889 : vector<2x32xf32>
    %952 = arith.mulf %943, %949 : vector<2x32xf32>
    %953 = arith.addf %951, %952 : vector<2x32xf32>
    %cst_236 = arith.constant 2.000000e+00 : f32
    %954 = vector.broadcast %cst_236 : f32 to vector<2x32xf32>
    %955 = arith.mulf %954, %953 : vector<2x32xf32>
    %956 = arith.negf %955 : vector<2x32xf32>
    %957 = math.exp %956 : vector<2x32xf32>
    %cst_237 = arith.constant 1.000000e+00 : f32
    %958 = vector.broadcast %cst_237 : f32 to vector<2x32xf32>
    %959 = arith.addf %958, %957 : vector<2x32xf32>
    %960 = arith.divf %958, %959 : vector<2x32xf32>
    %cst_238 = arith.constant 2.000000e+00 : f32
    %961 = vector.broadcast %cst_238 : f32 to vector<2x32xf32>
    %962 = arith.mulf %961, %960 : vector<2x32xf32>
    %cst_239 = arith.constant 1.000000e+00 : f32
    %963 = vector.broadcast %cst_239 : f32 to vector<2x32xf32>
    %964 = arith.subf %962, %963 : vector<2x32xf32>
    %965 = arith.mulf %950, %964 : vector<2x32xf32>
    %966 = tpu.concatenate %965, %935 in 1 : vector<2x32xf32>, vector<2x32xf32> -> vector<2x64xf32>
    %cst_240 = arith.constant dense<0.000000e+00> : vector<2x256xf32>
    %967 = tpu.matmul %966, %6, %cst_240 {dimension_numbers = #tpu.dot_dimension_numbers<[1], [0], [0], [1], [0, 0, 1, 1], [], []>} : vector<2x64xf32>, vector<64x256xf32>, vector<2x256xf32> -> vector<2x256xf32>
    %968 = vector.extract_strided_slice %967 {offsets = [0, 0], sizes = [2, 128], strides = [1, 1]} : vector<2x256xf32> to vector<2x128xf32>
    %969 = vector.extract_strided_slice %967 {offsets = [0, 128], sizes = [2, 128], strides = [1, 1]} : vector<2x256xf32> to vector<2x128xf32>
    %970 = vector.broadcast %2 : vector<1x128xf32> to vector<2x128xf32>
    %971 = arith.addf %969, %970 : vector<2x128xf32>
    %972 = arith.negf %971 : vector<2x128xf32>
    %973 = math.exp %972 : vector<2x128xf32>
    %cst_241 = arith.constant 1.000000e+00 : f32
    %974 = vector.broadcast %cst_241 : f32 to vector<2x128xf32>
    %975 = arith.addf %974, %973 : vector<2x128xf32>
    %976 = arith.divf %974, %975 : vector<2x128xf32>
    %977 = vector.extract_strided_slice %976 {offsets = [0, 0], sizes = [2, 32], strides = [1, 1]} : vector<2x128xf32> to vector<2x32xf32>
    %978 = vector.extract_strided_slice %976 {offsets = [0, 32], sizes = [2, 32], strides = [1, 1]} : vector<2x128xf32> to vector<2x32xf32>
    %979 = vector.extract_strided_slice %976 {offsets = [0, 64], sizes = [2, 32], strides = [1, 1]} : vector<2x128xf32> to vector<2x32xf32>
    %cst_242 = arith.constant 2.000000e+00 : f32
    %980 = vector.broadcast %cst_242 : f32 to vector<2x32xf32>
    %981 = arith.mulf %980, %979 : vector<2x32xf32>
    %cst_243 = arith.constant 1.000000e+00 : f32
    %982 = vector.broadcast %cst_243 : f32 to vector<2x32xf32>
    %983 = arith.subf %981, %982 : vector<2x32xf32>
    %984 = vector.extract_strided_slice %976 {offsets = [0, 96], sizes = [2, 32], strides = [1, 1]} : vector<2x128xf32> to vector<2x32xf32>
    %985 = arith.mulf %978, %923 : vector<2x32xf32>
    %986 = arith.mulf %977, %983 : vector<2x32xf32>
    %987 = arith.addf %985, %986 : vector<2x32xf32>
    %cst_244 = arith.constant 2.000000e+00 : f32
    %988 = vector.broadcast %cst_244 : f32 to vector<2x32xf32>
    %989 = arith.mulf %988, %987 : vector<2x32xf32>
    %990 = arith.negf %989 : vector<2x32xf32>
    %991 = math.exp %990 : vector<2x32xf32>
    %cst_245 = arith.constant 1.000000e+00 : f32
    %992 = vector.broadcast %cst_245 : f32 to vector<2x32xf32>
    %993 = arith.addf %992, %991 : vector<2x32xf32>
    %994 = arith.divf %992, %993 : vector<2x32xf32>
    %cst_246 = arith.constant 2.000000e+00 : f32
    %995 = vector.broadcast %cst_246 : f32 to vector<2x32xf32>
    %996 = arith.mulf %995, %994 : vector<2x32xf32>
    %cst_247 = arith.constant 1.000000e+00 : f32
    %997 = vector.broadcast %cst_247 : f32 to vector<2x32xf32>
    %998 = arith.subf %996, %997 : vector<2x32xf32>
    %999 = arith.mulf %984, %998 : vector<2x32xf32>
    %1000 = vector.extract_strided_slice %37 {offsets = [30, 0], sizes = [2, 128], strides = [1, 1]} : vector<32x128xf32> to vector<2x128xf32>
    %1001 = arith.addf %1000, %968 : vector<2x128xf32>
    %1002 = arith.negf %1001 : vector<2x128xf32>
    %1003 = math.exp %1002 : vector<2x128xf32>
    %cst_248 = arith.constant 1.000000e+00 : f32
    %1004 = vector.broadcast %cst_248 : f32 to vector<2x128xf32>
    %1005 = arith.addf %1004, %1003 : vector<2x128xf32>
    %1006 = arith.divf %1004, %1005 : vector<2x128xf32>
    %1007 = vector.extract_strided_slice %1006 {offsets = [0, 0], sizes = [2, 32], strides = [1, 1]} : vector<2x128xf32> to vector<2x32xf32>
    %1008 = vector.extract_strided_slice %1006 {offsets = [0, 32], sizes = [2, 32], strides = [1, 1]} : vector<2x128xf32> to vector<2x32xf32>
    %1009 = vector.extract_strided_slice %1006 {offsets = [0, 64], sizes = [2, 32], strides = [1, 1]} : vector<2x128xf32> to vector<2x32xf32>
    %cst_249 = arith.constant 2.000000e+00 : f32
    %1010 = vector.broadcast %cst_249 : f32 to vector<2x32xf32>
    %1011 = arith.mulf %1010, %1009 : vector<2x32xf32>
    %cst_250 = arith.constant 1.000000e+00 : f32
    %1012 = vector.broadcast %cst_250 : f32 to vector<2x32xf32>
    %1013 = arith.subf %1011, %1012 : vector<2x32xf32>
    %1014 = vector.extract_strided_slice %1006 {offsets = [0, 96], sizes = [2, 32], strides = [1, 1]} : vector<2x128xf32> to vector<2x32xf32>
    %1015 = arith.mulf %1008, %953 : vector<2x32xf32>
    %1016 = arith.mulf %1007, %1013 : vector<2x32xf32>
    %1017 = arith.addf %1015, %1016 : vector<2x32xf32>
    %cst_251 = arith.constant 2.000000e+00 : f32
    %1018 = vector.broadcast %cst_251 : f32 to vector<2x32xf32>
    %1019 = arith.mulf %1018, %1017 : vector<2x32xf32>
    %1020 = arith.negf %1019 : vector<2x32xf32>
    %1021 = math.exp %1020 : vector<2x32xf32>
    %cst_252 = arith.constant 1.000000e+00 : f32
    %1022 = vector.broadcast %cst_252 : f32 to vector<2x32xf32>
    %1023 = arith.addf %1022, %1021 : vector<2x32xf32>
    %1024 = arith.divf %1022, %1023 : vector<2x32xf32>
    %cst_253 = arith.constant 2.000000e+00 : f32
    %1025 = vector.broadcast %cst_253 : f32 to vector<2x32xf32>
    %1026 = arith.mulf %1025, %1024 : vector<2x32xf32>
    %cst_254 = arith.constant 1.000000e+00 : f32
    %1027 = vector.broadcast %cst_254 : f32 to vector<2x32xf32>
    %1028 = arith.subf %1026, %1027 : vector<2x32xf32>
    %1029 = arith.mulf %1014, %1028 : vector<2x32xf32>
    %1030 = tpu.concatenate %1029, %999 in 1 : vector<2x32xf32>, vector<2x32xf32> -> vector<2x64xf32>
    %cst_255 = arith.constant dense<0.000000e+00> : vector<2x256xf32>
    %1031 = tpu.matmul %1030, %6, %cst_255 {dimension_numbers = #tpu.dot_dimension_numbers<[1], [0], [0], [1], [0, 0, 1, 1], [], []>} : vector<2x64xf32>, vector<64x256xf32>, vector<2x256xf32> -> vector<2x256xf32>
    %1032 = vector.extract_strided_slice %1031 {offsets = [0, 128], sizes = [2, 128], strides = [1, 1]} : vector<2x256xf32> to vector<2x128xf32>
    %1033 = vector.broadcast %2 : vector<1x128xf32> to vector<2x128xf32>
    %1034 = arith.addf %1032, %1033 : vector<2x128xf32>
    %1035 = arith.negf %1034 : vector<2x128xf32>
    %1036 = math.exp %1035 : vector<2x128xf32>
    %cst_256 = arith.constant 1.000000e+00 : f32
    %1037 = vector.broadcast %cst_256 : f32 to vector<2x128xf32>
    %1038 = arith.addf %1037, %1036 : vector<2x128xf32>
    %1039 = arith.divf %1037, %1038 : vector<2x128xf32>
    %1040 = vector.extract_strided_slice %1039 {offsets = [0, 0], sizes = [2, 32], strides = [1, 1]} : vector<2x128xf32> to vector<2x32xf32>
    %1041 = vector.extract_strided_slice %1039 {offsets = [0, 32], sizes = [2, 32], strides = [1, 1]} : vector<2x128xf32> to vector<2x32xf32>
    %1042 = vector.extract_strided_slice %1039 {offsets = [0, 64], sizes = [2, 32], strides = [1, 1]} : vector<2x128xf32> to vector<2x32xf32>
    %cst_257 = arith.constant 2.000000e+00 : f32
    %1043 = vector.broadcast %cst_257 : f32 to vector<2x32xf32>
    %1044 = arith.mulf %1043, %1042 : vector<2x32xf32>
    %cst_258 = arith.constant 1.000000e+00 : f32
    %1045 = vector.broadcast %cst_258 : f32 to vector<2x32xf32>
    %1046 = arith.subf %1044, %1045 : vector<2x32xf32>
    %1047 = vector.extract_strided_slice %1039 {offsets = [0, 96], sizes = [2, 32], strides = [1, 1]} : vector<2x128xf32> to vector<2x32xf32>
    %1048 = arith.mulf %1041, %987 : vector<2x32xf32>
    %1049 = arith.mulf %1040, %1046 : vector<2x32xf32>
    %1050 = arith.addf %1048, %1049 : vector<2x32xf32>
    %cst_259 = arith.constant 2.000000e+00 : f32
    %1051 = vector.broadcast %cst_259 : f32 to vector<2x32xf32>
    %1052 = arith.mulf %1051, %1050 : vector<2x32xf32>
    %1053 = arith.negf %1052 : vector<2x32xf32>
    %1054 = math.exp %1053 : vector<2x32xf32>
    %cst_260 = arith.constant 1.000000e+00 : f32
    %1055 = vector.broadcast %cst_260 : f32 to vector<2x32xf32>
    %1056 = arith.addf %1055, %1054 : vector<2x32xf32>
    %1057 = arith.divf %1055, %1056 : vector<2x32xf32>
    %cst_261 = arith.constant 2.000000e+00 : f32
    %1058 = vector.broadcast %cst_261 : f32 to vector<2x32xf32>
    %1059 = arith.mulf %1058, %1057 : vector<2x32xf32>
    %cst_262 = arith.constant 1.000000e+00 : f32
    %1060 = vector.broadcast %cst_262 : f32 to vector<2x32xf32>
    %1061 = arith.subf %1059, %1060 : vector<2x32xf32>
    %1062 = arith.mulf %1047, %1061 : vector<2x32xf32>
    %1063 = vector.broadcast %3 : vector<1x32xf32> to vector<2x32xf32>
    %1064 = arith.mulf %1062, %1063 : vector<2x32xf32>
    %cst_263 = arith.constant dense<0.000000e+00> : vector<2xf32>
    %1065 = vector.multi_reduction <add>, %1064, %cst_263 [1] : vector<2x32xf32> to vector<2xf32>
    %1066 = vector.shape_cast %1065 : vector<2xf32> to vector<2x1xf32>
    %1067 = vector.broadcast %4 : vector<1x1xf32> to vector<2x1xf32>
    %1068 = arith.addf %1066, %1067 : vector<2x1xf32>
    %c0_264 = arith.constant 0 : index
    %c0_265 = arith.constant 0 : index
    %1069 = vector.load %arg4[%c0_264, %c0_265] : memref<2x1xf32, #tpu.memory_space<vmem>>, vector<2x1xf32>
    tpu.vector_store %arg4[%c0_264, %c0_265], %1068 {strides = array<i32>} : memref<2x1xf32, #tpu.memory_space<vmem>>, vector<2x1xf32>,
    return
  }
  func.func @transform_0(%arg0: i32) -> (i32, i32) {
    %c0_i32 = arith.constant 0 : i32
    %c0_i32_0 = arith.constant 0 : i32
    %c0_i32_1 = arith.constant 0 : i32
    return %c0_i32, %c0_i32_0 : i32, i32
  }
  func.func @transform_1(%arg0: i32) -> (i32, i32) {
    %c0_i32 = arith.constant 0 : i32
    %c0_i32_0 = arith.constant 0 : i32
    %c0_i32_1 = arith.constant 0 : i32
    return %c0_i32, %c0_i32_0 : i32, i32
  }
  func.func @transform_2(%arg0: i32) -> (i32, i32) {
    %c0_i32 = arith.constant 0 : i32
    %c0_i32_0 = arith.constant 0 : i32
    %c0_i32_1 = arith.constant 0 : i32
    return %c0_i32, %c0_i32_0 : i32, i32
  }
  func.func @transform_3(%arg0: i32) -> (i32, i32) {
    %c0_i32 = arith.constant 0 : i32
    %c0_i32_0 = arith.constant 0 : i32
    %c0_i32_1 = arith.constant 0 : i32
    return %c0_i32, %c0_i32_0 : i32, i32
  }
}

</mosaic_0001>

<bundles_post_ra>
// kernel: tpu_custom_call.1
= control target key start
LH: loop header
LB: loop body
LE: loop exit
PB: predicated region body
PF: predicated region fallthrough
CT: control target
= control target key end

     0   :  { %8 = vsyncpa [#allocation3], 0  ;;  %s4622_s0 = inlined_call_operand.vmem [shape: s32[96,1], index: 0, kind: input, shape index: {}]   ;;  %s4623_s1 = inlined_call_operand.hbm [shape: f32[64,256], index: 1, kind: input, shape index: {}]   ;;  %s4624_s2 = inlined_call_operand.hbm [shape: f32[120,128], index: 2, kind: input, shape index: {}]   ;;  %s4625_s3 = inlined_call_operand.vmem [shape: f32[2,1], index: 3, kind: output, shape index: {}]  }
   0x1   :  { %9 = vsyncpa [#allocation5], 0  ;;  %s4002_s12 = smov [#allocation2]   ;;  %s3954_s16 = scalar_lea.hbm %s4623_s1, 2048 }
   0x2   :  { %s17_s13 = sshll.u32 %s4002_s12, 4  ;;  %p3955_p0 = scmp.ne.s32.totalorder %s4623_s1, %s3954_s16  ;;  %s18_s13 = int_to_ptr.vmem [resolvable:$true] %s17_s13 }
   0x3   :  { %p3958_p1 = scmp.lt.u32.totalorder %s3954_s16, %s4623_s1 }
   0x5   :  { %p3960_p2 = pnand %p3958_p1, %p3955_p0 }
   0x7   :  { %3963 = shalt.err (!%p3960_p2)
}
   0x8   :  { %s3964_s21 = scalar_lea.vmem %s18_s13, 2048  ;;  %p3969_p4 = scmp.lt.s32.totalorder %s18_s13, %s18_s13 }
   0x9   :  { %p3965_p3 = scmp.ne.s32.totalorder %s18_s13, %s3964_s21  ;;  %p3970_p5 = scmp.lt.s32.totalorder %s3964_s21, %s3964_s21 }
   0xb   :  { %p3971_p6 = por %p3970_p5, %p3969_p4 }
   0xd   :  { %p3972_p7 = pnand %p3971_p6, %p3965_p3 }
   0xf   :  { %3975 = shalt.err (!%p3972_p7)
}
  0x10   :  { %s4003_s22 = smov 256   ;;  %s4004_s23 = smov 16  }
  0x11   :  { %23 = dma.hbm_to_vmem [thread:$0]  %s4623_s1, 2048, %s18_s13, [#allocation3], %s4003_s22, %s4003_s22, %s4004_s23  }
  0x12   :  { %s4005_s26 = smov [#allocation4]   ;;  %s3976_s30 = scalar_lea.hbm %s4624_s2, 1920 }
  0x13   :  { %s29_s27 = sshll.u32 %s4005_s26, 4  ;;  %p3977_p8 = scmp.ne.s32.totalorder %s4624_s2, %s3976_s30  ;;  %s30_s27 = int_to_ptr.vmem [resolvable:$true] %s29_s27 }
  0x14   :  { %p3980_p9 = scmp.lt.u32.totalorder %s3976_s30, %s4624_s2 }
  0x16   :  { %p3982_p10 = pnand %p3980_p9, %p3977_p8 }
  0x18   :  { %3985 = shalt.err (!%p3982_p10)
}
  0x19   :  { %s3986_s8 = scalar_lea.vmem %s30_s27, 1920  ;;  %p3991_p12 = scmp.lt.s32.totalorder %s30_s27, %s30_s27 }
  0x1a   :  { %p3987_p11 = scmp.ne.s32.totalorder %s30_s27, %s3986_s8  ;;  %p3992_p13 = scmp.lt.s32.totalorder %s3986_s8, %s3986_s8 }
  0x1c   :  { %p3993_p0 = por %p3992_p13, %p3991_p12 }
  0x1e   :  { %p3994_p1 = pnand %p3993_p0, %p3987_p11 }
  0x20   :  { %3997 = shalt.err (!%p3994_p1)
}
  0x21   :  { %s4006_s1 = smov 128   ;;  %s4007_s9 = smov 8  }
  0x22   :  { %35 = dma.hbm_to_vmem [thread:$0]  %s4624_s2, 1920, %s30_s27, [#allocation5], %s4006_s1, %s4006_s1, %s4007_s9  }
  0x23   :  { %3998 = dma.done.wait [#allocation3], 2048  }
  0x24   :  { %3999 = vsyncadd [#allocation3], 4294965248 }
  0x25   :  { %4000 = dma.done.wait [#allocation5], 1920  }
  0x26   :  { %4001 = vsyncadd [#allocation5], 4294965376  ;;  %v4008_v0 = vmov 0   ;;  %v4009_v1 = vmov 0.0   ;;  %v69_v2 = vld [vmem:[%s4622_s0 + $0x10] sm:$0xff]  ;;  %v67_v3 = vld [vmem:[%s4622_s0] sm:$0xff]  ;;  %v65_v23 = vlaneseq }
  0x27   :  { %3695 = vset.pattern.permute.xlu1 %v4008_v0  ;;  %3694 = vset.pattern.permute.xlu0 %v4008_v0  ;;  %v70_v4 = vld [vmem:[%s4622_s0 + $0x18] sm:$0xff]  ;;  %v68_v5 = vld [vmem:[%s4622_s0 + $0x8] sm:$0xff]  ;;  %v95_v6 = vld [vmem:[#allocation4] sm:$0xff]  ;;  %vm99_vm0 = vcmask 261120   ;;  %vm479_vm13 = vcmask 130048   ;;  %s4011_s8 = smov 32  }
  0x28   :  { %684 = vmatprep.mubr.f32.mxu1 %v4009_v1  ;;  %78 = vperm.xlu1 %3695, %v69_v2   ;;  %v96_v7 = vld [vmem:[#allocation4 + $0x8] sm:$0xff]  ;;  %v97_v8 = vld [vmem:[#allocation4 + $0x10] sm:$0xff]  ;;  %v98_v10 = vld [vmem:[#allocation4 + $0x18] sm:$0xff]  ;;  %v4094_v24 = vand.u32 127, %v65_v23  ;;  %vm616_vm14 = vcmask 523264   ;;  %s4012_s1 = smov 96  }
  0x29   :  { %72 = vperm.xlu0 %3694, %v67_v3   ;;  %v3387_v9 = vpack.c.bf16 %v96_v7, %v95_v6  ;;  %v206_v11 = vld [vmem:[%s4622_s0 + $0x28] sm:$0xff]  ;;  %v205_v12 = vld [vmem:[%s4622_s0 + $0x20] sm:$0xff]  ;;  %v3391_v13 = vpack.c.bf16 %v98_v10, %v97_v8  ;;  %v208_v16 = vld [vmem:[%s4622_s0 + $0x38] sm:$0xff]  ;;  %vm3111_vm15 = vcmask 254976  }
  0x2a   :  { %v233_v14 = vld [vmem:[#allocation4 + $0x20] sm:$0xff]  ;;  %v234_v15 = vld [vmem:[#allocation4 + $0x28] sm:$0xff]  ;;  %v207_v17 = vld [vmem:[%s4622_s0 + $0x30] sm:$0xff] }
  0x2b   :  { %3388 = vmatprep.subr.bf16.mxu0 %v3387_v9  ;;  %v3395_v18 = vpack.c.bf16 %v234_v15, %v233_v14  ;;  %v339_v19 = vld [vmem:[%s4622_s0 + $0x48] sm:$0xff]  ;;  %v338_v20 = vld [vmem:[%s4622_s0 + $0x40] sm:$0xff]  ;;  %v341_v21 = vld [vmem:[%s4622_s0 + $0x58] sm:$0xff] }
  0x2c   :  { %81 = vperm.xlu1 %3695, %v70_v4   ;;  %3390 = vmatpush3.bf16.msra.mxu0 %v3387_v9  ;;  %v340_v22 = vld [vmem:[%s4622_s0 + $0x50] sm:$0xff]  ;;  %v236_v29 = vld [vmem:[#allocation4 + $0x38] sm:$0xff]  ;;  %v366_v35 = vld [vmem:[#allocation4 + $0x40] sm:$0xff]  ;;  %s4010_s0 = smov 64  }
  0x2d   :  { %75 = vperm.xlu0 %3694, %v68_v5   ;;  %3392 = vmatprep.subr.bf16.mxu0 %v3391_v13  ;;  %v235_v28 = vld [vmem:[#allocation4 + $0x30] sm:$0xff]  ;;  %v367_v36 = vld [vmem:[#allocation4 + $0x48] sm:$0xff]  ;;  %v369_v43 = vld [vmem:[#allocation4 + $0x58] sm:$0xff] }
  0x2e   :  { %v3399_v33 = vpack.c.bf16 %v236_v29, %v235_v28  ;;  %v3403_v39 = vpack.c.bf16 %v367_v36, %v366_v35  ;;  %v368_v42 = vld [vmem:[#allocation4 + $0x50] sm:$0xff]  ;;  %v47_v49 = vld [vmem:[#allocation4 + $0x60] sm:$0xff]  ;;  %v48_v50 = vld [vmem:[#allocation4 + $0x68] sm:$0xff] }
  0x2f   :  { %v3407_v46 = vpack.c.bf16 %v369_v43, %v368_v42  ;;  %v3411_v53 = vpack.c.bf16 %v48_v50, %v47_v49  ;;  %v3136_v61 = vld [vmem:[#allocation4 + $0x70] ss:$0 sm:$0xff]  ;;  %v50_v35 = vld [vmem:[#allocation2 + $0x8] sm:$0xff]  ;;  %v52_v36 = vld [vmem:[#allocation2 + $0x18] sm:$0xff] }
  0x30   :  { %213 = vperm.xlu1 %3695, %v206_v11   ;;  %3394 = vmatpush3.bf16.msra.mxu0 %v3391_v13  ;;  %v3153_v11 = vld [vmem:[#allocation4 + $0x71] ss:$0 sm:$0xff]  ;;  %v57_v50 = vld [vmem:[#allocation2 + $0x40] sm:$0xff] }
  0x31   :  { %210 = vperm.xlu0 %3694, %v205_v12   ;;  %3396 = vmatprep.subr.bf16.mxu0 %v3395_v18 }
  0x34   :  { %219 = vperm.xlu1 %3695, %v208_v16  }
  0x35   :  { %216 = vperm.xlu0 %3694, %v207_v17  }
  0x38   :  { %346 = vperm.xlu1 %3695, %v339_v19  }
  0x39   :  { %343 = vperm.xlu0 %3694, %v338_v20  }
  0x3c   :  { %352 = vperm.xlu1 %3695, %v341_v21  }
  0x3d   :  { %349 = vperm.xlu0 %3694, %v340_v22  }
  0xa7   :  { %v79_v25 = vpop.permute.xlu1 %78 }
  0xa8   :  { %v73_v26 = vpop.permute.xlu0 %72  ;;  %vm85_vm2 = vcmp.eq.s32.totalorder %v79_v25, %v4094_v24 }
  0xa9   :  { %vm83_vm1 = vcmp.eq.s32.totalorder %v73_v26, %v4094_v24  ;;  %v3130_v32 = vsel %vm85_vm2, 1.0, %v4009_v1 }
  0xaa   :  { %v3128_v27 = vsel %vm83_vm1, 1.0, %v4009_v1 }
  0xab   :  { %3343 = vmatprep.mubr.msk.f32.mxu0 %vm99_vm0, %v3128_v27  ;;  %v82_v30 = vpop.permute.xlu1 %81 }
  0xac   :  { %v76_v31 = vpop.permute.xlu0 %75  ;;  %vm86_vm4 = vcmp.eq.s32.totalorder %v82_v30, %v4094_v24 }
  0xad   :  { %vm84_vm3 = vcmp.eq.s32.totalorder %v76_v31, %v4094_v24  ;;  %v3131_v40 = vsel %vm86_vm4, 1.0, %v4009_v1 }
  0xae   :  { %v3129_v34 = vsel %vm84_vm3, 1.0, %v4009_v1 }
  0xaf   :  { %3344 = vmatmul.mubr.msk.f32.vlgmr.msra.gmra.mrb[0].mxu0 %vm99_vm0, %v3129_v34  ;;  %v214_v37 = vpop.permute.xlu1 %213 }
  0xb0   :  { %3398 = vmatpush3.bf16.msra.mxu0 %v3395_v18  ;;  %3346 = vmatprep.mubr.msk.f32.mxu0 %vm99_vm0, %v3130_v32  ;;  %v211_v38 = vpop.permute.xlu0 %210  ;;  %vm222_vm6 = vcmp.eq.s32.totalorder %v214_v37, %v4094_v24  ;;  %v49_v37 = vld [vmem:[#allocation2] sm:$0xff] }
  0xb1   :  { %vm221_vm5 = vcmp.eq.s32.totalorder %v211_v38, %v4094_v24  ;;  %3400 = vmatprep.subr.bf16.mxu0 %v3399_v33  ;;  %v3138_v47 = vsel %vm222_vm6, 1.0, %v4009_v1  ;;  %v4152_v38 = vpack.c.bf16 %v52_v36, %v50_v35 }
  0xb2   :  { %v3137_v41 = vsel %vm221_vm5, 1.0, %v4009_v1 }
  0xb3   :  { %3347 = vmatmul.mubr.msk.f32.gmra.mrb[2].mxu0 %vm99_vm0, %v3131_v40  ;;  %v220_v44 = vpop.permute.xlu1 %219  ;;  %v54_v40 = vld [vmem:[#allocation2 + $0x28] sm:$0xff]  ;;  %3416 = vmatprep.subr.bf16.mxu1 %v4152_v38 }
  0xb4   :  { %3402 = vmatpush3.bf16.msra.mxu0 %v3399_v33  ;;  %3357 = vmatprep.mubr.msk.f32.mxu0 %vm99_vm0, %v3137_v41  ;;  %v217_v45 = vpop.permute.xlu0 %216  ;;  %vm224_vm8 = vcmp.eq.s32.totalorder %v220_v44, %v4094_v24  ;;  %v56_v41 = vld [vmem:[#allocation2 + $0x38] sm:$0xff]  ;;  %v53_v44 = vld [vmem:[#allocation2 + $0x20] sm:$0xff] }
  0xb5   :  { %vm223_vm7 = vcmp.eq.s32.totalorder %v217_v45, %v4094_v24  ;;  %3404 = vmatprep.subr.bf16.mxu0 %v3403_v39  ;;  %v3140_v54 = vsel %vm224_vm8, 1.0, %v4009_v1  ;;  %v4156_v43 = vpack.c.bf16 %v56_v41, %v54_v40  ;;  %v55_v45 = vld [vmem:[#allocation2 + $0x30] sm:$0xff] }
  0xb6   :  { %v3139_v48 = vsel %vm223_vm7, 1.0, %v4009_v1 }
  0xb7   :  { %3358 = vmatmul.mubr.msk.f32.vlgmr.msra.gmra.mrb[0].mxu0 %vm99_vm0, %v3138_v47  ;;  %v347_v51 = vpop.permute.xlu1 %346  ;;  %v60_v47 = vld [vmem:[#allocation2 + $0x58] sm:$0xff] }
  0xb8   :  { %3406 = vmatpush3.bf16.msra.mxu0 %v3403_v39  ;;  %3360 = vmatprep.mubr.msk.f32.mxu0 %vm99_vm0, %v3139_v48  ;;  %v344_v52 = vpop.permute.xlu0 %343  ;;  %vm355_vm10 = vcmp.eq.s32.totalorder %v347_v51, %v4094_v24  ;;  %v51_v39 = vld [vmem:[#allocation2 + $0x10] sm:$0xff]  ;;  %v4161_v48 = vpack.c.bf16 %v55_v45, %v53_v44 }
  0xb9   :  { %vm354_vm9 = vcmp.eq.s32.totalorder %v344_v52, %v4094_v24  ;;  %3408 = vmatprep.subr.bf16.mxu0 %v3407_v46  ;;  %v3146_v58 = vsel %vm355_vm10, 1.0, %v4009_v1  ;;  %v4154_v42 = vpack.c.bf16 %v51_v39, %v49_v37  ;;  %v59_v51 = vld [vmem:[#allocation2 + $0x50] sm:$0xff] }
  0xba   :  { %v3145_v55 = vsel %vm354_vm9, 1.0, %v4009_v1 }
  0xbb   :  { %3361 = vmatmul.mubr.msk.f32.gmra.mrb[2].mxu0 %vm99_vm0, %v3140_v54  ;;  %v353_v56 = vpop.permute.xlu1 %352  ;;  %3418 = vmatpush1.bf16.msra.mxu1 %v4154_v42  ;;  %v64_v54 = vld [vmem:[#allocation2 + $0x78] sm:$0xff] }
  0xbc   :  { %3410 = vmatpush3.bf16.msra.mxu0 %v3407_v46  ;;  %3371 = vmatprep.mubr.msk.f32.mxu0 %vm99_vm0, %v3145_v55  ;;  %v350_v57 = vpop.permute.xlu0 %349  ;;  %vm357_vm12 = vcmp.eq.s32.totalorder %v353_v56, %v4094_v24  ;;  %v58_v46 = vld [vmem:[#allocation2 + $0x48] sm:$0xff]  ;;  %v4169_v56 = vpack.c.bf16 %v59_v51, %v57_v50 }
  0xbd   :  { %vm356_vm11 = vcmp.eq.s32.totalorder %v350_v57, %v4094_v24  ;;  %3412 = vmatprep.subr.bf16.mxu0 %v3411_v53  ;;  %v3148_v60 = vsel %vm357_vm12, 1.0, %v4009_v1  ;;  %3420 = vmatprep.subr.bf16.mxu1 %v4156_v43  ;;  %v4165_v49 = vpack.c.bf16 %v60_v47, %v58_v46 }
  0xbe   :  { %v3147_v59 = vsel %vm356_vm11, 1.0, %v4009_v1 }
  0xbf   :  { %3372 = vmatmul.mubr.msk.f32.vlgmr.msra.gmra.mrb[0].mxu0 %vm99_vm0, %v3146_v58  ;;  %3422 = vmatpush1.bf16.msra.mxu1 %v4161_v48 }
  0xc0   :  { %3374 = vmatprep.mubr.msk.f32.mxu0 %vm99_vm0, %v3147_v59  ;;  %3414 = vmatpush3.bf16.msra.mxu0 %v3411_v53  ;;  %v62_v53 = vld [vmem:[#allocation2 + $0x68] sm:$0xff]  ;;  %v61_v59 = vld [vmem:[#allocation2 + $0x60] sm:$0xff] }
  0xc1   :  { %3448 = vmatprep.subr.bf16.mxu0 %v4152_v38  ;;  %3424 = vmatprep.subr.bf16.mxu1 %v4165_v49  ;;  %v4173_v58 = vpack.c.bf16 %v64_v54, %v62_v53 }
  0xc3   :  { %3375 = vmatmul.mubr.msk.f32.gmra.mrb[2].mxu0 %vm99_vm0, %v3148_v60  ;;  %v63_v60 = vld [vmem:[#allocation2 + $0x70] sm:$0xff]  ;;  %3426 = vmatpush1.bf16.msra.mxu1 %v4169_v56 }
  0xc4   :  { %3428 = vmatprep.subr.bf16.mxu1 %v4173_v58 }
 0x192   :  { %v3373_v62 = vpop.f32.mrb[0].mxu0 }
 0x193   :  { %v3671_v63 = vadd.f32 %v3373_v62, %v3136_v61  ;;  %v448_v0 = vpop.f32.mrb[1].mxu0 }
 0x194   :  { %v3672_v2 = vadd.f32 %v3136_v61, %v448_v0 }
 0x195   :  { %v472_v5 = vmax.f32 %v3671_v63, 0.0 }
 0x196   :  { %v471_v3 = vmax.f32 %v3672_v2, 0.0  ;;  %v3376_v4 = vpop.f32.mrb[2].mxu0 }
 0x197   :  { %v3673_v6 = vadd.f32 %v3376_v4, %v3136_v61  ;;  %v458_v7 = vpop.f32.mrb[3].mxu0 }
 0x198   :  { %v3674_v8 = vadd.f32 %v3136_v61, %v458_v7  ;;  %3381 = vmatprep.mubr.msk.f32.mxu0 %vm479_vm13, %v471_v3  ;;  %v4178_v61 = vpack.c.bf16 %v63_v60, %v61_v59  ;;  %v4200_v3 = vld [vmem:[#allocation4 + $0x72] ss:$0 sm:$0xff] }
 0x199   :  { %3382 = vmatmul.mubr.msk.f32.vlgmr.msra.gmra.mrb[4].mxu0 %vm479_vm13, %v472_v5  ;;  %v474_v10 = vmax.f32 %v3673_v6, 0.0 }
 0x19a   :  { %v473_v9 = vmax.f32 %v3674_v8, 0.0  ;;  %3450 = vmatpush1.bf16.msra.mxu0 %v4154_v42  ;;  %3430 = vmatpush1.bf16.msra.mxu1 %v4178_v61 }
 0x19b   :  { %3452 = vmatprep.subr.bf16.mxu0 %v4156_v43  ;;  %3432 = vmatprep.subr.bf16.mxu1 %v4152_v38 }
 0x19c   :  { %3384 = vmatprep.mubr.msk.f32.mxu0 %vm479_vm13, %v473_v9 }
 0x19d   :  { %3385 = vmatmul.mubr.msk.f32.gmra.mrb[6].mxu0 %vm479_vm13, %v474_v10 }
 0x19e   :  { %1006 = vmatprep.mubr.f32.mxu0 %v4009_v1  ;;  %3454 = vmatpush1.bf16.msra.mxu0 %v4161_v48 }
 0x19f   :  { %3456 = vmatprep.subr.bf16.mxu0 %v4165_v49 }
 0x1a2   :  { %3458 = vmatpush1.bf16.msra.mxu0 %v4169_v56 }
 0x1a3   :  { %3460 = vmatprep.subr.bf16.mxu0 %v4173_v58 }
 0x1a6   :  { %3462 = vmatpush1.bf16.msra.mxu0 %v4178_v61 }
 0x1a7   :  { %3480 = vmatprep.subr.bf16.mxu0 %v4152_v38 }
 0x26c   :  { %v3383_v12 = vpop.f32.mrb[4].mxu0 }
 0x26d   :  { %v4133_v13 = vadd.f32 %v3383_v12, %v3153_v11  ;;  %v558_v14 = vpop.f32.mrb[5].mxu0 }
 0x26e   :  { %v4135_v15 = vadd.f32 %v3153_v11, %v558_v14 }
 0x270   :  { %v3158_v16 = vmul.f32 -1.442695, %v4135_v15  ;;  %v3386_v17 = vpop.f32.mrb[6].mxu0 }
 0x271   :  { %v4138_v18 = vadd.f32 %v3386_v17, %v3153_v11  ;;  %v568_v19 = vpop.f32.mrb[7].mxu0 }
 0x272   :  { %3696 = vpow2.f32 %v3158_v16  ;;  %v4140_v20 = vadd.f32 %v3153_v11, %v568_v19 }
 0x27c   :  { %v3697_v21 = vpop.eup %3696 }
 0x27d   :  { %v581_v22 = vadd.f32 1.0, %v3697_v21 }
 0x27f   :  { %3698 = vrcp.f32 %v581_v22 }
 0x289   :  { %v4142_v23 = vpop.eup %3698 }
 0x28a   :  { %v584_v24 = vmul.f32 2.0, %v4142_v23  ;;  %v586_v28 = vmul.f32 0.0, %v4142_v23 }
 0x28c   :  { %v3159_v25 = vadd.f32 -1.0, %v584_v24 }
 0x28e   :  { %588 = vrot.lane.b32.xlu0 %v3159_v25, %s4010_s0 }
 0x300   :  { %v589_v26 = vpop.permute.xlu0 %588 }
 0x301   :  { %v591_v27 = vmul.f32 %v4142_v23, %v589_v26 }
 0x303   :  { %593 = vrot.lane.b32.xlu1 %v591_v27, %s4011_s8 }
 0x375   :  { %v594_v29 = vpop.permute.xlu1 %593 }
 0x376   :  { %v4149_v30 = vadd.f32 %v594_v29, %v586_v28 }
 0x378   :  { %v3160_v31 = vmul.f32 -2.0, %v4149_v30  ;;  %v742_v29 = vrot.slane %v4149_v30, 6 }
 0x37a   :  { %v599_v32 = vmul.f32 1.442695, %v3160_v31 }
 0x37c   :  { %3700 = vpow2.f32 %v599_v32 }
 0x386   :  { %v3701_v33 = vpop.eup %3700 }
 0x387   :  { %v601_v34 = vadd.f32 1.0, %v3701_v33 }
 0x389   :  { %3702 = vrcp.f32 %v601_v34 }
 0x393   :  { %v3703_v52 = vpop.eup %3702 }
 0x394   :  { %v604_v55 = vmul.f32 2.0, %v3703_v52 }
 0x396   :  { %v3161_v57 = vadd.f32 -1.0, %v604_v55 }
 0x398   :  { %607 = vrot.lane.b32.xlu0 %v3161_v57, %s4010_s0 }
 0x40a   :  { %v608_v62 = vpop.permute.xlu0 %607 }
 0x40b   :  { %v610_v63 = vmul.f32 %v4142_v23, %v608_v62 }
 0x40d   :  { %612 = vrot.lane.b32.xlu1 %v610_v63, %s4011_s8 }
 0x47f   :  { %v613_v0 = vpop.permute.xlu1 %612 }
 0x480   :  { %v615_v2 = vsel %vm99_vm0, %v613_v0, 0.0 }
 0x481   :  { %3162 = vmatmul.mubr.msk.f32.vlgmr.msra.gmra.mrb[0].mxu1 %vm616_vm14, %v615_v2 }
 0x482   :  { %3434 = vmatpush1.bf16.msra.mxu1 %v4154_v42  ;;  %847 = vmatprep.mubr.f32.mxu1 %v4009_v1 }
 0x483   :  { %3436 = vmatprep.subr.bf16.mxu1 %v4156_v43 }
 0x486   :  { %3438 = vmatpush1.bf16.msra.mxu1 %v4161_v48 }
 0x487   :  { %3440 = vmatprep.subr.bf16.mxu1 %v4165_v49 }
 0x48a   :  { %3442 = vmatpush1.bf16.msra.mxu1 %v4169_v56 }
 0x48b   :  { %3444 = vmatprep.subr.bf16.mxu1 %v4173_v58 }
 0x48e   :  { %3446 = vmatpush1.bf16.msra.mxu1 %v4178_v61 }
 0x48f   :  { %3464 = vmatprep.subr.bf16.mxu1 %v4152_v38 }
 0x554   :  { %v686_v4 = vpop.f32.mrb[0].mxu1 }
 0x555   :  { %v730_v5 = vrot.slane %v686_v4, 6  ;;  %v688_v6 = vpop.f32.mrb[1].mxu1 }
 0x556   :  { %v695_v7 = vadd.f32 %v4200_v3, %v688_v6 }
 0x557   :  { %v732_v8 = vadd.f32 %v730_v5, %v4135_v15 }
 0x558   :  { %v3164_v9 = vmul.f32 -1.442695, %v695_v7 }
 0x559   :  { %v3168_v10 = vmul.f32 -1.442695, %v732_v8 }
 0x55a   :  { %3704 = vpow2.f32 %v3164_v9 }
 0x55b   :  { %3706 = vpow2.f32 %v3168_v10 }
 0x564   :  { %v3705_v11 = vpop.eup %3704 }
 0x565   :  { %v3707_v12 = vpop.eup %3706  ;;  %v699_v14 = vadd.f32 1.0, %v3705_v11 }
 0x566   :  { %v736_v16 = vadd.f32 1.0, %v3707_v12 }
 0x567   :  { %3708 = vrcp.f32 %v699_v14 }
 0x568   :  { %3710 = vrcp.f32 %v736_v16 }
 0x571   :  { %v3709_v17 = vpop.eup %3708 }
 0x572   :  { %v3711_v19 = vpop.eup %3710  ;;  %v702_v21 = vmul.f32 2.0, %v3709_v17  ;;  %v704_v31 = vmul.f32 0.0, %v3709_v17 }
 0x573   :  { %v739_v22 = vmul.f32 2.0, %v3711_v19  ;;  %v744_v33 = vmul.f32 %v3711_v19, %v742_v29 }
 0x574   :  { %v3165_v23 = vadd.f32 -1.0, %v702_v21 }
 0x575   :  { %v3169_v24 = vadd.f32 -1.0, %v739_v22 }
 0x576   :  { %706 = vrot.lane.b32.xlu0 %v3165_v23, %s4010_s0 }
 0x577   :  { %746 = vrot.lane.b32.xlu1 %v3169_v24, %s4010_s0 }
 0x5e8   :  { %v707_v25 = vpop.permute.xlu0 %706 }
 0x5e9   :  { %v709_v26 = vmul.f32 %v3709_v17, %v707_v25  ;;  %v747_v27 = vpop.permute.xlu1 %746 }
 0x5ea   :  { %v749_v28 = vmul.f32 %v3711_v19, %v747_v27 }
 0x5eb   :  { %711 = vrot.lane.b32.xlu0 %v709_v26, %s4011_s8 }
 0x5ec   :  { %751 = vrot.lane.b32.xlu1 %v749_v28, %s4011_s8 }
 0x65d   :  { %v712_v32 = vpop.permute.xlu0 %711 }
 0x65e   :  { %v4209_v34 = vadd.f32 %v712_v32, %v704_v31  ;;  %v752_v35 = vpop.permute.xlu1 %751 }
 0x65f   :  { %v4211_v36 = vadd.f32 %v752_v35, %v744_v33 }
 0x660   :  { %v3166_v37 = vmul.f32 -2.0, %v4209_v34 }
 0x661   :  { %v3170_v39 = vmul.f32 -2.0, %v4211_v36  ;;  %v901_v31 = vrot.slane %v4211_v36, 6 }
 0x662   :  { %v717_v40 = vmul.f32 1.442695, %v3166_v37 }
 0x663   :  { %v757_v41 = vmul.f32 1.442695, %v3170_v39 }
 0x664   :  { %3712 = vpow2.f32 %v717_v40 }
 0x665   :  { %3714 = vpow2.f32 %v757_v41 }
 0x66e   :  { %v3713_v44 = vpop.eup %3712 }
 0x66f   :  { %v3715_v45 = vpop.eup %3714  ;;  %v719_v46 = vadd.f32 1.0, %v3713_v44 }
 0x670   :  { %v759_v30 = vadd.f32 1.0, %v3715_v45 }
 0x671   :  { %3716 = vrcp.f32 %v719_v46 }
 0x672   :  { %3718 = vrcp.f32 %v759_v30 }
 0x67b   :  { %v3717_v47 = vpop.eup %3716 }
 0x67c   :  { %v3719_v50 = vpop.eup %3718  ;;  %v722_v51 = vmul.f32 2.0, %v3717_v47 }
 0x67d   :  { %v762_v52 = vmul.f32 2.0, %v3719_v50 }
 0x67e   :  { %v3167_v53 = vadd.f32 -1.0, %v722_v51 }
 0x67f   :  { %v3171_v54 = vadd.f32 -1.0, %v762_v52 }
 0x680   :  { %725 = vrot.lane.b32.xlu0 %v3167_v53, %s4010_s0 }
 0x681   :  { %765 = vrot.lane.b32.xlu1 %v3171_v54, %s4010_s0 }
 0x6f2   :  { %v726_v55 = vpop.permute.xlu0 %725 }
 0x6f3   :  { %v728_v57 = vmul.f32 %v3709_v17, %v726_v55  ;;  %v766_v59 = vpop.permute.xlu1 %765 }
 0x6f4   :  { %v768_v60 = vmul.f32 %v3711_v19, %v766_v59 }
 0x6f5   :  { %v774_v62 = vrot.slane %v728_v57, 6 }
 0x6f6   :  { %770 = vrot.lane.b32.xlu0 %v768_v60, %s4011_s8 }
 0x6f7   :  { %775 = vrot.lane.b32.xlu1 %v774_v62, %s4010_s0 }
 0x768   :  { %v771_v63 = vpop.permute.xlu0 %770 }
 0x769   :  { %v776_v0 = vpop.permute.xlu1 %775 }
 0x76a   :  { %v778_v2 = vsel %vm99_vm0, %v771_v63, %v776_v0 }
 0x76b   :  { %v780_v4 = vrot.slane %v778_v2, 2 }
 0x76d   :  { %3172 = vmatmul.mubr.msk.f32.vlgmr.msra.gmra.mrb[2].mxu1 %vm616_vm14, %v780_v4 }
 0x76e   :  { %3466 = vmatpush1.bf16.msra.mxu1 %v4154_v42  ;;  %1165 = vmatprep.mubr.f32.mxu1 %v4009_v1 }
 0x76f   :  { %3468 = vmatprep.subr.bf16.mxu1 %v4156_v43 }
 0x772   :  { %3470 = vmatpush1.bf16.msra.mxu1 %v4161_v48 }
 0x773   :  { %3472 = vmatprep.subr.bf16.mxu1 %v4165_v49 }
 0x776   :  { %3474 = vmatpush1.bf16.msra.mxu1 %v4169_v56 }
 0x777   :  { %3476 = vmatprep.subr.bf16.mxu1 %v4173_v58 }
 0x77a   :  { %3478 = vmatpush1.bf16.msra.mxu1 %v4178_v61 }
 0x77b   :  { %3496 = vmatprep.subr.bf16.mxu1 %v4152_v38 }
 0x840   :  { %v849_v5 = vpop.f32.mrb[2].mxu1 }
 0x841   :  { %v889_v6 = vrot.slane %v849_v5, 4  ;;  %v851_v7 = vpop.f32.mrb[3].mxu1 }
 0x842   :  { %v854_v8 = vadd.f32 %v4200_v3, %v851_v7 }
 0x843   :  { %v891_v9 = vadd.f32 %v889_v6, %v4135_v15 }
 0x844   :  { %v3173_v10 = vmul.f32 -1.442695, %v854_v8 }
 0x845   :  { %v3177_v11 = vmul.f32 -1.442695, %v891_v9 }
 0x846   :  { %3720 = vpow2.f32 %v3173_v10 }
 0x847   :  { %3722 = vpow2.f32 %v3177_v11 }
 0x850   :  { %v3721_v12 = vpop.eup %3720 }
 0x851   :  { %v3723_v14 = vpop.eup %3722  ;;  %v858_v16 = vadd.f32 1.0, %v3721_v12 }
 0x852   :  { %v895_v17 = vadd.f32 1.0, %v3723_v14 }
 0x853   :  { %3724 = vrcp.f32 %v858_v16 }
 0x854   :  { %3726 = vrcp.f32 %v895_v17 }
 0x85d   :  { %v3725_v19 = vpop.eup %3724 }
 0x85e   :  { %v3727_v21 = vpop.eup %3726  ;;  %v861_v22 = vmul.f32 2.0, %v3725_v19  ;;  %v863_v32 = vmul.f32 %v3725_v19, %v4209_v34 }
 0x85f   :  { %v898_v23 = vmul.f32 2.0, %v3727_v21  ;;  %v903_v35 = vmul.f32 %v3727_v21, %v901_v31 }
 0x860   :  { %v3174_v24 = vadd.f32 -1.0, %v861_v22 }
 0x861   :  { %v3178_v25 = vadd.f32 -1.0, %v898_v23 }
 0x862   :  { %865 = vrot.lane.b32.xlu0 %v3174_v24, %s4010_s0 }
 0x863   :  { %905 = vrot.lane.b32.xlu1 %v3178_v25, %s4010_s0 }
 0x8d4   :  { %v866_v26 = vpop.permute.xlu0 %865 }
 0x8d5   :  { %v868_v27 = vmul.f32 %v3725_v19, %v866_v26  ;;  %v906_v28 = vpop.permute.xlu1 %905 }
 0x8d6   :  { %v908_v29 = vmul.f32 %v3727_v21, %v906_v28 }
 0x8d7   :  { %870 = vrot.lane.b32.xlu0 %v868_v27, %s4011_s8 }
 0x8d8   :  { %910 = vrot.lane.b32.xlu1 %v908_v29, %s4011_s8 }
 0x949   :  { %v871_v33 = vpop.permute.xlu0 %870 }
 0x94a   :  { %v4238_v37 = vadd.f32 %v871_v33, %v863_v32  ;;  %v911_v39 = vpop.permute.xlu1 %910 }
 0x94b   :  { %v4240_v40 = vadd.f32 %v911_v39, %v903_v35 }
 0x94c   :  { %v3175_v41 = vmul.f32 -2.0, %v4238_v37 }
 0x94d   :  { %v3179_v44 = vmul.f32 -2.0, %v4240_v40  ;;  %v1060_v31 = vrot.slane %v4240_v40, 6 }
 0x94e   :  { %v876_v45 = vmul.f32 1.442695, %v3175_v41 }
 0x94f   :  { %v916_v46 = vmul.f32 1.442695, %v3179_v44 }
 0x950   :  { %3728 = vpow2.f32 %v876_v45 }
 0x951   :  { %3730 = vpow2.f32 %v916_v46 }
 0x95a   :  { %v3729_v30 = vpop.eup %3728 }
 0x95b   :  { %v3731_v47 = vpop.eup %3730  ;;  %v878_v36 = vadd.f32 1.0, %v3729_v30 }
 0x95c   :  { %v918_v50 = vadd.f32 1.0, %v3731_v47 }
 0x95d   :  { %3732 = vrcp.f32 %v878_v36 }
 0x95e   :  { %3734 = vrcp.f32 %v918_v50 }
 0x967   :  { %v3733_v34 = vpop.eup %3732 }
 0x968   :  { %v3735_v51 = vpop.eup %3734  ;;  %v881_v52 = vmul.f32 2.0, %v3733_v34 }
 0x969   :  { %v921_v53 = vmul.f32 2.0, %v3735_v51 }
 0x96a   :  { %v3176_v54 = vadd.f32 -1.0, %v881_v52 }
 0x96b   :  { %v3180_v55 = vadd.f32 -1.0, %v921_v53 }
 0x96c   :  { %884 = vrot.lane.b32.xlu0 %v3176_v54, %s4010_s0 }
 0x96d   :  { %924 = vrot.lane.b32.xlu1 %v3180_v55, %s4010_s0 }
 0x9de   :  { %v885_v57 = vpop.permute.xlu0 %884 }
 0x9df   :  { %v887_v59 = vmul.f32 %v3725_v19, %v885_v57  ;;  %v925_v60 = vpop.permute.xlu1 %924 }
 0x9e0   :  { %v927_v62 = vmul.f32 %v3727_v21, %v925_v60 }
 0x9e1   :  { %v933_v63 = vrot.slane %v887_v59, 4 }
 0x9e2   :  { %929 = vrot.lane.b32.xlu0 %v927_v62, %s4011_s8 }
 0x9e3   :  { %934 = vrot.lane.b32.xlu1 %v933_v63, %s4010_s0 }
 0xa54   :  { %v930_v0 = vpop.permute.xlu0 %929 }
 0xa55   :  { %v935_v2 = vpop.permute.xlu1 %934 }
 0xa56   :  { %v937_v4 = vsel %vm99_vm0, %v930_v0, %v935_v2 }
 0xa57   :  { %v939_v5 = vrot.slane %v937_v4, 4 }
 0xa59   :  { %3181 = vmatmul.mubr.msk.f32.vlgmr.msra.gmra.mrb[8].mxu0 %vm616_vm14, %v939_v5 }
 0xa5a   :  { %3482 = vmatpush1.bf16.msra.mxu0 %v4154_v42  ;;  %1319 = vmatprep.mubr.f32.mxu0 %v4009_v1 }
 0xa5b   :  { %3484 = vmatprep.subr.bf16.mxu0 %v4156_v43 }
 0xa5e   :  { %3486 = vmatpush1.bf16.msra.mxu0 %v4161_v48 }
 0xa5f   :  { %3488 = vmatprep.subr.bf16.mxu0 %v4165_v49 }
 0xa62   :  { %3490 = vmatpush1.bf16.msra.mxu0 %v4169_v56 }
 0xa63   :  { %3492 = vmatprep.subr.bf16.mxu0 %v4173_v58 }
 0xa66   :  { %3494 = vmatpush1.bf16.msra.mxu0 %v4178_v61 }
 0xa67   :  { %3512 = vmatprep.subr.bf16.mxu0 %v4152_v38 }
 0xb2c   :  { %v1008_v6 = vpop.f32.mrb[8].mxu0 }
 0xb2d   :  { %v1048_v7 = vrot.slane %v1008_v6, 2  ;;  %v1010_v8 = vpop.f32.mrb[9].mxu0 }
 0xb2e   :  { %v1013_v9 = vadd.f32 %v4200_v3, %v1010_v8 }
 0xb2f   :  { %v1050_v10 = vadd.f32 %v1048_v7, %v4135_v15 }
 0xb30   :  { %v3182_v11 = vmul.f32 -1.442695, %v1013_v9 }
 0xb31   :  { %v3186_v12 = vmul.f32 -1.442695, %v1050_v10 }
 0xb32   :  { %3736 = vpow2.f32 %v3182_v11 }
 0xb33   :  { %3738 = vpow2.f32 %v3186_v12 }
 0xb3c   :  { %v3737_v14 = vpop.eup %3736 }
 0xb3d   :  { %v3739_v16 = vpop.eup %3738  ;;  %v1017_v17 = vadd.f32 1.0, %v3737_v14 }
 0xb3e   :  { %v1054_v19 = vadd.f32 1.0, %v3739_v16 }
 0xb3f   :  { %3740 = vrcp.f32 %v1017_v17 }
 0xb40   :  { %3742 = vrcp.f32 %v1054_v19 }
 0xb49   :  { %v3741_v21 = vpop.eup %3740 }
 0xb4a   :  { %v3743_v22 = vpop.eup %3742  ;;  %v1020_v23 = vmul.f32 2.0, %v3741_v21  ;;  %v1022_v32 = vmul.f32 %v3741_v21, %v4238_v37 }
 0xb4b   :  { %v1057_v24 = vmul.f32 2.0, %v3743_v22  ;;  %v1062_v35 = vmul.f32 %v3743_v22, %v1060_v31 }
 0xb4c   :  { %v3183_v25 = vadd.f32 -1.0, %v1020_v23 }
 0xb4d   :  { %v3187_v26 = vadd.f32 -1.0, %v1057_v24 }
 0xb4e   :  { %1024 = vrot.lane.b32.xlu0 %v3183_v25, %s4010_s0 }
 0xb4f   :  { %1064 = vrot.lane.b32.xlu1 %v3187_v26, %s4010_s0 }
 0xbc0   :  { %v1025_v15 = vpop.permute.xlu0 %1024 }
 0xbc1   :  { %v1027_v27 = vmul.f32 %v3741_v21, %v1025_v15  ;;  %v1065_v28 = vpop.permute.xlu1 %1064 }
 0xbc2   :  { %v1067_v29 = vmul.f32 %v3743_v22, %v1065_v28 }
 0xbc3   :  { %1029 = vrot.lane.b32.xlu0 %v1027_v27, %s4011_s8 }
 0xbc4   :  { %1069 = vrot.lane.b32.xlu1 %v1067_v29, %s4011_s8 }
 0xc35   :  { %v1030_v33 = vpop.permute.xlu0 %1029 }
 0xc36   :  { %v4267_v39 = vadd.f32 %v1030_v33, %v1022_v32  ;;  %v1070_v41 = vpop.permute.xlu1 %1069 }
 0xc37   :  { %v4269_v44 = vadd.f32 %v1070_v41, %v1062_v35 }
 0xc38   :  { %v3184_v45 = vmul.f32 -2.0, %v4267_v39 }
 0xc39   :  { %v3188_v46 = vmul.f32 -2.0, %v4269_v44  ;;  %v1216_v29 = vrot.slane %v4269_v44, 6 }
 0xc3a   :  { %v1035_v30 = vmul.f32 1.442695, %v3184_v45 }
 0xc3b   :  { %v1075_v47 = vmul.f32 1.442695, %v3188_v46 }
 0xc3c   :  { %3744 = vpow2.f32 %v1035_v30 }
 0xc3d   :  { %3746 = vpow2.f32 %v1075_v47 }
 0xc46   :  { %v3745_v36 = vpop.eup %3744 }
 0xc47   :  { %v3747_v50 = vpop.eup %3746  ;;  %v1037_v40 = vadd.f32 1.0, %v3745_v36 }
 0xc48   :  { %v1077_v34 = vadd.f32 1.0, %v3747_v50 }
 0xc49   :  { %3748 = vrcp.f32 %v1037_v40 }
 0xc4a   :  { %3750 = vrcp.f32 %v1077_v34 }
 0xc53   :  { %v3749_v37 = vpop.eup %3748 }
 0xc54   :  { %v3751_v51 = vpop.eup %3750  ;;  %v1040_v52 = vmul.f32 2.0, %v3749_v37 }
 0xc55   :  { %v1080_v53 = vmul.f32 2.0, %v3751_v51 }
 0xc56   :  { %v3185_v54 = vadd.f32 -1.0, %v1040_v52 }
 0xc57   :  { %v3189_v55 = vadd.f32 -1.0, %v1080_v53 }
 0xc58   :  { %1043 = vrot.lane.b32.xlu0 %v3185_v54, %s4010_s0 }
 0xc59   :  { %1083 = vrot.lane.b32.xlu1 %v3189_v55, %s4010_s0 }
 0xcca   :  { %v1044_v57 = vpop.permute.xlu0 %1043 }
 0xccb   :  { %v1046_v59 = vmul.f32 %v3741_v21, %v1044_v57  ;;  %v1084_v60 = vpop.permute.xlu1 %1083 }
 0xccc   :  { %v1086_v62 = vmul.f32 %v3743_v22, %v1084_v60 }
 0xccd   :  { %v1092_v63 = vrot.slane %v1046_v59, 2 }
 0xcce   :  { %1088 = vrot.lane.b32.xlu0 %v1086_v62, %s4011_s8 }
 0xccf   :  { %1093 = vrot.lane.b32.xlu1 %v1092_v63, %s4010_s0 }
 0xd40   :  { %v1089_v0 = vpop.permute.xlu0 %1088 }
 0xd41   :  { %v1094_v2 = vpop.permute.xlu1 %1093 }
 0xd42   :  { %v1096_v4 = vsel %vm99_vm0, %v1089_v0, %v1094_v2 }
 0xd43   :  { %v1098_v5 = vrot.slane %v1096_v4, 6 }
 0xd45   :  { %3190 = vmatmul.mubr.msk.f32.vlgmr.msra.gmra.mrb[4].mxu1 %vm616_vm14, %v1098_v5 }
 0xd46   :  { %3498 = vmatpush1.bf16.msra.mxu1 %v4154_v42  ;;  %1478 = vmatprep.mubr.f32.mxu1 %v4009_v1 }
 0xd47   :  { %3500 = vmatprep.subr.bf16.mxu1 %v4156_v43 }
 0xd4a   :  { %3502 = vmatpush1.bf16.msra.mxu1 %v4161_v48 }
 0xd4b   :  { %3504 = vmatprep.subr.bf16.mxu1 %v4165_v49 }
 0xd4e   :  { %3506 = vmatpush1.bf16.msra.mxu1 %v4169_v56 }
 0xd4f   :  { %3508 = vmatprep.subr.bf16.mxu1 %v4173_v58 }
 0xd52   :  { %3510 = vmatpush1.bf16.msra.mxu1 %v4178_v61 }
 0xd53   :  { %3528 = vmatprep.subr.bf16.mxu1 %v4152_v38 }
 0xe18   :  { %v1167_v6 = vpop.f32.mrb[4].mxu1 }
 0xe19   :  { %v1206_v7 = vadd.f32 %v1167_v6, %v4133_v13  ;;  %v1169_v8 = vpop.f32.mrb[5].mxu1 }
 0xe1a   :  { %v1172_v9 = vadd.f32 %v4200_v3, %v1169_v8 }
 0xe1b   :  { %v3195_v10 = vmul.f32 -1.442695, %v1206_v7 }
 0xe1c   :  { %v3191_v11 = vmul.f32 -1.442695, %v1172_v9 }
 0xe1d   :  { %3752 = vpow2.f32 %v3195_v10 }
 0xe1e   :  { %3754 = vpow2.f32 %v3191_v11 }
 0xe27   :  { %v3753_v12 = vpop.eup %3752 }
 0xe28   :  { %v3755_v14 = vpop.eup %3754  ;;  %v1210_v16 = vadd.f32 1.0, %v3753_v12 }
 0xe29   :  { %v1176_v17 = vadd.f32 1.0, %v3755_v14 }
 0xe2a   :  { %3756 = vrcp.f32 %v1210_v16 }
 0xe2b   :  { %3758 = vrcp.f32 %v1176_v17 }
 0xe34   :  { %v3757_v19 = vpop.eup %3756 }
 0xe35   :  { %v3759_v21 = vpop.eup %3758  ;;  %v1213_v22 = vmul.f32 2.0, %v3757_v19  ;;  %v1218_v31 = vmul.f32 %v3757_v19, %v1216_v29 }
 0xe36   :  { %v1179_v23 = vmul.f32 2.0, %v3759_v21  ;;  %v1181_v33 = vmul.f32 %v3759_v21, %v4267_v39 }
 0xe37   :  { %v3196_v24 = vadd.f32 -1.0, %v1213_v22 }
 0xe38   :  { %v3192_v25 = vadd.f32 -1.0, %v1179_v23 }
 0xe39   :  { %1220 = vrot.lane.b32.xlu1 %v3196_v24, %s4010_s0 }
 0xe3a   :  { %1183 = vrot.lane.b32.xlu0 %v3192_v25, %s4010_s0 }
 0xeab   :  { %v1221_v26 = vpop.permute.xlu1 %1220 }
 0xeac   :  { %v1223_v15 = vmul.f32 %v3757_v19, %v1221_v26  ;;  %v1184_v27 = vpop.permute.xlu0 %1183 }
 0xead   :  { %v1186_v28 = vmul.f32 %v3759_v21, %v1184_v27 }
 0xeae   :  { %1225 = vrot.lane.b32.xlu1 %v1223_v15, %s4011_s8 }
 0xeaf   :  { %1188 = vrot.lane.b32.xlu0 %v1186_v28, %s4011_s8 }
 0xf20   :  { %v1226_v32 = vpop.permute.xlu1 %1225 }
 0xf21   :  { %v4296_v35 = vadd.f32 %v1226_v32, %v1218_v31  ;;  %v1189_v41 = vpop.permute.xlu0 %1188 }
 0xf22   :  { %v4298_v45 = vadd.f32 %v1189_v41, %v1181_v33 }
 0xf23   :  { %v3197_v46 = vmul.f32 -2.0, %v4296_v35  ;;  %v1373_v27 = vrot.slane %v4296_v35, 6 }
 0xf24   :  { %v3193_v30 = vmul.f32 -2.0, %v4298_v45 }
 0xf25   :  { %v1231_v47 = vmul.f32 1.442695, %v3197_v46 }
 0xf26   :  { %v1194_v36 = vmul.f32 1.442695, %v3193_v30 }
 0xf27   :  { %3760 = vpow2.f32 %v1231_v47 }
 0xf28   :  { %3762 = vpow2.f32 %v1194_v36 }
 0xf31   :  { %v3761_v50 = vpop.eup %3760 }
 0xf32   :  { %v3763_v40 = vpop.eup %3762  ;;  %v1233_v44 = vadd.f32 1.0, %v3761_v50 }
 0xf33   :  { %v1196_v34 = vadd.f32 1.0, %v3763_v40 }
 0xf34   :  { %3764 = vrcp.f32 %v1233_v44 }
 0xf35   :  { %3766 = vrcp.f32 %v1196_v34 }
 0xf3e   :  { %v3765_v39 = vpop.eup %3764 }
 0xf3f   :  { %v3767_v37 = vpop.eup %3766  ;;  %v1236_v51 = vmul.f32 2.0, %v3765_v39 }
 0xf40   :  { %v1199_v52 = vmul.f32 2.0, %v3767_v37 }
 0xf41   :  { %v3198_v53 = vadd.f32 -1.0, %v1236_v51 }
 0xf42   :  { %v3194_v54 = vadd.f32 -1.0, %v1199_v52 }
 0xf43   :  { %1239 = vrot.lane.b32.xlu1 %v3198_v53, %s4010_s0 }
 0xf44   :  { %1202 = vrot.lane.b32.xlu0 %v3194_v54, %s4010_s0 }
 0xfb5   :  { %v1240_v55 = vpop.permute.xlu1 %1239 }
 0xfb6   :  { %v1242_v57 = vmul.f32 %v3757_v19, %v1240_v55  ;;  %v1203_v59 = vpop.permute.xlu0 %1202 }
 0xfb7   :  { %v1205_v60 = vmul.f32 %v3759_v21, %v1203_v59 }
 0xfb8   :  { %1244 = vrot.lane.b32.xlu0 %v1242_v57, %s4011_s8 }
 0xfb9   :  { %1248 = vrot.lane.b32.xlu1 %v1205_v60, %s4010_s0 }
0x102a   :  { %v1245_v62 = vpop.permute.xlu0 %1244 }
0x102b   :  { %v1249_v63 = vpop.permute.xlu1 %1248 }
0x102c   :  { %v1251_v0 = vsel %vm99_vm0, %v1245_v62, %v1249_v63 }
0x102d   :  { %3199 = vmatmul.mubr.msk.f32.vlgmr.msra.gmra.mrb[10].mxu0 %vm616_vm14, %v1251_v0 }
0x102e   :  { %3514 = vmatpush1.bf16.msra.mxu0 %v4154_v42  ;;  %1637 = vmatprep.mubr.f32.mxu0 %v4009_v1 }
0x102f   :  { %3516 = vmatprep.subr.bf16.mxu0 %v4156_v43 }
0x1032   :  { %3518 = vmatpush1.bf16.msra.mxu0 %v4161_v48 }
0x1033   :  { %3520 = vmatprep.subr.bf16.mxu0 %v4165_v49 }
0x1036   :  { %3522 = vmatpush1.bf16.msra.mxu0 %v4169_v56 }
0x1037   :  { %3524 = vmatprep.subr.bf16.mxu0 %v4173_v58 }
0x103a   :  { %3526 = vmatpush1.bf16.msra.mxu0 %v4178_v61 }
0x103b   :  { %3544 = vmatprep.subr.bf16.mxu0 %v4152_v38 }
0x1100   :  { %v1321_v2 = vpop.f32.mrb[10].mxu0 }
0x1101   :  { %v1361_v4 = vrot.slane %v1321_v2, 6  ;;  %v1323_v5 = vpop.f32.mrb[11].mxu0 }
0x1102   :  { %v1326_v6 = vadd.f32 %v4200_v3, %v1323_v5 }
0x1103   :  { %v1363_v7 = vadd.f32 %v1361_v4, %v4133_v13 }
0x1104   :  { %v3200_v8 = vmul.f32 -1.442695, %v1326_v6 }
0x1105   :  { %v3204_v9 = vmul.f32 -1.442695, %v1363_v7 }
0x1106   :  { %3768 = vpow2.f32 %v3200_v8 }
0x1107   :  { %3770 = vpow2.f32 %v3204_v9 }
0x1110   :  { %v3769_v10 = vpop.eup %3768 }
0x1111   :  { %v3771_v11 = vpop.eup %3770  ;;  %v1330_v12 = vadd.f32 1.0, %v3769_v10 }
0x1112   :  { %v1367_v14 = vadd.f32 1.0, %v3771_v11 }
0x1113   :  { %3772 = vrcp.f32 %v1330_v12 }
0x1114   :  { %3774 = vrcp.f32 %v1367_v14 }
0x111d   :  { %v3773_v16 = vpop.eup %3772 }
0x111e   :  { %v3775_v17 = vpop.eup %3774  ;;  %v1333_v19 = vmul.f32 2.0, %v3773_v16  ;;  %v1335_v28 = vmul.f32 %v3773_v16, %v4298_v45 }
0x111f   :  { %v1370_v21 = vmul.f32 2.0, %v3775_v17  ;;  %v1375_v31 = vmul.f32 %v3775_v17, %v1373_v27 }
0x1120   :  { %v3201_v22 = vadd.f32 -1.0, %v1333_v19 }
0x1121   :  { %v3205_v23 = vadd.f32 -1.0, %v1370_v21 }
0x1122   :  { %1337 = vrot.lane.b32.xlu0 %v3201_v22, %s4010_s0 }
0x1123   :  { %1377 = vrot.lane.b32.xlu1 %v3205_v23, %s4010_s0 }
0x1194   :  { %v1338_v24 = vpop.permute.xlu0 %1337 }
0x1195   :  { %v1340_v25 = vmul.f32 %v3773_v16, %v1338_v24  ;;  %v1378_v26 = vpop.permute.xlu1 %1377 }
0x1196   :  { %v1380_v15 = vmul.f32 %v3775_v17, %v1378_v26 }
0x1197   :  { %1342 = vrot.lane.b32.xlu0 %v1340_v25, %s4011_s8 }
0x1198   :  { %1382 = vrot.lane.b32.xlu1 %v1380_v15, %s4011_s8 }
0x1209   :  { %v1343_v29 = vpop.permute.xlu0 %1342 }
0x120a   :  { %v4325_v32 = vadd.f32 %v1343_v29, %v1335_v28  ;;  %v1383_v33 = vpop.permute.xlu1 %1382 }
0x120b   :  { %v4327_v41 = vadd.f32 %v1383_v33, %v1375_v31 }
0x120c   :  { %v3202_v46 = vmul.f32 -2.0, %v4325_v32 }
0x120d   :  { %v3206_v30 = vmul.f32 -2.0, %v4327_v41  ;;  %v1532_v27 = vrot.slane %v4327_v41, 6 }
0x120e   :  { %v1348_v47 = vmul.f32 1.442695, %v3202_v46 }
0x120f   :  { %v1388_v36 = vmul.f32 1.442695, %v3206_v30 }
0x1210   :  { %3776 = vpow2.f32 %v1348_v47 }
0x1211   :  { %3778 = vpow2.f32 %v1388_v36 }
0x121a   :  { %v3777_v50 = vpop.eup %3776 }
0x121b   :  { %v3779_v40 = vpop.eup %3778  ;;  %v1350_v35 = vadd.f32 1.0, %v3777_v50 }
0x121c   :  { %v1390_v44 = vadd.f32 1.0, %v3779_v40 }
0x121d   :  { %3780 = vrcp.f32 %v1350_v35 }
0x121e   :  { %3782 = vrcp.f32 %v1390_v44 }
0x1227   :  { %v3781_v45 = vpop.eup %3780 }
0x1228   :  { %v3783_v34 = vpop.eup %3782  ;;  %v1353_v39 = vmul.f32 2.0, %v3781_v45 }
0x1229   :  { %v1393_v37 = vmul.f32 2.0, %v3783_v34 }
0x122a   :  { %v3203_v51 = vadd.f32 -1.0, %v1353_v39 }
0x122b   :  { %v3207_v52 = vadd.f32 -1.0, %v1393_v37 }
0x122c   :  { %1356 = vrot.lane.b32.xlu0 %v3203_v51, %s4010_s0 }
0x122d   :  { %1396 = vrot.lane.b32.xlu1 %v3207_v52, %s4010_s0 }
0x129e   :  { %v1357_v53 = vpop.permute.xlu0 %1356 }
0x129f   :  { %v1359_v54 = vmul.f32 %v3773_v16, %v1357_v53  ;;  %v1397_v55 = vpop.permute.xlu1 %1396 }
0x12a0   :  { %v1399_v57 = vmul.f32 %v3775_v17, %v1397_v55 }
0x12a1   :  { %v1405_v59 = vrot.slane %v1359_v54, 6 }
0x12a2   :  { %1401 = vrot.lane.b32.xlu0 %v1399_v57, %s4011_s8 }
0x12a3   :  { %1406 = vrot.lane.b32.xlu1 %v1405_v59, %s4010_s0 }
0x1314   :  { %v1402_v60 = vpop.permute.xlu0 %1401 }
0x1315   :  { %v1407_v62 = vpop.permute.xlu1 %1406 }
0x1316   :  { %v1409_v63 = vsel %vm99_vm0, %v1402_v60, %v1407_v62 }
0x1317   :  { %v1411_v0 = vrot.slane %v1409_v63, 2 }
0x1319   :  { %3208 = vmatmul.mubr.msk.f32.vlgmr.msra.gmra.mrb[6].mxu1 %vm616_vm14, %v1411_v0 }
0x131a   :  { %3530 = vmatpush1.bf16.msra.mxu1 %v4154_v42  ;;  %1796 = vmatprep.mubr.f32.mxu1 %v4009_v1 }
0x131b   :  { %3532 = vmatprep.subr.bf16.mxu1 %v4156_v43 }
0x131e   :  { %3534 = vmatpush1.bf16.msra.mxu1 %v4161_v48 }
0x131f   :  { %3536 = vmatprep.subr.bf16.mxu1 %v4165_v49 }
0x1322   :  { %3538 = vmatpush1.bf16.msra.mxu1 %v4169_v56 }
0x1323   :  { %3540 = vmatprep.subr.bf16.mxu1 %v4173_v58 }
0x1326   :  { %3542 = vmatpush1.bf16.msra.mxu1 %v4178_v61 }
0x1327   :  { %3560 = vmatprep.subr.bf16.mxu1 %v4152_v38 }
0x13ec   :  { %v1480_v2 = vpop.f32.mrb[6].mxu1 }
0x13ed   :  { %v1520_v4 = vrot.slane %v1480_v2, 4  ;;  %v1482_v5 = vpop.f32.mrb[7].mxu1 }
0x13ee   :  { %v1485_v6 = vadd.f32 %v4200_v3, %v1482_v5 }
0x13ef   :  { %v1522_v7 = vadd.f32 %v1520_v4, %v4133_v13 }
0x13f0   :  { %v3209_v8 = vmul.f32 -1.442695, %v1485_v6 }
0x13f1   :  { %v3213_v9 = vmul.f32 -1.442695, %v1522_v7 }
0x13f2   :  { %3784 = vpow2.f32 %v3209_v8 }
0x13f3   :  { %3786 = vpow2.f32 %v3213_v9 }
0x13fc   :  { %v3785_v10 = vpop.eup %3784 }
0x13fd   :  { %v3787_v11 = vpop.eup %3786  ;;  %v1489_v12 = vadd.f32 1.0, %v3785_v10 }
0x13fe   :  { %v1526_v14 = vadd.f32 1.0, %v3787_v11 }
0x13ff   :  { %3788 = vrcp.f32 %v1489_v12 }
0x1400   :  { %3790 = vrcp.f32 %v1526_v14 }
0x1409   :  { %v3789_v16 = vpop.eup %3788 }
0x140a   :  { %v3791_v17 = vpop.eup %3790  ;;  %v1492_v19 = vmul.f32 2.0, %v3789_v16  ;;  %v1494_v28 = vmul.f32 %v3789_v16, %v4325_v32 }
0x140b   :  { %v1529_v21 = vmul.f32 2.0, %v3791_v17  ;;  %v1534_v31 = vmul.f32 %v3791_v17, %v1532_v27 }
0x140c   :  { %v3210_v22 = vadd.f32 -1.0, %v1492_v19 }
0x140d   :  { %v3214_v23 = vadd.f32 -1.0, %v1529_v21 }
0x140e   :  { %1496 = vrot.lane.b32.xlu0 %v3210_v22, %s4010_s0 }
0x140f   :  { %1536 = vrot.lane.b32.xlu1 %v3214_v23, %s4010_s0 }
0x1480   :  { %v1497_v24 = vpop.permute.xlu0 %1496 }
0x1481   :  { %v1499_v25 = vmul.f32 %v3789_v16, %v1497_v24  ;;  %v1537_v26 = vpop.permute.xlu1 %1536 }
0x1482   :  { %v1539_v15 = vmul.f32 %v3791_v17, %v1537_v26 }
0x1483   :  { %1501 = vrot.lane.b32.xlu0 %v1499_v25, %s4011_s8 }
0x1484   :  { %1541 = vrot.lane.b32.xlu1 %v1539_v15, %s4011_s8 }
0x14f5   :  { %v1502_v29 = vpop.permute.xlu0 %1501 }
0x14f6   :  { %v4354_v33 = vadd.f32 %v1502_v29, %v1494_v28  ;;  %v1542_v46 = vpop.permute.xlu1 %1541 }
0x14f7   :  { %v4356_v30 = vadd.f32 %v1542_v46, %v1534_v31 }
0x14f8   :  { %v3211_v47 = vmul.f32 -2.0, %v4354_v33 }
0x14f9   :  { %v3215_v36 = vmul.f32 -2.0, %v4356_v30  ;;  %v1691_v26 = vrot.slane %v4356_v30, 6 }
0x14fa   :  { %v1507_v50 = vmul.f32 1.442695, %v3211_v47 }
0x14fb   :  { %v1547_v40 = vmul.f32 1.442695, %v3215_v36 }
0x14fc   :  { %3792 = vpow2.f32 %v1507_v50 }
0x14fd   :  { %3794 = vpow2.f32 %v1547_v40 }
0x1506   :  { %v3793_v35 = vpop.eup %3792 }
0x1507   :  { %v3795_v44 = vpop.eup %3794  ;;  %v1509_v41 = vadd.f32 1.0, %v3793_v35 }
0x1508   :  { %v1549_v45 = vadd.f32 1.0, %v3795_v44 }
0x1509   :  { %3796 = vrcp.f32 %v1509_v41 }
0x150a   :  { %3798 = vrcp.f32 %v1549_v45 }
0x1513   :  { %v3797_v32 = vpop.eup %3796 }
0x1514   :  { %v3799_v34 = vpop.eup %3798  ;;  %v1512_v39 = vmul.f32 2.0, %v3797_v32 }
0x1515   :  { %v1552_v37 = vmul.f32 2.0, %v3799_v34 }
0x1516   :  { %v3212_v51 = vadd.f32 -1.0, %v1512_v39 }
0x1517   :  { %v3216_v52 = vadd.f32 -1.0, %v1552_v37 }
0x1518   :  { %1515 = vrot.lane.b32.xlu0 %v3212_v51, %s4010_s0 }
0x1519   :  { %1555 = vrot.lane.b32.xlu1 %v3216_v52, %s4010_s0 }
0x158a   :  { %v1516_v53 = vpop.permute.xlu0 %1515 }
0x158b   :  { %v1518_v54 = vmul.f32 %v3789_v16, %v1516_v53  ;;  %v1556_v55 = vpop.permute.xlu1 %1555 }
0x158c   :  { %v1558_v57 = vmul.f32 %v3791_v17, %v1556_v55 }
0x158d   :  { %v1564_v59 = vrot.slane %v1518_v54, 4 }
0x158e   :  { %1560 = vrot.lane.b32.xlu0 %v1558_v57, %s4011_s8 }
0x158f   :  { %1565 = vrot.lane.b32.xlu1 %v1564_v59, %s4010_s0 }
0x1600   :  { %v1561_v60 = vpop.permute.xlu0 %1560 }
0x1601   :  { %v1566_v62 = vpop.permute.xlu1 %1565 }
0x1602   :  { %v1568_v63 = vsel %vm99_vm0, %v1561_v60, %v1566_v62 }
0x1603   :  { %v1570_v0 = vrot.slane %v1568_v63, 4 }
0x1605   :  { %3217 = vmatmul.mubr.msk.f32.vlgmr.msra.gmra.mrb[12].mxu0 %vm616_vm14, %v1570_v0 }
0x1606   :  { %3546 = vmatpush1.bf16.msra.mxu0 %v4154_v42  ;;  %1950 = vmatprep.mubr.f32.mxu0 %v4009_v1 }
0x1607   :  { %3548 = vmatprep.subr.bf16.mxu0 %v4156_v43 }
0x160a   :  { %3550 = vmatpush1.bf16.msra.mxu0 %v4161_v48 }
0x160b   :  { %3552 = vmatprep.subr.bf16.mxu0 %v4165_v49 }
0x160e   :  { %3554 = vmatpush1.bf16.msra.mxu0 %v4169_v56 }
0x160f   :  { %3556 = vmatprep.subr.bf16.mxu0 %v4173_v58 }
0x1612   :  { %3558 = vmatpush1.bf16.msra.mxu0 %v4178_v61 }
0x1613   :  { %3576 = vmatprep.subr.bf16.mxu0 %v4152_v38 }
0x16d8   :  { %v1639_v2 = vpop.f32.mrb[12].mxu0 }
0x16d9   :  { %v1679_v4 = vrot.slane %v1639_v2, 2  ;;  %v1641_v5 = vpop.f32.mrb[13].mxu0 }
0x16da   :  { %v1644_v6 = vadd.f32 %v4200_v3, %v1641_v5 }
0x16db   :  { %v1681_v7 = vadd.f32 %v1679_v4, %v4133_v13  ;;  %v4405_v4 = vld [vmem:[#allocation4 + $0x72] ss:$0 sm:$0xff] }
0x16dc   :  { %v3218_v8 = vmul.f32 -1.442695, %v1644_v6 }
0x16dd   :  { %v3222_v9 = vmul.f32 -1.442695, %v1681_v7 }
0x16de   :  { %3800 = vpow2.f32 %v3218_v8 }
0x16df   :  { %3802 = vpow2.f32 %v3222_v9 }
0x16e8   :  { %v3801_v10 = vpop.eup %3800 }
0x16e9   :  { %v3803_v11 = vpop.eup %3802  ;;  %v1648_v12 = vadd.f32 1.0, %v3801_v10 }
0x16ea   :  { %v1685_v14 = vadd.f32 1.0, %v3803_v11 }
0x16eb   :  { %3804 = vrcp.f32 %v1648_v12 }
0x16ec   :  { %3806 = vrcp.f32 %v1685_v14 }
0x16f5   :  { %v3805_v16 = vpop.eup %3804 }
0x16f6   :  { %v3807_v17 = vpop.eup %3806  ;;  %v1651_v19 = vmul.f32 2.0, %v3805_v16  ;;  %v1653_v15 = vmul.f32 %v3805_v16, %v4354_v33 }
0x16f7   :  { %v1688_v21 = vmul.f32 2.0, %v3807_v17  ;;  %v1693_v28 = vmul.f32 %v3807_v17, %v1691_v26 }
0x16f8   :  { %v3219_v22 = vadd.f32 -1.0, %v1651_v19 }
0x16f9   :  { %v3223_v23 = vadd.f32 -1.0, %v1688_v21 }
0x16fa   :  { %1655 = vrot.lane.b32.xlu0 %v3219_v22, %s4010_s0 }
0x16fb   :  { %1695 = vrot.lane.b32.xlu1 %v3223_v23, %s4010_s0 }
0x176c   :  { %v1656_v13 = vpop.permute.xlu0 %1655 }
0x176d   :  { %v1658_v3 = vmul.f32 %v3805_v16, %v1656_v13  ;;  %v1696_v24 = vpop.permute.xlu1 %1695 }
0x176e   :  { %v1698_v25 = vmul.f32 %v3807_v17, %v1696_v24 }
0x176f   :  { %1660 = vrot.lane.b32.xlu0 %v1658_v3, %s4011_s8 }
0x1770   :  { %1700 = vrot.lane.b32.xlu1 %v1698_v25, %s4011_s8 }
0x17e1   :  { %v1661_v27 = vpop.permute.xlu0 %1660 }
0x17e2   :  { %v4383_v29 = vadd.f32 %v1661_v27, %v1653_v15  ;;  %v1701_v31 = vpop.permute.xlu1 %1700 }
0x17e3   :  { %v4385_v46 = vadd.f32 %v1701_v31, %v1693_v28 }
0x17e4   :  { %v3220_v47 = vmul.f32 -2.0, %v4383_v29 }
0x17e5   :  { %v3224_v36 = vmul.f32 -2.0, %v4385_v46  ;;  %v1847_v24 = vrot.slane %v4385_v46, 6 }
0x17e6   :  { %v1666_v50 = vmul.f32 1.442695, %v3220_v47 }
0x17e7   :  { %v1706_v40 = vmul.f32 1.442695, %v3224_v36 }
0x17e8   :  { %3808 = vpow2.f32 %v1666_v50 }
0x17e9   :  { %3810 = vpow2.f32 %v1706_v40 }
0x17f2   :  { %v3809_v35 = vpop.eup %3808 }
0x17f3   :  { %v3811_v44 = vpop.eup %3810  ;;  %v1668_v30 = vadd.f32 1.0, %v3809_v35 }
0x17f4   :  { %v1708_v41 = vadd.f32 1.0, %v3811_v44 }
0x17f5   :  { %3812 = vrcp.f32 %v1668_v30 }
0x17f6   :  { %3814 = vrcp.f32 %v1708_v41 }
0x17ff   :  { %v3813_v33 = vpop.eup %3812 }
0x1800   :  { %v3815_v45 = vpop.eup %3814  ;;  %v1671_v32 = vmul.f32 2.0, %v3813_v33 }
0x1801   :  { %v1711_v34 = vmul.f32 2.0, %v3815_v45 }
0x1802   :  { %v3221_v39 = vadd.f32 -1.0, %v1671_v32 }
0x1803   :  { %v3225_v37 = vadd.f32 -1.0, %v1711_v34 }
0x1804   :  { %1674 = vrot.lane.b32.xlu0 %v3221_v39, %s4010_s0 }
0x1805   :  { %1714 = vrot.lane.b32.xlu1 %v3225_v37, %s4010_s0 }
0x1876   :  { %v1675_v51 = vpop.permute.xlu0 %1674 }
0x1877   :  { %v1677_v52 = vmul.f32 %v3805_v16, %v1675_v51  ;;  %v1715_v53 = vpop.permute.xlu1 %1714 }
0x1878   :  { %v1717_v54 = vmul.f32 %v3807_v17, %v1715_v53 }
0x1879   :  { %v1723_v55 = vrot.slane %v1677_v52, 2 }
0x187a   :  { %1719 = vrot.lane.b32.xlu0 %v1717_v54, %s4011_s8 }
0x187b   :  { %1724 = vrot.lane.b32.xlu1 %v1723_v55, %s4010_s0 }
0x18ec   :  { %v1720_v57 = vpop.permute.xlu0 %1719 }
0x18ed   :  { %v1725_v59 = vpop.permute.xlu1 %1724 }
0x18ee   :  { %v1727_v60 = vsel %vm99_vm0, %v1720_v57, %v1725_v59 }
0x18ef   :  { %v1729_v62 = vrot.slane %v1727_v60, 6 }
0x18f1   :  { %3226 = vmatmul.mubr.msk.f32.vlgmr.msra.gmra.mrb[8].mxu1 %vm616_vm14, %v1729_v62 }
0x18f2   :  { %3562 = vmatpush1.bf16.msra.mxu1 %v4154_v42  ;;  %2109 = vmatprep.mubr.f32.mxu1 %v4009_v1 }
0x18f3   :  { %3564 = vmatprep.subr.bf16.mxu1 %v4156_v43 }
0x18f6   :  { %3566 = vmatpush1.bf16.msra.mxu1 %v4161_v48 }
0x18f7   :  { %3568 = vmatprep.subr.bf16.mxu1 %v4165_v49 }
0x18fa   :  { %3570 = vmatpush1.bf16.msra.mxu1 %v4169_v56 }
0x18fb   :  { %3572 = vmatprep.subr.bf16.mxu1 %v4173_v58 }
0x18fe   :  { %3574 = vmatpush1.bf16.msra.mxu1 %v4178_v61 }
0x18ff   :  { %3592 = vmatprep.subr.bf16.mxu1 %v4152_v38 }
0x19c4   :  { %v1798_v63 = vpop.f32.mrb[8].mxu1 }
0x19c5   :  { %v1837_v0 = vadd.f32 %v1798_v63, %v4140_v20  ;;  %v1800_v2 = vpop.f32.mrb[9].mxu1 }
0x19c6   :  { %v1803_v5 = vadd.f32 %v4405_v4, %v1800_v2 }
0x19c7   :  { %v3231_v6 = vmul.f32 -1.442695, %v1837_v0 }
0x19c8   :  { %v3227_v7 = vmul.f32 -1.442695, %v1803_v5 }
0x19c9   :  { %3816 = vpow2.f32 %v3231_v6 }
0x19ca   :  { %3818 = vpow2.f32 %v3227_v7 }
0x19d3   :  { %v3817_v8 = vpop.eup %3816 }
0x19d4   :  { %v3819_v9 = vpop.eup %3818  ;;  %v1841_v10 = vadd.f32 1.0, %v3817_v8 }
0x19d5   :  { %v1807_v11 = vadd.f32 1.0, %v3819_v9 }
0x19d6   :  { %3820 = vrcp.f32 %v1841_v10 }
0x19d7   :  { %3822 = vrcp.f32 %v1807_v11 }
0x19e0   :  { %v3821_v12 = vpop.eup %3820 }
0x19e1   :  { %v3823_v14 = vpop.eup %3822  ;;  %v1844_v16 = vmul.f32 2.0, %v3821_v12  ;;  %v1849_v25 = vmul.f32 %v3821_v12, %v1847_v24 }
0x19e2   :  { %v1810_v17 = vmul.f32 2.0, %v3823_v14  ;;  %v1812_v15 = vmul.f32 %v3823_v14, %v4383_v29 }
0x19e3   :  { %v3232_v19 = vadd.f32 -1.0, %v1844_v16 }
0x19e4   :  { %v3228_v21 = vadd.f32 -1.0, %v1810_v17 }
0x19e5   :  { %1851 = vrot.lane.b32.xlu1 %v3232_v19, %s4010_s0 }
0x19e6   :  { %1814 = vrot.lane.b32.xlu0 %v3228_v21, %s4010_s0 }
0x1a57   :  { %v1852_v22 = vpop.permute.xlu1 %1851 }
0x1a58   :  { %v1854_v23 = vmul.f32 %v3821_v12, %v1852_v22  ;;  %v1815_v13 = vpop.permute.xlu0 %1814 }
0x1a59   :  { %v1817_v3 = vmul.f32 %v3823_v14, %v1815_v13 }
0x1a5a   :  { %1856 = vrot.lane.b32.xlu1 %v1854_v23, %s4011_s8 }
0x1a5b   :  { %1819 = vrot.lane.b32.xlu0 %v1817_v3, %s4011_s8 }
0x1acc   :  { %v1857_v26 = vpop.permute.xlu1 %1856 }
0x1acd   :  { %v4414_v27 = vadd.f32 %v1857_v26, %v1849_v25  ;;  %v1820_v28 = vpop.permute.xlu0 %1819 }
0x1ace   :  { %v4416_v31 = vadd.f32 %v1820_v28, %v1812_v15 }
0x1acf   :  { %v3233_v47 = vmul.f32 -2.0, %v4414_v27  ;;  %v2004_v23 = vrot.slane %v4414_v27, 6 }
0x1ad0   :  { %v3229_v36 = vmul.f32 -2.0, %v4416_v31 }
0x1ad1   :  { %v1862_v50 = vmul.f32 1.442695, %v3233_v47 }
0x1ad2   :  { %v1825_v40 = vmul.f32 1.442695, %v3229_v36 }
0x1ad3   :  { %3824 = vpow2.f32 %v1862_v50 }
0x1ad4   :  { %3826 = vpow2.f32 %v1825_v40 }
0x1add   :  { %v3825_v35 = vpop.eup %3824 }
0x1ade   :  { %v3827_v44 = vpop.eup %3826  ;;  %v1864_v46 = vadd.f32 1.0, %v3825_v35 }
0x1adf   :  { %v1827_v30 = vadd.f32 1.0, %v3827_v44 }
0x1ae0   :  { %3828 = vrcp.f32 %v1864_v46 }
0x1ae1   :  { %3830 = vrcp.f32 %v1827_v30 }
0x1aea   :  { %v3829_v29 = vpop.eup %3828 }
0x1aeb   :  { %v3831_v41 = vpop.eup %3830  ;;  %v1867_v33 = vmul.f32 2.0, %v3829_v29 }
0x1aec   :  { %v1830_v45 = vmul.f32 2.0, %v3831_v41 }
0x1aed   :  { %v3234_v32 = vadd.f32 -1.0, %v1867_v33 }
0x1aee   :  { %v3230_v34 = vadd.f32 -1.0, %v1830_v45 }
0x1aef   :  { %1870 = vrot.lane.b32.xlu1 %v3234_v32, %s4010_s0 }
0x1af0   :  { %1833 = vrot.lane.b32.xlu0 %v3230_v34, %s4010_s0 }
0x1b61   :  { %v1871_v39 = vpop.permute.xlu1 %1870 }
0x1b62   :  { %v1873_v37 = vmul.f32 %v3821_v12, %v1871_v39  ;;  %v1834_v51 = vpop.permute.xlu0 %1833 }
0x1b63   :  { %v1836_v52 = vmul.f32 %v3823_v14, %v1834_v51 }
0x1b64   :  { %1875 = vrot.lane.b32.xlu0 %v1873_v37, %s4011_s8 }
0x1b65   :  { %1879 = vrot.lane.b32.xlu1 %v1836_v52, %s4010_s0 }
0x1bd6   :  { %v1876_v53 = vpop.permute.xlu0 %1875 }
0x1bd7   :  { %v1880_v54 = vpop.permute.xlu1 %1879 }
0x1bd8   :  { %v1882_v55 = vsel %vm99_vm0, %v1876_v53, %v1880_v54 }
0x1bd9   :  { %3235 = vmatmul.mubr.msk.f32.vlgmr.msra.gmra.mrb[14].mxu0 %vm616_vm14, %v1882_v55 }
0x1bda   :  { %3578 = vmatpush1.bf16.msra.mxu0 %v4154_v42  ;;  %2268 = vmatprep.mubr.f32.mxu0 %v4009_v1 }
0x1bdb   :  { %3580 = vmatprep.subr.bf16.mxu0 %v4156_v43 }
0x1bde   :  { %3582 = vmatpush1.bf16.msra.mxu0 %v4161_v48 }
0x1bdf   :  { %3584 = vmatprep.subr.bf16.mxu0 %v4165_v49 }
0x1be2   :  { %3586 = vmatpush1.bf16.msra.mxu0 %v4169_v56 }
0x1be3   :  { %3588 = vmatprep.subr.bf16.mxu0 %v4173_v58 }
0x1be6   :  { %3590 = vmatpush1.bf16.msra.mxu0 %v4178_v61 }
0x1be7   :  { %3608 = vmatprep.subr.bf16.mxu0 %v4152_v38 }
0x1cac   :  { %v1952_v57 = vpop.f32.mrb[14].mxu0 }
0x1cad   :  { %v1992_v59 = vrot.slane %v1952_v57, 6  ;;  %v1954_v60 = vpop.f32.mrb[15].mxu0 }
0x1cae   :  { %v1957_v62 = vadd.f32 %v4405_v4, %v1954_v60 }
0x1caf   :  { %v1994_v63 = vadd.f32 %v1992_v59, %v4140_v20 }
0x1cb0   :  { %v3236_v0 = vmul.f32 -1.442695, %v1957_v62 }
0x1cb1   :  { %v3240_v2 = vmul.f32 -1.442695, %v1994_v63 }
0x1cb2   :  { %3832 = vpow2.f32 %v3236_v0 }
0x1cb3   :  { %3834 = vpow2.f32 %v3240_v2 }
0x1cbc   :  { %v3833_v5 = vpop.eup %3832 }
0x1cbd   :  { %v3835_v6 = vpop.eup %3834  ;;  %v1961_v7 = vadd.f32 1.0, %v3833_v5 }
0x1cbe   :  { %v1998_v8 = vadd.f32 1.0, %v3835_v6 }
0x1cbf   :  { %3836 = vrcp.f32 %v1961_v7 }
0x1cc0   :  { %3838 = vrcp.f32 %v1998_v8 }
0x1cc9   :  { %v3837_v9 = vpop.eup %3836 }
0x1cca   :  { %v3839_v10 = vpop.eup %3838  ;;  %v1964_v11 = vmul.f32 2.0, %v3837_v9  ;;  %v1966_v13 = vmul.f32 %v3837_v9, %v4416_v31 }
0x1ccb   :  { %v2001_v12 = vmul.f32 2.0, %v3839_v10  ;;  %v2006_v24 = vmul.f32 %v3839_v10, %v2004_v23 }
0x1ccc   :  { %v3237_v14 = vadd.f32 -1.0, %v1964_v11 }
0x1ccd   :  { %v3241_v16 = vadd.f32 -1.0, %v2001_v12 }
0x1cce   :  { %1968 = vrot.lane.b32.xlu0 %v3237_v14, %s4010_s0 }
0x1ccf   :  { %2008 = vrot.lane.b32.xlu1 %v3241_v16, %s4010_s0 }
0x1d40   :  { %v1969_v17 = vpop.permute.xlu0 %1968 }
0x1d41   :  { %v1971_v19 = vmul.f32 %v3837_v9, %v1969_v17  ;;  %v2009_v21 = vpop.permute.xlu1 %2008 }
0x1d42   :  { %v2011_v22 = vmul.f32 %v3839_v10, %v2009_v21 }
0x1d43   :  { %1973 = vrot.lane.b32.xlu0 %v1971_v19, %s4011_s8 }
0x1d44   :  { %2013 = vrot.lane.b32.xlu1 %v2011_v22, %s4011_s8 }
0x1db5   :  { %v1974_v3 = vpop.permute.xlu0 %1973 }
0x1db6   :  { %v4443_v25 = vadd.f32 %v1974_v3, %v1966_v13  ;;  %v2014_v26 = vpop.permute.xlu1 %2013 }
0x1db7   :  { %v4445_v15 = vadd.f32 %v2014_v26, %v2006_v24 }
0x1db8   :  { %v3238_v28 = vmul.f32 -2.0, %v4443_v25 }
0x1db9   :  { %v3242_v47 = vmul.f32 -2.0, %v4445_v15  ;;  %v2163_v22 = vrot.slane %v4445_v15, 6 }
0x1dba   :  { %v1979_v36 = vmul.f32 1.442695, %v3238_v28 }
0x1dbb   :  { %v2019_v50 = vmul.f32 1.442695, %v3242_v47 }
0x1dbc   :  { %3840 = vpow2.f32 %v1979_v36 }
0x1dbd   :  { %3842 = vpow2.f32 %v2019_v50 }
0x1dc6   :  { %v3841_v40 = vpop.eup %3840 }
0x1dc7   :  { %v3843_v35 = vpop.eup %3842  ;;  %v1981_v27 = vadd.f32 1.0, %v3841_v40 }
0x1dc8   :  { %v2021_v44 = vadd.f32 1.0, %v3843_v35 }
0x1dc9   :  { %3844 = vrcp.f32 %v1981_v27 }
0x1dca   :  { %3846 = vrcp.f32 %v2021_v44 }
0x1dd3   :  { %v3845_v31 = vpop.eup %3844 }
0x1dd4   :  { %v3847_v46 = vpop.eup %3846  ;;  %v1984_v30 = vmul.f32 2.0, %v3845_v31 }
0x1dd5   :  { %v2024_v29 = vmul.f32 2.0, %v3847_v46 }
0x1dd6   :  { %v3239_v41 = vadd.f32 -1.0, %v1984_v30 }
0x1dd7   :  { %v3243_v33 = vadd.f32 -1.0, %v2024_v29 }
0x1dd8   :  { %1987 = vrot.lane.b32.xlu0 %v3239_v41, %s4010_s0 }
0x1dd9   :  { %2027 = vrot.lane.b32.xlu1 %v3243_v33, %s4010_s0 }
0x1e4a   :  { %v1988_v45 = vpop.permute.xlu0 %1987 }
0x1e4b   :  { %v1990_v32 = vmul.f32 %v3837_v9, %v1988_v45  ;;  %v2028_v34 = vpop.permute.xlu1 %2027 }
0x1e4c   :  { %v2030_v39 = vmul.f32 %v3839_v10, %v2028_v34 }
0x1e4d   :  { %v2036_v37 = vrot.slane %v1990_v32, 6 }
0x1e4e   :  { %2032 = vrot.lane.b32.xlu0 %v2030_v39, %s4011_s8 }
0x1e4f   :  { %2037 = vrot.lane.b32.xlu1 %v2036_v37, %s4010_s0 }
0x1ec0   :  { %v2033_v51 = vpop.permute.xlu0 %2032 }
0x1ec1   :  { %v2038_v52 = vpop.permute.xlu1 %2037 }
0x1ec2   :  { %v2040_v53 = vsel %vm99_vm0, %v2033_v51, %v2038_v52 }
0x1ec3   :  { %v2042_v54 = vrot.slane %v2040_v53, 2 }
0x1ec5   :  { %3244 = vmatmul.mubr.msk.f32.vlgmr.msra.gmra.mrb[10].mxu1 %vm616_vm14, %v2042_v54 }
0x1ec6   :  { %3594 = vmatpush1.bf16.msra.mxu1 %v4154_v42  ;;  %2427 = vmatprep.mubr.f32.mxu1 %v4009_v1 }
0x1ec7   :  { %3596 = vmatprep.subr.bf16.mxu1 %v4156_v43 }
0x1eca   :  { %3598 = vmatpush1.bf16.msra.mxu1 %v4161_v48 }
0x1ecb   :  { %3600 = vmatprep.subr.bf16.mxu1 %v4165_v49 }
0x1ece   :  { %3602 = vmatpush1.bf16.msra.mxu1 %v4169_v56 }
0x1ecf   :  { %3604 = vmatprep.subr.bf16.mxu1 %v4173_v58 }
0x1ed2   :  { %3606 = vmatpush1.bf16.msra.mxu1 %v4178_v61 }
0x1ed3   :  { %3624 = vmatprep.subr.bf16.mxu1 %v4152_v38 }
0x1f98   :  { %v2111_v55 = vpop.f32.mrb[10].mxu1 }
0x1f99   :  { %v2151_v57 = vrot.slane %v2111_v55, 4  ;;  %v2113_v59 = vpop.f32.mrb[11].mxu1 }
0x1f9a   :  { %v2116_v60 = vadd.f32 %v4405_v4, %v2113_v59 }
0x1f9b   :  { %v2153_v62 = vadd.f32 %v2151_v57, %v4140_v20 }
0x1f9c   :  { %v3245_v63 = vmul.f32 -1.442695, %v2116_v60 }
0x1f9d   :  { %v3249_v0 = vmul.f32 -1.442695, %v2153_v62 }
0x1f9e   :  { %3848 = vpow2.f32 %v3245_v63 }
0x1f9f   :  { %3850 = vpow2.f32 %v3249_v0 }
0x1fa8   :  { %v3849_v2 = vpop.eup %3848 }
0x1fa9   :  { %v3851_v5 = vpop.eup %3850  ;;  %v2120_v6 = vadd.f32 1.0, %v3849_v2 }
0x1faa   :  { %v2157_v7 = vadd.f32 1.0, %v3851_v5 }
0x1fab   :  { %3852 = vrcp.f32 %v2120_v6 }
0x1fac   :  { %3854 = vrcp.f32 %v2157_v7 }
0x1fb5   :  { %v3853_v8 = vpop.eup %3852 }
0x1fb6   :  { %v3855_v9 = vpop.eup %3854  ;;  %v2123_v10 = vmul.f32 2.0, %v3853_v8  ;;  %v2125_v23 = vmul.f32 %v3853_v8, %v4443_v25 }
0x1fb7   :  { %v2160_v11 = vmul.f32 2.0, %v3855_v9  ;;  %v2165_v3 = vmul.f32 %v3855_v9, %v2163_v22 }
0x1fb8   :  { %v3246_v12 = vadd.f32 -1.0, %v2123_v10 }
0x1fb9   :  { %v3250_v14 = vadd.f32 -1.0, %v2160_v11 }
0x1fba   :  { %2127 = vrot.lane.b32.xlu0 %v3246_v12, %s4010_s0 }
0x1fbb   :  { %2167 = vrot.lane.b32.xlu1 %v3250_v14, %s4010_s0 }
0x202c   :  { %v2128_v16 = vpop.permute.xlu0 %2127 }
0x202d   :  { %v2130_v17 = vmul.f32 %v3853_v8, %v2128_v16  ;;  %v2168_v19 = vpop.permute.xlu1 %2167 }
0x202e   :  { %v2170_v21 = vmul.f32 %v3855_v9, %v2168_v19 }
0x202f   :  { %2132 = vrot.lane.b32.xlu0 %v2130_v17, %s4011_s8 }
0x2030   :  { %2172 = vrot.lane.b32.xlu1 %v2170_v21, %s4011_s8 }
0x20a1   :  { %v2133_v13 = vpop.permute.xlu0 %2132 }
0x20a2   :  { %v4472_v24 = vadd.f32 %v2133_v13, %v2125_v23  ;;  %v2173_v26 = vpop.permute.xlu1 %2172 }
0x20a3   :  { %v4474_v28 = vadd.f32 %v2173_v26, %v2165_v3 }
0x20a4   :  { %v3247_v47 = vmul.f32 -2.0, %v4472_v24 }
0x20a5   :  { %v3251_v36 = vmul.f32 -2.0, %v4474_v28  ;;  %v2322_v19 = vrot.slane %v4474_v28, 6 }
0x20a6   :  { %v2138_v50 = vmul.f32 1.442695, %v3247_v47 }
0x20a7   :  { %v2178_v40 = vmul.f32 1.442695, %v3251_v36 }
0x20a8   :  { %3856 = vpow2.f32 %v2138_v50 }
0x20a9   :  { %3858 = vpow2.f32 %v2178_v40 }
0x20b2   :  { %v3857_v35 = vpop.eup %3856 }
0x20b3   :  { %v3859_v27 = vpop.eup %3858  ;;  %v2140_v15 = vadd.f32 1.0, %v3857_v35 }
0x20b4   :  { %v2180_v44 = vadd.f32 1.0, %v3859_v27 }
0x20b5   :  { %3860 = vrcp.f32 %v2140_v15 }
0x20b6   :  { %3862 = vrcp.f32 %v2180_v44 }
0x20bf   :  { %v3861_v25 = vpop.eup %3860 }
0x20c0   :  { %v3863_v31 = vpop.eup %3862  ;;  %v2143_v46 = vmul.f32 2.0, %v3861_v25 }
0x20c1   :  { %v2183_v30 = vmul.f32 2.0, %v3863_v31 }
0x20c2   :  { %v3248_v29 = vadd.f32 -1.0, %v2143_v46 }
0x20c3   :  { %v3252_v41 = vadd.f32 -1.0, %v2183_v30 }
0x20c4   :  { %2146 = vrot.lane.b32.xlu0 %v3248_v29, %s4010_s0 }
0x20c5   :  { %2186 = vrot.lane.b32.xlu1 %v3252_v41, %s4010_s0 }
0x2136   :  { %v2147_v33 = vpop.permute.xlu0 %2146 }
0x2137   :  { %v2149_v45 = vmul.f32 %v3853_v8, %v2147_v33  ;;  %v2187_v32 = vpop.permute.xlu1 %2186 }
0x2138   :  { %v2189_v34 = vmul.f32 %v3855_v9, %v2187_v32 }
0x2139   :  { %v2195_v39 = vrot.slane %v2149_v45, 4 }
0x213a   :  { %2191 = vrot.lane.b32.xlu0 %v2189_v34, %s4011_s8 }
0x213b   :  { %2196 = vrot.lane.b32.xlu1 %v2195_v39, %s4010_s0 }
0x21ac   :  { %v2192_v37 = vpop.permute.xlu0 %2191 }
0x21ad   :  { %v2197_v51 = vpop.permute.xlu1 %2196 }
0x21ae   :  { %v2199_v52 = vsel %vm99_vm0, %v2192_v37, %v2197_v51 }
0x21af   :  { %v2201_v53 = vrot.slane %v2199_v52, 4 }
0x21b1   :  { %3253 = vmatmul.mubr.msk.f32.vlgmr.msra.gmra.mrb[16].mxu0 %vm616_vm14, %v2201_v53 }
0x21b2   :  { %3610 = vmatpush1.bf16.msra.mxu0 %v4154_v42  ;;  %2581 = vmatprep.mubr.f32.mxu0 %v4009_v1 }
0x21b3   :  { %3612 = vmatprep.subr.bf16.mxu0 %v4156_v43 }
0x21b6   :  { %3614 = vmatpush1.bf16.msra.mxu0 %v4161_v48 }
0x21b7   :  { %3616 = vmatprep.subr.bf16.mxu0 %v4165_v49 }
0x21ba   :  { %3618 = vmatpush1.bf16.msra.mxu0 %v4169_v56 }
0x21bb   :  { %3620 = vmatprep.subr.bf16.mxu0 %v4173_v58 }
0x21be   :  { %3622 = vmatpush1.bf16.msra.mxu0 %v4178_v61 }
0x21bf   :  { %3640 = vmatprep.subr.bf16.mxu0 %v4152_v38 }
0x2284   :  { %v2270_v54 = vpop.f32.mrb[16].mxu0 }
0x2285   :  { %v2310_v55 = vrot.slane %v2270_v54, 2  ;;  %v2272_v57 = vpop.f32.mrb[17].mxu0 }
0x2286   :  { %v2275_v59 = vadd.f32 %v4405_v4, %v2272_v57 }
0x2287   :  { %v2312_v60 = vadd.f32 %v2310_v55, %v4140_v20 }
0x2288   :  { %v3254_v62 = vmul.f32 -1.442695, %v2275_v59 }
0x2289   :  { %v3258_v63 = vmul.f32 -1.442695, %v2312_v60 }
0x228a   :  { %3864 = vpow2.f32 %v3254_v62 }
0x228b   :  { %3866 = vpow2.f32 %v3258_v63 }
0x2294   :  { %v3865_v0 = vpop.eup %3864 }
0x2295   :  { %v3867_v2 = vpop.eup %3866  ;;  %v2279_v5 = vadd.f32 1.0, %v3865_v0 }
0x2296   :  { %v2316_v6 = vadd.f32 1.0, %v3867_v2 }
0x2297   :  { %3868 = vrcp.f32 %v2279_v5 }
0x2298   :  { %3870 = vrcp.f32 %v2316_v6 }
0x22a1   :  { %v3869_v7 = vpop.eup %3868 }
0x22a2   :  { %v3871_v8 = vpop.eup %3870  ;;  %v2282_v9 = vmul.f32 2.0, %v3869_v7  ;;  %v2284_v21 = vmul.f32 %v3869_v7, %v4472_v24 }
0x22a3   :  { %v2319_v10 = vmul.f32 2.0, %v3871_v8  ;;  %v2324_v23 = vmul.f32 %v3871_v8, %v2322_v19 }
0x22a4   :  { %v3255_v11 = vadd.f32 -1.0, %v2282_v9 }
0x22a5   :  { %v3259_v12 = vadd.f32 -1.0, %v2319_v10 }
0x22a6   :  { %2286 = vrot.lane.b32.xlu0 %v3255_v11, %s4010_s0 }
0x22a7   :  { %2326 = vrot.lane.b32.xlu1 %v3259_v12, %s4010_s0 }
0x2318   :  { %v2287_v20 = vpop.permute.xlu0 %2286 }
0x2319   :  { %v2289_v14 = vmul.f32 %v3869_v7, %v2287_v20  ;;  %v2327_v16 = vpop.permute.xlu1 %2326 }
0x231a   :  { %v2329_v17 = vmul.f32 %v3871_v8, %v2327_v16 }
0x231b   :  { %2291 = vrot.lane.b32.xlu0 %v2289_v14, %s4011_s8 }
0x231c   :  { %2331 = vrot.lane.b32.xlu1 %v2329_v17, %s4011_s8 }
0x238d   :  { %v2292_v22 = vpop.permute.xlu0 %2291 }
0x238e   :  { %v4501_v13 = vadd.f32 %v2292_v22, %v2284_v21  ;;  %v2332_v3 = vpop.permute.xlu1 %2331 }
0x238f   :  { %v4503_v26 = vadd.f32 %v2332_v3, %v2324_v23 }
0x2390   :  { %v3256_v47 = vmul.f32 -2.0, %v4501_v13 }
0x2391   :  { %v3260_v36 = vmul.f32 -2.0, %v4503_v26  ;;  %v2478_v20 = vrot.slane %v4503_v26, 6 }
0x2392   :  { %v2297_v50 = vmul.f32 1.442695, %v3256_v47 }
0x2393   :  { %v2337_v40 = vmul.f32 1.442695, %v3260_v36 }
0x2394   :  { %3872 = vpow2.f32 %v2297_v50 }
0x2395   :  { %3874 = vpow2.f32 %v2337_v40 }
0x239e   :  { %v3873_v35 = vpop.eup %3872 }
0x239f   :  { %v3875_v27 = vpop.eup %3874  ;;  %v2299_v28 = vadd.f32 1.0, %v3873_v35 }
0x23a0   :  { %v2339_v15 = vadd.f32 1.0, %v3875_v27 }
0x23a1   :  { %3876 = vrcp.f32 %v2299_v28 }
0x23a2   :  { %3878 = vrcp.f32 %v2339_v15 }
0x23ab   :  { %v3877_v24 = vpop.eup %3876 }
0x23ac   :  { %v3879_v44 = vpop.eup %3878  ;;  %v2302_v25 = vmul.f32 2.0, %v3877_v24 }
0x23ad   :  { %v2342_v31 = vmul.f32 2.0, %v3879_v44 }
0x23ae   :  { %v3257_v46 = vadd.f32 -1.0, %v2302_v25 }
0x23af   :  { %v3261_v30 = vadd.f32 -1.0, %v2342_v31 }
0x23b0   :  { %2305 = vrot.lane.b32.xlu0 %v3257_v46, %s4010_s0 }
0x23b1   :  { %2345 = vrot.lane.b32.xlu1 %v3261_v30, %s4010_s0 }
0x2422   :  { %v2306_v29 = vpop.permute.xlu0 %2305 }
0x2423   :  { %v2308_v41 = vmul.f32 %v3869_v7, %v2306_v29  ;;  %v2346_v33 = vpop.permute.xlu1 %2345 }
0x2424   :  { %v2348_v45 = vmul.f32 %v3871_v8, %v2346_v33 }
0x2425   :  { %v2354_v32 = vrot.slane %v2308_v41, 2 }
0x2426   :  { %2350 = vrot.lane.b32.xlu0 %v2348_v45, %s4011_s8 }
0x2427   :  { %2355 = vrot.lane.b32.xlu1 %v2354_v32, %s4010_s0 }
0x2498   :  { %v2351_v34 = vpop.permute.xlu0 %2350 }
0x2499   :  { %v2356_v39 = vpop.permute.xlu1 %2355 }
0x249a   :  { %v2358_v37 = vsel %vm99_vm0, %v2351_v34, %v2356_v39 }
0x249b   :  { %v2360_v51 = vrot.slane %v2358_v37, 6 }
0x249d   :  { %3262 = vmatmul.mubr.msk.f32.vlgmr.msra.gmra.mrb[12].mxu1 %vm616_vm14, %v2360_v51 }
0x249e   :  { %3626 = vmatpush1.bf16.msra.mxu1 %v4154_v42  ;;  %2740 = vmatprep.mubr.f32.mxu1 %v4009_v1 }
0x249f   :  { %3628 = vmatprep.subr.bf16.mxu1 %v4156_v43 }
0x24a2   :  { %3630 = vmatpush1.bf16.msra.mxu1 %v4161_v48 }
0x24a3   :  { %3632 = vmatprep.subr.bf16.mxu1 %v4165_v49 }
0x24a6   :  { %3634 = vmatpush1.bf16.msra.mxu1 %v4169_v56 }
0x24a7   :  { %3636 = vmatprep.subr.bf16.mxu1 %v4173_v58 }
0x24aa   :  { %3638 = vmatpush1.bf16.msra.mxu1 %v4178_v61 }
0x24ab   :  { %3656 = vmatprep.subr.bf16.mxu1 %v4152_v38 }
0x2570   :  { %v2429_v52 = vpop.f32.mrb[12].mxu1 }
0x2571   :  { %v2468_v53 = vadd.f32 %v2429_v52, %v4138_v18  ;;  %v2431_v54 = vpop.f32.mrb[13].mxu1 }
0x2572   :  { %v2434_v55 = vadd.f32 %v4405_v4, %v2431_v54 }
0x2573   :  { %v3267_v57 = vmul.f32 -1.442695, %v2468_v53 }
0x2574   :  { %v3263_v59 = vmul.f32 -1.442695, %v2434_v55 }
0x2575   :  { %3880 = vpow2.f32 %v3267_v57 }
0x2576   :  { %3882 = vpow2.f32 %v3263_v59 }
0x257f   :  { %v3881_v60 = vpop.eup %3880 }
0x2580   :  { %v3883_v62 = vpop.eup %3882  ;;  %v2472_v63 = vadd.f32 1.0, %v3881_v60 }
0x2581   :  { %v2438_v0 = vadd.f32 1.0, %v3883_v62 }
0x2582   :  { %3884 = vrcp.f32 %v2472_v63 }
0x2583   :  { %3886 = vrcp.f32 %v2438_v0 }
0x258c   :  { %v3885_v2 = vpop.eup %3884 }
0x258d   :  { %v3887_v5 = vpop.eup %3886  ;;  %v2475_v6 = vmul.f32 2.0, %v3885_v2  ;;  %v2480_v14 = vmul.f32 %v3885_v2, %v2478_v20 }
0x258e   :  { %v2441_v38 = vmul.f32 2.0, %v3887_v5  ;;  %v2443_v17 = vmul.f32 %v3887_v5, %v4501_v13 }
0x258f   :  { %v3268_v7 = vadd.f32 -1.0, %v2475_v6 }
0x2590   :  { %v3264_v8 = vadd.f32 -1.0, %v2441_v38 }
0x2591   :  { %2482 = vrot.lane.b32.xlu1 %v3268_v7, %s4010_s0 }
0x2592   :  { %2445 = vrot.lane.b32.xlu0 %v3264_v8, %s4010_s0 }
0x2603   :  { %v2483_v9 = vpop.permute.xlu1 %2482 }
0x2604   :  { %v2485_v10 = vmul.f32 %v3885_v2, %v2483_v9  ;;  %v2446_v11 = vpop.permute.xlu0 %2445 }
0x2605   :  { %v2448_v12 = vmul.f32 %v3887_v5, %v2446_v11 }
0x2606   :  { %2487 = vrot.lane.b32.xlu1 %v2485_v10, %s4011_s8 }
0x2607   :  { %2450 = vrot.lane.b32.xlu0 %v2448_v12, %s4011_s8 }
0x2678   :  { %v2488_v16 = vpop.permute.xlu1 %2487 }
0x2679   :  { %v4530_v19 = vadd.f32 %v2488_v16, %v2480_v14  ;;  %v2451_v21 = vpop.permute.xlu0 %2450 }
0x267a   :  { %v4532_v22 = vadd.f32 %v2451_v21, %v2443_v17 }
0x267b   :  { %v3269_v23 = vmul.f32 -2.0, %v4530_v19  ;;  %v2635_v8 = vrot.slane %v4530_v19, 6 }
0x267c   :  { %v3265_v3 = vmul.f32 -2.0, %v4532_v22 }
0x267d   :  { %v2493_v47 = vmul.f32 1.442695, %v3269_v23 }
0x267e   :  { %v2456_v36 = vmul.f32 1.442695, %v3265_v3 }
0x267f   :  { %3888 = vpow2.f32 %v2493_v47 }
0x2680   :  { %3890 = vpow2.f32 %v2456_v36 }
0x2689   :  { %v3889_v50 = vpop.eup %3888 }
0x268a   :  { %v3891_v40 = vpop.eup %3890  ;;  %v2495_v26 = vadd.f32 1.0, %v3889_v50 }
0x268b   :  { %v2458_v35 = vadd.f32 1.0, %v3891_v40 }
0x268c   :  { %3892 = vrcp.f32 %v2495_v26 }
0x268d   :  { %3894 = vrcp.f32 %v2458_v35 }
0x2696   :  { %v3893_v13 = vpop.eup %3892 }
0x2697   :  { %v3895_v27 = vpop.eup %3894  ;;  %v2498_v28 = vmul.f32 2.0, %v3893_v13 }
0x2698   :  { %v2461_v15 = vmul.f32 2.0, %v3895_v27 }
0x2699   :  { %v3270_v24 = vadd.f32 -1.0, %v2498_v28 }
0x269a   :  { %v3266_v44 = vadd.f32 -1.0, %v2461_v15 }
0x269b   :  { %2501 = vrot.lane.b32.xlu1 %v3270_v24, %s4010_s0 }
0x269c   :  { %2464 = vrot.lane.b32.xlu0 %v3266_v44, %s4010_s0 }
0x270d   :  { %v2502_v25 = vpop.permute.xlu1 %2501 }
0x270e   :  { %v2504_v31 = vmul.f32 %v3885_v2, %v2502_v25  ;;  %v2465_v46 = vpop.permute.xlu0 %2464 }
0x270f   :  { %v2467_v30 = vmul.f32 %v3887_v5, %v2465_v46 }
0x2710   :  { %2506 = vrot.lane.b32.xlu0 %v2504_v31, %s4011_s8 }
0x2711   :  { %2510 = vrot.lane.b32.xlu1 %v2467_v30, %s4010_s0 }
0x2782   :  { %v2507_v29 = vpop.permute.xlu0 %2506 }
0x2783   :  { %v2511_v41 = vpop.permute.xlu1 %2510 }
0x2784   :  { %v2513_v33 = vsel %vm99_vm0, %v2507_v29, %v2511_v41 }
0x2785   :  { %3271 = vmatmul.mubr.msk.f32.vlgmr.msra.gmra.mrb[18].mxu0 %vm616_vm14, %v2513_v33 }
0x2786   :  { %3642 = vmatpush1.bf16.msra.mxu0 %v4154_v42  ;;  %2899 = vmatprep.mubr.f32.mxu0 %v4009_v1 }
0x2787   :  { %3644 = vmatprep.subr.bf16.mxu0 %v4156_v43 }
0x278a   :  { %3646 = vmatpush1.bf16.msra.mxu0 %v4161_v48 }
0x278b   :  { %3648 = vmatprep.subr.bf16.mxu0 %v4165_v49 }
0x278e   :  { %3650 = vmatpush1.bf16.msra.mxu0 %v4169_v56 }
0x278f   :  { %3652 = vmatprep.subr.bf16.mxu0 %v4173_v58 }
0x2792   :  { %3654 = vmatpush1.bf16.msra.mxu0 %v4178_v61 }
0x2858   :  { %v2583_v45 = vpop.f32.mrb[18].mxu0 }
0x2859   :  { %v2623_v32 = vrot.slane %v2583_v45, 6  ;;  %v2585_v34 = vpop.f32.mrb[19].mxu0 }
0x285a   :  { %v2588_v39 = vadd.f32 %v4405_v4, %v2585_v34 }
0x285b   :  { %v2625_v37 = vadd.f32 %v2623_v32, %v4138_v18 }
0x285c   :  { %v3272_v51 = vmul.f32 -1.442695, %v2588_v39 }
0x285d   :  { %v3276_v52 = vmul.f32 -1.442695, %v2625_v37 }
0x285e   :  { %3896 = vpow2.f32 %v3272_v51 }
0x285f   :  { %3898 = vpow2.f32 %v3276_v52 }
0x2868   :  { %v3897_v53 = vpop.eup %3896 }
0x2869   :  { %v3899_v54 = vpop.eup %3898  ;;  %v2592_v55 = vadd.f32 1.0, %v3897_v53 }
0x286a   :  { %v2629_v57 = vadd.f32 1.0, %v3899_v54 }
0x286b   :  { %3900 = vrcp.f32 %v2592_v55 }
0x286c   :  { %3902 = vrcp.f32 %v2629_v57 }
0x2875   :  { %v3901_v59 = vpop.eup %3900 }
0x2876   :  { %v3903_v60 = vpop.eup %3902  ;;  %v2595_v62 = vmul.f32 2.0, %v3901_v59  ;;  %v2597_v9 = vmul.f32 %v3901_v59, %v4532_v22 }
0x2877   :  { %v2632_v63 = vmul.f32 2.0, %v3903_v60  ;;  %v2637_v11 = vmul.f32 %v3903_v60, %v2635_v8 }
0x2878   :  { %v3273_v0 = vadd.f32 -1.0, %v2595_v62 }
0x2879   :  { %v3277_v2 = vadd.f32 -1.0, %v2632_v63 }
0x287a   :  { %2599 = vrot.lane.b32.xlu0 %v3273_v0, %s4010_s0 }
0x287b   :  { %2639 = vrot.lane.b32.xlu1 %v3277_v2, %s4010_s0 }
0x28ec   :  { %v2600_v5 = vpop.permute.xlu0 %2599 }
0x28ed   :  { %v2602_v6 = vmul.f32 %v3901_v59, %v2600_v5  ;;  %v2640_v38 = vpop.permute.xlu1 %2639 }
0x28ee   :  { %v2642_v7 = vmul.f32 %v3903_v60, %v2640_v38 }
0x28ef   :  { %2604 = vrot.lane.b32.xlu0 %v2602_v6, %s4011_s8 }
0x28f0   :  { %2644 = vrot.lane.b32.xlu1 %v2642_v7, %s4011_s8 }
0x2961   :  { %v2605_v10 = vpop.permute.xlu0 %2604 }
0x2962   :  { %v4558_v12 = vadd.f32 %v2605_v10, %v2597_v9  ;;  %v2645_v20 = vpop.permute.xlu1 %2644 }
0x2963   :  { %v4560_v14 = vadd.f32 %v2645_v20, %v2637_v11 }
0x2964   :  { %v3274_v16 = vmul.f32 -2.0, %v4558_v12 }
0x2965   :  { %v3278_v17 = vmul.f32 -2.0, %v4560_v14  ;;  %v2794_v55 = vrot.slane %v4560_v14, 6 }
0x2966   :  { %v2610_v21 = vmul.f32 1.442695, %v3274_v16 }
0x2967   :  { %v2650_v23 = vmul.f32 1.442695, %v3278_v17 }
0x2968   :  { %3904 = vpow2.f32 %v2610_v21 }
0x2969   :  { %3906 = vpow2.f32 %v2650_v23 }
0x2972   :  { %v3905_v3 = vpop.eup %3904 }
0x2973   :  { %v3907_v47 = vpop.eup %3906  ;;  %v2612_v19 = vadd.f32 1.0, %v3905_v3 }
0x2974   :  { %v2652_v36 = vadd.f32 1.0, %v3907_v47 }
0x2975   :  { %3908 = vrcp.f32 %v2612_v19 }
0x2976   :  { %3910 = vrcp.f32 %v2652_v36 }
0x297f   :  { %v3909_v22 = vpop.eup %3908 }
0x2980   :  { %v3911_v50 = vpop.eup %3910  ;;  %v2615_v40 = vmul.f32 2.0, %v3909_v22 }
0x2981   :  { %v2655_v26 = vmul.f32 2.0, %v3911_v50 }
0x2982   :  { %v3275_v35 = vadd.f32 -1.0, %v2615_v40 }
0x2983   :  { %v3279_v13 = vadd.f32 -1.0, %v2655_v26 }
0x2984   :  { %2618 = vrot.lane.b32.xlu0 %v3275_v35, %s4010_s0 }
0x2985   :  { %2658 = vrot.lane.b32.xlu1 %v3279_v13, %s4010_s0 }
0x29f6   :  { %v2619_v27 = vpop.permute.xlu0 %2618 }
0x29f7   :  { %v2621_v28 = vmul.f32 %v3901_v59, %v2619_v27  ;;  %v2659_v15 = vpop.permute.xlu1 %2658  ;;  %v4598_v27 = vld [vmem:[#allocation4 + $0x72] ss:$0 sm:$0xff] }
0x29f8   :  { %v2661_v24 = vmul.f32 %v3903_v60, %v2659_v15 }
0x29f9   :  { %v2667_v44 = vrot.slane %v2621_v28, 6 }
0x29fa   :  { %2663 = vrot.lane.b32.xlu0 %v2661_v24, %s4011_s8 }
0x29fb   :  { %2668 = vrot.lane.b32.xlu1 %v2667_v44, %s4010_s0 }
0x2a6c   :  { %v2664_v25 = vpop.permute.xlu0 %2663 }
0x2a6d   :  { %v2669_v31 = vpop.permute.xlu1 %2668 }
0x2a6e   :  { %v2671_v46 = vsel %vm99_vm0, %v2664_v25, %v2669_v31 }
0x2a6f   :  { %v2673_v30 = vrot.slane %v2671_v46, 2 }
0x2a71   :  { %3280 = vmatmul.mubr.msk.f32.vlgmr.msra.gmra.mrb[14].mxu1 %vm616_vm14, %v2673_v30 }
0x2a72   :  { %3658 = vmatpush1.bf16.msra.mxu1 %v4154_v42  ;;  %3058 = vmatprep.mubr.f32.mxu1 %v4009_v1 }
0x2a73   :  { %3660 = vmatprep.subr.bf16.mxu1 %v4156_v43 }
0x2a76   :  { %3662 = vmatpush1.bf16.msra.mxu1 %v4161_v48 }
0x2a77   :  { %3664 = vmatprep.subr.bf16.mxu1 %v4165_v49 }
0x2a7a   :  { %3666 = vmatpush1.bf16.msra.mxu1 %v4169_v56 }
0x2a7b   :  { %3668 = vmatprep.subr.bf16.mxu1 %v4173_v58 }
0x2a7e   :  { %3670 = vmatpush1.bf16.msra.mxu1 %v4178_v61 }
0x2b44   :  { %v2742_v29 = vpop.f32.mrb[14].mxu1 }
0x2b45   :  { %v2782_v41 = vrot.slane %v2742_v29, 4  ;;  %v2744_v33 = vpop.f32.mrb[15].mxu1 }
0x2b46   :  { %v2747_v45 = vadd.f32 %v4405_v4, %v2744_v33 }
0x2b47   :  { %v2784_v42 = vadd.f32 %v2782_v41, %v4138_v18 }
0x2b48   :  { %v3281_v1 = vmul.f32 -1.442695, %v2747_v45 }
0x2b49   :  { %v3285_v32 = vmul.f32 -1.442695, %v2784_v42 }
0x2b4a   :  { %3912 = vpow2.f32 %v3281_v1 }
0x2b4b   :  { %3914 = vpow2.f32 %v3285_v32 }
0x2b54   :  { %v3913_v43 = vpop.eup %3912 }
0x2b55   :  { %v3915_v48 = vpop.eup %3914  ;;  %v2751_v49 = vadd.f32 1.0, %v3913_v43 }
0x2b56   :  { %v2788_v34 = vadd.f32 1.0, %v3915_v48 }
0x2b57   :  { %3916 = vrcp.f32 %v2751_v49 }
0x2b58   :  { %3918 = vrcp.f32 %v2788_v34 }
0x2b61   :  { %v3917_v56 = vpop.eup %3916 }
0x2b62   :  { %v3919_v58 = vpop.eup %3918  ;;  %v2754_v61 = vmul.f32 2.0, %v3917_v56  ;;  %v2756_v57 = vmul.f32 %v3917_v56, %v4558_v12 }
0x2b63   :  { %v2791_v39 = vmul.f32 2.0, %v3919_v58  ;;  %v2796_v60 = vmul.f32 %v3919_v58, %v2794_v55 }
0x2b64   :  { %v3282_v37 = vadd.f32 -1.0, %v2754_v61 }
0x2b65   :  { %v3286_v51 = vadd.f32 -1.0, %v2791_v39 }
0x2b66   :  { %2758 = vrot.lane.b32.xlu0 %v3282_v37, %s4010_s0 }
0x2b67   :  { %2798 = vrot.lane.b32.xlu1 %v3286_v51, %s4010_s0 }
0x2bd8   :  { %v2759_v4 = vpop.permute.xlu0 %2758 }
0x2bd9   :  { %v2761_v52 = vmul.f32 %v3917_v56, %v2759_v4  ;;  %v2799_v53 = vpop.permute.xlu1 %2798 }
0x2bda   :  { %v2801_v54 = vmul.f32 %v3919_v58, %v2799_v53 }
0x2bdb   :  { %2763 = vrot.lane.b32.xlu0 %v2761_v52, %s4011_s8 }
0x2bdc   :  { %2803 = vrot.lane.b32.xlu1 %v2801_v54, %s4011_s8 }
0x2c4d   :  { %v2764_v59 = vpop.permute.xlu0 %2763 }
0x2c4e   :  { %v4586_v62 = vadd.f32 %v2764_v59, %v2756_v57  ;;  %v2804_v63 = vpop.permute.xlu1 %2803 }
0x2c4f   :  { %v4588_v0 = vadd.f32 %v2804_v63, %v2796_v60 }
0x2c50   :  { %v3283_v2 = vmul.f32 -2.0, %v4586_v62 }
0x2c51   :  { %v3287_v5 = vmul.f32 -2.0, %v4588_v0  ;;  %v2953_v49 = vrot.slane %v4588_v0, 6 }
0x2c52   :  { %v2769_v6 = vmul.f32 1.442695, %v3283_v2 }
0x2c53   :  { %v2809_v38 = vmul.f32 1.442695, %v3287_v5 }
0x2c54   :  { %3920 = vpow2.f32 %v2769_v6 }
0x2c55   :  { %3922 = vpow2.f32 %v2809_v38 }
0x2c5e   :  { %v3921_v7 = vpop.eup %3920 }
0x2c5f   :  { %v3923_v8 = vpop.eup %3922  ;;  %v2771_v9 = vadd.f32 1.0, %v3921_v7 }
0x2c60   :  { %v2811_v10 = vadd.f32 1.0, %v3923_v8 }
0x2c61   :  { %3924 = vrcp.f32 %v2771_v9 }
0x2c62   :  { %3926 = vrcp.f32 %v2811_v10 }
0x2c6b   :  { %v3925_v11 = vpop.eup %3924 }
0x2c6c   :  { %v3927_v12 = vpop.eup %3926  ;;  %v2774_v20 = vmul.f32 2.0, %v3925_v11 }
0x2c6d   :  { %v2814_v14 = vmul.f32 2.0, %v3927_v12 }
0x2c6e   :  { %v3284_v16 = vadd.f32 -1.0, %v2774_v20 }
0x2c6f   :  { %v3288_v17 = vadd.f32 -1.0, %v2814_v14 }
0x2c70   :  { %2777 = vrot.lane.b32.xlu0 %v3284_v16, %s4010_s0 }
0x2c71   :  { %2817 = vrot.lane.b32.xlu1 %v3288_v17, %s4010_s0 }
0x2ce2   :  { %v2778_v21 = vpop.permute.xlu0 %2777 }
0x2ce3   :  { %v2780_v23 = vmul.f32 %v3917_v56, %v2778_v21  ;;  %v2818_v3 = vpop.permute.xlu1 %2817 }
0x2ce4   :  { %v2820_v47 = vmul.f32 %v3919_v58, %v2818_v3 }
0x2ce5   :  { %v2826_v19 = vrot.slane %v2780_v23, 4 }
0x2ce6   :  { %2822 = vrot.lane.b32.xlu0 %v2820_v47, %s4011_s8 }
0x2ce7   :  { %2827 = vrot.lane.b32.xlu1 %v2826_v19, %s4010_s0 }
0x2d58   :  { %v2823_v36 = vpop.permute.xlu0 %2822 }
0x2d59   :  { %v2828_v22 = vpop.permute.xlu1 %2827 }
0x2d5a   :  { %v2830_v50 = vsel %vm99_vm0, %v2823_v36, %v2828_v22 }
0x2d5b   :  { %v2832_v40 = vrot.slane %v2830_v50, 4 }
0x2d5d   :  { %3289 = vmatmul.mubr.msk.f32.vlgmr.msra.gmra.mrb[20].mxu0 %vm616_vm14, %v2832_v40  ;;  %v3303_v40 = vld [vmem:[#allocation4 + $0x73] ss:$0 sm:$0xff] }
0x2e30   :  { %v2901_v26 = vpop.f32.mrb[20].mxu0 }
0x2e31   :  { %v2941_v35 = vrot.slane %v2901_v26, 2  ;;  %v2903_v13 = vpop.f32.mrb[21].mxu0 }
0x2e32   :  { %v2906_v28 = vadd.f32 %v4598_v27, %v2903_v13 }
0x2e33   :  { %v2943_v15 = vadd.f32 %v2941_v35, %v4138_v18 }
0x2e34   :  { %v3290_v24 = vmul.f32 -1.442695, %v2906_v28 }
0x2e35   :  { %v3294_v44 = vmul.f32 -1.442695, %v2943_v15 }
0x2e36   :  { %3928 = vpow2.f32 %v3290_v24 }
0x2e37   :  { %3930 = vpow2.f32 %v3294_v44 }
0x2e40   :  { %v3929_v25 = vpop.eup %3928 }
0x2e41   :  { %v3931_v31 = vpop.eup %3930  ;;  %v2910_v46 = vadd.f32 1.0, %v3929_v25 }
0x2e42   :  { %v2947_v30 = vadd.f32 1.0, %v3931_v31 }
0x2e43   :  { %3932 = vrcp.f32 %v2910_v46 }
0x2e44   :  { %3934 = vrcp.f32 %v2947_v30 }
0x2e4d   :  { %v3933_v29 = vpop.eup %3932 }
0x2e4e   :  { %v3935_v41 = vpop.eup %3934  ;;  %v2913_v33 = vmul.f32 2.0, %v3933_v29  ;;  %v2915_v34 = vmul.f32 %v3933_v29, %v4586_v62 }
0x2e4f   :  { %v2950_v45 = vmul.f32 2.0, %v3935_v41  ;;  %v2955_v58 = vmul.f32 %v3935_v41, %v2953_v49 }
0x2e50   :  { %v3291_v42 = vadd.f32 -1.0, %v2913_v33 }
0x2e51   :  { %v3295_v1 = vadd.f32 -1.0, %v2950_v45 }
0x2e52   :  { %2917 = vrot.lane.b32.xlu0 %v3291_v42, %s4010_s0  ;;  %v3304_v42 = vld [vmem:[#allocation4 + $0x74] ss:$0 sm:$0xff] }
0x2e53   :  { %2957 = vrot.lane.b32.xlu1 %v3295_v1, %s4010_s0 }
0x2ec4   :  { %v2918_v18 = vpop.permute.xlu0 %2917 }
0x2ec5   :  { %v2920_v32 = vmul.f32 %v3933_v29, %v2918_v18  ;;  %v2958_v43 = vpop.permute.xlu1 %2957 }
0x2ec6   :  { %v2960_v48 = vmul.f32 %v3935_v41, %v2958_v43 }
0x2ec7   :  { %2922 = vrot.lane.b32.xlu0 %v2920_v32, %s4011_s8 }
0x2ec8   :  { %2962 = vrot.lane.b32.xlu1 %v2960_v48, %s4011_s8 }
0x2f39   :  { %v2923_v56 = vpop.permute.xlu0 %2922 }
0x2f3a   :  { %v2925_v61 = vadd.f32 %v2923_v56, %v2915_v34  ;;  %v2963_v39 = vpop.permute.xlu1 %2962 }
0x2f3b   :  { %v2965_v37 = vadd.f32 %v2963_v39, %v2955_v58 }
0x2f3c   :  { %v3292_v51 = vmul.f32 -2.0, %v2925_v61 }
0x2f3d   :  { %v3296_v4 = vmul.f32 -2.0, %v2965_v37 }
0x2f3e   :  { %v2928_v52 = vmul.f32 1.442695, %v3292_v51 }
0x2f3f   :  { %v2968_v53 = vmul.f32 1.442695, %v3296_v4 }
0x2f40   :  { %3936 = vpow2.f32 %v2928_v52 }
0x2f41   :  { %3938 = vpow2.f32 %v2968_v53 }
0x2f4a   :  { %v3937_v54 = vpop.eup %3936 }
0x2f4b   :  { %v3939_v55 = vpop.eup %3938  ;;  %v2930_v57 = vadd.f32 1.0, %v3937_v54 }
0x2f4c   :  { %v2970_v59 = vadd.f32 1.0, %v3939_v55 }
0x2f4d   :  { %3940 = vrcp.f32 %v2930_v57 }
0x2f4e   :  { %3942 = vrcp.f32 %v2970_v59 }
0x2f57   :  { %v3941_v60 = vpop.eup %3940 }
0x2f58   :  { %v3943_v63 = vpop.eup %3942  ;;  %v2933_v62 = vmul.f32 2.0, %v3941_v60 }
0x2f59   :  { %v2973_v0 = vmul.f32 2.0, %v3943_v63 }
0x2f5a   :  { %v3293_v2 = vadd.f32 -1.0, %v2933_v62 }
0x2f5b   :  { %v3297_v5 = vadd.f32 -1.0, %v2973_v0 }
0x2f5c   :  { %2936 = vrot.lane.b32.xlu0 %v3293_v2, %s4010_s0 }
0x2f5d   :  { %2976 = vrot.lane.b32.xlu1 %v3297_v5, %s4010_s0 }
0x2fce   :  { %v2937_v6 = vpop.permute.xlu0 %2936 }
0x2fcf   :  { %v2939_v38 = vmul.f32 %v3933_v29, %v2937_v6  ;;  %v2977_v7 = vpop.permute.xlu1 %2976 }
0x2fd0   :  { %v2979_v8 = vmul.f32 %v3935_v41, %v2977_v7 }
0x2fd1   :  { %v2985_v9 = vrot.slane %v2939_v38, 2 }
0x2fd2   :  { %2981 = vrot.lane.b32.xlu0 %v2979_v8, %s4011_s8 }
0x2fd3   :  { %2986 = vrot.lane.b32.xlu1 %v2985_v9, %s4010_s0 }
0x3044   :  { %v2982_v10 = vpop.permute.xlu0 %2981 }
0x3045   :  { %v2987_v11 = vpop.permute.xlu1 %2986 }
0x3046   :  { %v2989_v12 = vsel %vm99_vm0, %v2982_v10, %v2987_v11  ;;  %vm3120_vm0 = vcmask 1024  }
0x3047   :  { %v2991_v20 = vrot.slane %v2989_v12, 6 }
0x3049   :  { %3298 = vmatmul.mubr.msk.f32.vlgmr.msra.gmra.mrb[16].mxu1 %vm616_vm14, %v2991_v20 }
0x311c   :  { %v3060_v14 = vpop.f32.mrb[16].mxu1 }
0x311d   :  { %v3061_v16 = vpop.f32.mrb[17].mxu1 }
0x311e   :  { %v3064_v17 = vadd.f32 %v4598_v27, %v3061_v16 }
0x3120   :  { %v3299_v21 = vmul.f32 -1.442695, %v3064_v17 }
0x3122   :  { %3944 = vpow2.f32 %v3299_v21 }
0x312c   :  { %v3945_v23 = vpop.eup %3944 }
0x312d   :  { %v3068_v3 = vadd.f32 1.0, %v3945_v23 }
0x312f   :  { %3946 = vrcp.f32 %v3068_v3 }
0x3139   :  { %v3947_v47 = vpop.eup %3946 }
0x313a   :  { %v3071_v19 = vmul.f32 2.0, %v3947_v47  ;;  %v3073_v26 = vmul.f32 %v3947_v47, %v2925_v61 }
0x313c   :  { %v3300_v36 = vadd.f32 -1.0, %v3071_v19 }
0x313e   :  { %3075 = vrot.lane.b32.xlu0 %v3300_v36, %s4010_s0 }
0x31b0   :  { %v3076_v22 = vpop.permute.xlu0 %3075 }
0x31b1   :  { %v3078_v50 = vmul.f32 %v3947_v47, %v3076_v22 }
0x31b3   :  { %3080 = vrot.lane.b32.xlu1 %v3078_v50, %s4011_s8 }
0x31b7   :  { %3103 = vrot.lane.b32.xlu1 %v3303_v40, %s4012_s1 }
0x3225   :  { %v3081_v35 = vpop.permute.xlu1 %3080 }
0x3226   :  { %v3083_v13 = vadd.f32 %v3081_v35, %v3073_v26 }
0x3228   :  { %v3301_v27 = vmul.f32 -2.0, %v3083_v13 }
0x3229   :  { %v3104_v30 = vpop.permute.xlu1 %3103 }
0x322a   :  { %v3086_v28 = vmul.f32 1.442695, %v3301_v27 }
0x322c   :  { %3948 = vpow2.f32 %v3086_v28 }
0x3236   :  { %v3949_v15 = vpop.eup %3948 }
0x3237   :  { %v3088_v24 = vadd.f32 1.0, %v3949_v15 }
0x3239   :  { %3950 = vrcp.f32 %v3088_v24 }
0x3243   :  { %v3951_v44 = vpop.eup %3950 }
0x3244   :  { %v3091_v25 = vmul.f32 2.0, %v3951_v44 }
0x3246   :  { %v3302_v31 = vadd.f32 -1.0, %v3091_v25 }
0x3248   :  { %3094 = vrot.lane.b32.xlu0 %v3302_v31, %s4010_s0 }
0x32ba   :  { %v3095_v46 = vpop.permute.xlu0 %3094 }
0x32bb   :  { %v3097_v29 = vmul.f32 %v3947_v47, %v3095_v46 }
0x32bd   :  { %v3106_v41 = vmul.f32 %v3104_v30, %v3097_v29 }
0x32bf   :  { %3108 = vrot.lane.b32.xlu0 %v3106_v41, %s4011_s8 }
0x3331   :  { %v3109_v33 = vpop.permute.xlu0 %3108 }
0x3332   :  { %v3112_v45 = vsel %vm3111_vm15, %v3109_v33, 0.0 }
0x3333   :  { %3113 = vadd.xlane.f32.xlu1 %v3112_v45 }
0x33c0   :  { %v3114_v1 = vpop.xlane.xlu1 %3113 }
0x33c1   :  { %v3119_v18 = vadd.f32 %v3304_v42, %v3114_v1 }
0x33c3   :  { %3121 = vst.msk [vmem:[%s4625_s3] sm:$0x3] %vm3120_vm0, %v3119_v18 }
0x33c4   :  { %3126 = vsyncpa [#allocation3], 1 }
0x33c5   :  { %3127 = vsyncpa [#allocation5], 1 }

</bundles_post_ra>
